<compile_context>
chip_gen: v7x
topology: tpu7x:2x2x1
jax: 0.10.0
libtpu: 0.0.40
codegen_flags: <defaults>
</compile_context>

<pallas_src>
import functools

import jax
import jax.numpy as jnp
from jax import lax
from jax.experimental import pallas as pl
from jax.experimental.pallas import tpu as pltpu

_EPS = 1e-5


def _tpu_vmem_capacity_bytes():
    try:
        return int(pltpu.get_tpu_info().vmem_capacity_bytes)
    except Exception:
        return 64 * 1024 * 1024          # conservative (v7x per-TC VMEM)


# Generation-aware scoped-VMEM budget: ~3/4 of physical VMEM (≈48 MiB on v7x,
# ≈96 MiB on v5e/v6e 128 MiB parts) leaving headroom for Mosaic internals.
_VMEM_CAP = _tpu_vmem_capacity_bytes()
_VMEM_LIMIT = min(int(_VMEM_CAP * 3 // 4), 100 * 1024 * 1024)
_DEFAULT_TILE_M = 2048 if _VMEM_CAP >= (96 << 20) else 1024


# ---------------------------------------------------------------------------
# Host-side helpers
# ---------------------------------------------------------------------------
def _choose_tile(m, cap):
    """Row-tile size + grid length for a flattened (m, C) activation.

    Prefers an exact divisor (multiple of 8) near `cap`; otherwise falls back to
    a cdiv grid with an in-kernel masked tail.  Never returns a whole-M block
    for large m (keeps pipelining / megacore sharding and bounds VMEM).
    """
    if m <= 8:
        return m, 1
    cap = int(min(cap, m))
    cap -= cap % 8
    cap = max(cap, 8)
    if m % cap == 0:
        return cap, m // cap
    lo = max(8, cap // 2)
    for t in range(cap, lo - 1, -8):
        if m % t == 0:
            return t, m // t
    return cap, int(pl.cdiv(m, cap))


def _pick_divisor(m, cap):
    cap = int(max(1, min(cap, m)))
    for t in range(cap, 0, -1):
        if m % t == 0:
            return t
    return m


def _combine_bn(stats, count, gamma, beta, eps=_EPS):
    """Reduce per-tile (sum, sum_sq) partials into BN scale/shift (f32, tiny)."""
    s = jnp.sum(stats, axis=0)                       # (2, C)
    mean = s[0] / count
    # TODO(synk): switch to a Welford/shifted per-tile combine for very large
    # N*H*W reductions where f32 E[x^2]-E[x]^2 cancellation could matter.
    var = jnp.maximum(s[1] / count - mean * mean, 0.0)   # biased (training mode)
    scale = gamma.reshape(1, -1) * lax.rsqrt(var + eps)
    shift = beta.reshape(1, -1) - mean.reshape(1, -1) * scale
    return scale, shift


# ---------------------------------------------------------------------------
# Kernels
# ---------------------------------------------------------------------------
def _mm_stats_kernel(x_ref, sc_ref, sh_ref, w_ref, y_ref, st_ref,
                     *, pre_bn_relu, cdt, rows_total, tile_rows, needs_mask):
    """1x1 conv as a row-tiled matmul; optional fused BN+ReLU on the input;
    emits per-tile (sum, sum_sq) partial stats of the f32 accumulator."""
    x = x_ref[...]
    mask = None
    if needs_mask:                       # cdiv grid: zero the out-of-range tail rows
        valid = rows_total - pl.program_id(0) * tile_rows
        rows = lax.broadcasted_iota(jnp.int32, (tile_rows, 1), 0)
        mask = rows < valid
        x = jnp.where(mask, x, jnp.zeros_like(x))
    if pre_bn_relu:                      # fused BN+ReLU of the producer stage (f32)
        x = jnp.maximum(x.astype(jnp.float32) * sc_ref[...] + sh_ref[...], 0.0)
    # Weights arrive pre-cast to the compute dtype (no per-step weight cast).
    y = jnp.dot(x.astype(cdt), w_ref[...], preferred_element_type=jnp.float32)
    ys = jnp.where(mask, y, 0.0) if needs_mask else y
    st_ref[0] = jnp.concatenate(
        [jnp.sum(ys, axis=0, keepdims=True),
         jnp.sum(ys * ys, axis=0, keepdims=True)], axis=0)
    y_ref[...] = y.astype(y_ref.dtype)   # activations stored in bf16


def _conv3x3_stats_kernel(x_ref, sc_ref, sh_ref, w_ref, y_ref, st_ref, xp_ref,
                          *, stride, cdt):
    """3x3 conv (pad=1) with BN1+ReLU fused on its input.

    Grid = (image, output-row tile).  The whole BN'd, zero-padded image lives in
    a bf16 VMEM scratch filled once per image; each row tile accumulates 9 MXU
    matmuls (one per (dy, dx) tap) into an f32 accumulator.
    """
    _, H, W, Cin = x_ref.shape
    _, TH, Wo, Cout = y_ref.shape
    r = pl.program_id(1)

    @pl.when(r == 0)
    def _fill():                         # once per image, not per row tile
        a = jnp.maximum(
            x_ref[0].astype(jnp.float32) * sc_ref[...] + sh_ref[...],
            0.0).astype(xp_ref.dtype)
        zrow = jnp.zeros((1, W + 2, Cin), xp_ref.dtype)
        zcol = jnp.zeros((H, 1, Cin), xp_ref.dtype)
        xp_ref[0:1, :, :] = zrow                       # top halo row
        xp_ref[H + 1:H + 2, :, :] = zrow               # bottom halo row
        # Full-width aligned store: pad the columns in registers.
        xp_ref[1:H + 1, :, :] = jnp.concatenate([zcol, a, zcol], axis=1)

    w = w_ref[...]                                     # (9, Cin, Cout), resident
    base = pl.multiple_of(r * (stride * TH), stride * TH)
    hi_w = stride * (Wo - 1) + 1
    acc = jnp.zeros((TH * Wo, Cout), jnp.float32)
    for dy in range(3):
        if stride == 1:
            slab = xp_ref[pl.ds(base + dy, TH), :, :]          # (TH, W+2, Cin)
        else:
            slab = xp_ref[pl.ds(base + dy, TH, stride=stride), :, :]
        for dx in range(3):
            if stride == 1:
                win = slab[:, dx:dx + Wo, :]
            else:
                win = lax.slice(slab, (0, dx, 0), (TH, dx + hi_w, Cin),
                                (1, stride, 1))
            acc += jnp.dot(win.reshape(TH * Wo, Cin).astype(cdt),
                           w[dy * 3 + dx], preferred_element_type=jnp.float32)
    y_ref[0] = acc.reshape(TH, Wo, Cout).astype(y_ref.dtype)
    st_ref[0, 0] = jnp.concatenate(
        [jnp.sum(acc, axis=0, keepdims=True),
         jnp.sum(acc * acc, axis=0, keepdims=True)], axis=0)


def _shortcut_strided_kernel(x_ref, w_ref, y_ref, st_ref, *, stride, cdt):
    """Shortcut 1x1 conv with the stride-`stride` spatial subsample fused
    in-kernel (no wrapper-level strided slice / extra HBM pass).
    TODO(synk): only exercised for stride > 1 blocks."""
    _, H, W, Cin = x_ref.shape
    _, Ho, Wo, Cout = y_ref.shape
    xs = x_ref[0, pl.ds(0, Ho, stride=stride), pl.ds(0, Wo, stride=stride), :]
    y = jnp.dot(xs.reshape(Ho * Wo, Cin).astype(cdt), w_ref[...],
                preferred_element_type=jnp.float32)
    y_ref[0] = y.reshape(Ho, Wo, Cout).astype(y_ref.dtype)
    st_ref[0] = jnp.concatenate(
        [jnp.sum(y, axis=0, keepdims=True),
         jnp.sum(y * y, axis=0, keepdims=True)], axis=0)


def _finalize_kernel(y_ref, r_ref, sc3_ref, sh3_ref, scs_ref, shs_ref, o_ref,
                     *, bn_residual):
    """bn3(y3) + [bn_s(shortcut) or identity] + relu (elementwise, f32 math)."""
    y = y_ref[...].astype(jnp.float32) * sc3_ref[...] + sh3_ref[...]
    r = r_ref[...].astype(jnp.float32)
    if bn_residual:
        r = r * scs_ref[...] + shs_ref[...]
    o_ref[...] = jnp.maximum(y + r, 0.0).astype(o_ref.dtype)


# ---------------------------------------------------------------------------
# pallas_call wrappers
# ---------------------------------------------------------------------------
def conv1x1_stats(x2d, w, scale=None, shift=None, *, tile_m, cdt,
                  out_dtype=jnp.bfloat16):
    m, k = x2d.shape
    n = w.shape[1]
    tm, nt = _choose_tile(m, tile_m)
    pre = scale is not None
    if not pre:
        scale = jnp.ones((1, k), jnp.float32)
        shift = jnp.zeros((1, k), jnp.float32)
    kern = functools.partial(_mm_stats_kernel, pre_bn_relu=pre, cdt=cdt,
                             rows_total=m, tile_rows=tm,
                             needs_mask=(tm * nt != m))
    bytes_acc = int(x2d.dtype.itemsize * m * k + w.dtype.itemsize * k * n
                    + jnp.dtype(out_dtype).itemsize * m * n + 4 * nt * 2 * n)
    return pl.pallas_call(
        kern,
        out_shape=(jax.ShapeDtypeStruct((m, n), out_dtype),
                   jax.ShapeDtypeStruct((nt, 2, n), jnp.float32)),
        grid=(nt,),
        in_specs=[pl.BlockSpec((tm, k), lambda i: (i, 0)),
                  pl.BlockSpec((1, k), lambda i: (0, 0)),
                  pl.BlockSpec((1, k), lambda i: (0, 0)),
                  pl.BlockSpec((k, n), lambda i: (0, 0))],
        out_specs=(pl.BlockSpec((tm, n), lambda i: (i, 0)),
                   pl.BlockSpec((1, 2, n), lambda i: (i, 0, 0))),
        compiler_params=pltpu.CompilerParams(
            dimension_semantics=("parallel",),
            vmem_limit_bytes=_VMEM_LIMIT),
        cost_estimate=pl.CostEstimate(flops=2 * m * k * n, transcendentals=0,
                                      bytes_accessed=bytes_acc),
    )(x2d, scale, shift, w)


def conv3x3_stats(x_nhwc, w9, scale, shift, *, stride, row_tile, cdt,
                  out_dtype=jnp.bfloat16):
    N, H, W, Cin = x_nhwc.shape
    Cout = w9.shape[-1]
    Ho = (H - 1) // stride + 1
    Wo = (W - 1) // stride + 1
    th = _pick_divisor(Ho, row_tile)
    nrt = Ho // th
    bytes_acc = int(x_nhwc.dtype.itemsize * N * H * W * Cin
                    + w9.dtype.itemsize * 9 * Cin * Cout
                    + jnp.dtype(out_dtype).itemsize * N * Ho * Wo * Cout
                    + 4 * N * nrt * 2 * Cout)
    return pl.pallas_call(
        functools.partial(_conv3x3_stats_kernel, stride=stride, cdt=cdt),
        out_shape=(jax.ShapeDtypeStruct((N, Ho, Wo, Cout), out_dtype),
                   jax.ShapeDtypeStruct((N, nrt, 2, Cout), jnp.float32)),
        grid=(N, nrt),
        in_specs=[pl.BlockSpec((1, H, W, Cin), lambda n, r: (n, 0, 0, 0)),
                  pl.BlockSpec((1, Cin), lambda n, r: (0, 0)),
                  pl.BlockSpec((1, Cin), lambda n, r: (0, 0)),
                  pl.BlockSpec((9, Cin, Cout), lambda n, r: (0, 0, 0))],
        out_specs=(pl.BlockSpec((1, th, Wo, Cout), lambda n, r: (n, r, 0, 0)),
                   pl.BlockSpec((1, 1, 2, Cout), lambda n, r: (n, r, 0, 0))),
        scratch_shapes=[pltpu.VMEM((H + 2, W + 2, Cin), cdt)],
        compiler_params=pltpu.CompilerParams(
            # image axis "parallel" (splits across v7x's 2 TCs); row-tile axis
            # "arbitrary" so the per-image scratch fill/reuse stays on one core.
            dimension_semantics=("parallel", "arbitrary"),
            vmem_limit_bytes=_VMEM_LIMIT),
        cost_estimate=pl.CostEstimate(
            flops=2 * N * Ho * Wo * 9 * Cin * Cout, transcendentals=0,
            bytes_accessed=bytes_acc),
    )(x_nhwc, scale, shift, w9)


def shortcut_strided_conv1x1_stats(x_nhwc, w, *, stride, cdt,
                                   out_dtype=jnp.bfloat16):
    N, H, W, Cin = x_nhwc.shape
    Cout = w.shape[-1]
    Ho = (H - 1) // stride + 1
    Wo = (W - 1) // stride + 1
    return pl.pallas_call(
        functools.partial(_shortcut_strided_kernel, stride=stride, cdt=cdt),
        out_shape=(jax.ShapeDtypeStruct((N, Ho, Wo, Cout), out_dtype),
                   jax.ShapeDtypeStruct((N, 2, Cout), jnp.float32)),
        grid=(N,),
        in_specs=[pl.BlockSpec((1, H, W, Cin), lambda n: (n, 0, 0, 0)),
                  pl.BlockSpec((Cin, Cout), lambda n: (0, 0))],
        out_specs=(pl.BlockSpec((1, Ho, Wo, Cout), lambda n: (n, 0, 0, 0)),
                   pl.BlockSpec((1, 2, Cout), lambda n: (n, 0, 0))),
        compiler_params=pltpu.CompilerParams(
            dimension_semantics=("parallel",),
            vmem_limit_bytes=_VMEM_LIMIT),
    )(x_nhwc, w)


def finalize_add_relu(y3, res, sc3, sh3, scs=None, shs=None, *, tile_m):
    m, c = y3.shape
    tm, nt = _choose_tile(m, tile_m)
    bn_res = scs is not None
    if not bn_res:
        scs = jnp.ones((1, c), jnp.float32)
        shs = jnp.zeros((1, c), jnp.float32)
    return pl.pallas_call(
        functools.partial(_finalize_kernel, bn_residual=bn_res),
        out_shape=jax.ShapeDtypeStruct((m, c), jnp.float32),
        grid=(nt,),
        in_specs=[pl.BlockSpec((tm, c), lambda i: (i, 0)),
                  pl.BlockSpec((tm, c), lambda i: (i, 0)),
                  pl.BlockSpec((1, c), lambda i: (0, 0)),
                  pl.BlockSpec((1, c), lambda i: (0, 0)),
                  pl.BlockSpec((1, c), lambda i: (0, 0)),
                  pl.BlockSpec((1, c), lambda i: (0, 0))],
        out_specs=pl.BlockSpec((tm, c), lambda i: (i, 0)),
        compiler_params=pltpu.CompilerParams(
            dimension_semantics=("parallel",),
            vmem_limit_bytes=_VMEM_LIMIT),
        cost_estimate=pl.CostEstimate(
            flops=4 * m * c, transcendentals=0,
            bytes_accessed=int(3 * m * c * 4)),
    )(y3, res, sc3, sh3, scs, shs)


# ---------------------------------------------------------------------------
# Bottleneck forward (wrapper; accepts NCHW like PyTorch, or NHWC directly)
# ---------------------------------------------------------------------------
def bottleneck_forward(x, p, *, stride, tile_m=None, row_tile=8,
                       compute_dtype=jnp.bfloat16, data_format="NCHW"):
    if data_format == "NCHW":
        x = jnp.transpose(x, (0, 2, 3, 1))               # -> NHWC
    cdt = compute_dtype
    # Storing x in the compute dtype halves the HBM reads of the two consumers
    # (conv1 + shortcut); the matmuls consume bf16 either way.
    x = x.astype(cdt)
    N, H, W, Cin = x.shape
    planes = p["w1"].shape[1]
    Cout = p["w3"].shape[1]
    if tile_m is None:
        tile_m = _DEFAULT_TILE_M

    # Weights pre-cast once in the wrapper (review item: no in-kernel casts).
    w1 = p["w1"].astype(cdt)
    w2 = p["w2"].astype(cdt).reshape(9, planes, planes)  # (dy,dx,Cin,Cout)->(9,...)
    w3 = p["w3"].astype(cdt)

    # conv1 (1x1): pre-BN activation (bf16) + partial BN1 stats (f32)
    m0 = N * H * W
    y1, st1 = conv1x1_stats(x.reshape(m0, Cin), w1, tile_m=tile_m, cdt=cdt,
                            out_dtype=cdt)
    sc1, sh1 = _combine_bn(st1, m0, p["g1"], p["b1"])

    # conv2 (3x3, stride, pad=1), row-tiled, with bn1+relu fused on its input
    y2, st2 = conv3x3_stats(y1.reshape(N, H, W, planes), w2, sc1, sh1,
                            stride=stride, row_tile=row_tile, cdt=cdt,
                            out_dtype=cdt)
    _, Ho, Wo, _ = y2.shape
    m1 = N * Ho * Wo
    sc2, sh2 = _combine_bn(st2.reshape(-1, 2, planes), m1, p["g2"], p["b2"])

    # conv3 (1x1) with bn2+relu fused on its input
    y3, st3 = conv1x1_stats(y2.reshape(m1, planes), w3, sc2, sh2,
                            tile_m=tile_m, cdt=cdt, out_dtype=cdt)
    sc3, sh3 = _combine_bn(st3, m1, p["g3"], p["b3"])

    # shortcut branch + final bn3 / add / relu
    if stride != 1 or Cin != Cout:
        ws = p["ws"].astype(cdt)
        if stride == 1:
            ys, sts = conv1x1_stats(x.reshape(m0, Cin), ws, tile_m=tile_m,
                                    cdt=cdt, out_dtype=cdt)
            sts = sts.reshape(-1, 2, Cout)
        else:
            ys, sts = shortcut_strided_conv1x1_stats(x, ws, stride=stride,
                                                     cdt=cdt, out_dtype=cdt)
            sts = sts.reshape(-1, 2, Cout)
        scs, shs = _combine_bn(sts, m1, p["gs"], p["bs"])
        out = finalize_add_relu(y3, ys.reshape(m1, Cout), sc3, sh3, scs, shs,
                                tile_m=tile_m)
    else:
        out = finalize_add_relu(y3, x.reshape(m1, Cout), sc3, sh3,
                                tile_m=tile_m)

    # TODO(synk): at toy channel counts (C=4/16) lanes are mostly padding; at
    # real ResNet channel counts (64-2048) the lane axis is naturally dense.
    out = out.reshape(N, Ho, Wo, Cout)
    if data_format == "NCHW":
        out = jnp.transpose(out, (0, 3, 1, 2))           # -> NCHW
    return out


# ---------------------------------------------------------------------------
# Plain-JAX reference (same bf16-matmul-input / f32-accumulate convention,
# f32 intermediate storage)
# ---------------------------------------------------------------------------
def bottleneck_reference(x_nchw, p, *, stride, cdt=jnp.bfloat16):
    x = jnp.transpose(x_nchw, (0, 2, 3, 1)).astype(jnp.float32)
    Cin = x.shape[-1]
    Cout = p["w3"].shape[1]

    def bn(y, g, b, eps=_EPS):
        mu = y.mean(axis=(0, 1, 2), keepdims=True)
        var = ((y - mu) ** 2).mean(axis=(0, 1, 2), keepdims=True)
        return ((y - mu) / jnp.sqrt(var + eps) * g.reshape(1, 1, 1, -1)
                + b.reshape(1, 1, 1, -1))

    def conv1x1(a, w):
        n_, h_, w_, c_ = a.shape
        y = jnp.dot(a.reshape(-1, c_).astype(cdt), w.astype(cdt),
                    preferred_element_type=jnp.float32)
        return y.reshape(n_, h_, w_, -1)

    out = jax.nn.relu(bn(conv1x1(x, p["w1"]), p["g1"], p["b1"]))
    out = lax.conv_general_dilated(out.astype(cdt), p["w2"].astype(cdt),
                                   (stride, stride), [(1, 1), (1, 1)],
                                   dimension_numbers=("NHWC", "HWIO", "NHWC"),
                                   preferred_element_type=jnp.float32)
    out = jax.nn.relu(bn(out, p["g2"], p["b2"]))
    out = bn(conv1x1(out, p["w3"]), p["g3"], p["b3"])
    sc = x if stride == 1 else x[:, ::stride, ::stride, :]
    if stride != 1 or Cin != Cout:
        sc = bn(conv1x1(sc, p["ws"]), p["gs"], p["bs"])
    return jnp.transpose(jax.nn.relu(out + sc), (0, 3, 1, 2))


# ---------------------------------------------------------------------------
# Deterministic parameter init
# ---------------------------------------------------------------------------
def init_params(key, in_planes, planes, stride, expansion=4):
    out_planes = expansion * planes
    ks = jax.random.split(key, 16)
    p = {
        "w1": 0.3 * jax.random.normal(ks[0], (in_planes, planes), jnp.float32),
        "g1": 1.0 + 0.1 * jax.random.normal(ks[1], (1, planes), jnp.float32),
        "b1": 0.1 * jax.random.normal(ks[2], (1, planes), jnp.float32),
        "w2": 0.3 * jax.random.normal(ks[3], (3, 3, planes, planes), jnp.float32),
        "g2": 1.0 + 0.1 * jax.random.normal(ks[4], (1, planes), jnp.float32),
        "b2": 0.1 * jax.random.normal(ks[5], (1, planes), jnp.float32),
        "w3": 0.3 * jax.random.normal(ks[6], (planes, out_planes), jnp.float32),
        "g3": 1.0 + 0.1 * jax.random.normal(ks[7], (1, out_planes), jnp.float32),
        "b3": 0.1 * jax.random.normal(ks[8], (1, out_planes), jnp.float32),
    }
    if stride != 1 or in_planes != out_planes:
        p["ws"] = 0.3 * jax.random.normal(ks[9], (in_planes, out_planes), jnp.float32)
        p["gs"] = 1.0 + 0.1 * jax.random.normal(ks[10], (1, out_planes), jnp.float32)
        p["bs"] = 0.1 * jax.random.normal(ks[11], (1, out_planes), jnp.float32)
    return p


if __name__ == "__main__":
    in_planes, planes, stride = 4, 4, 1      # shortcut conv active (4 != 16)
    key = jax.random.PRNGKey(0)
    kx, kp, ku = jax.random.split(key, 3)
    x = jax.random.normal(kx, (2, in_planes, 16, 16), jnp.float32)   # NCHW
    params = init_params(kp, in_planes, planes, stride)

    # tile_m=128 -> 4-step row grids; row_tile=8 -> conv2 grid (2, 2); exercises
    # the cross-tile BN partial-stat combination and multi-step pipelines.
    fwd = jax.jit(functools.partial(bottleneck_forward, stride=stride,
                                    tile_m=128, row_tile=8))
    out = jax.block_until_ready(fwd(x, params))
    ref = jax.block_until_ready(bottleneck_reference(x, params, stride=stride))

    assert out.shape == (2, 4 * planes, 16, 16), out.shape
    # Tolerance accounts for bf16 storage of intermediate activations (the
    # reference keeps f32 intermediates).
    if not jnp.allclose(out, ref, rtol=2e-2, atol=5e-2):
        raise AssertionError(
            f"bottleneck mismatch: max abs err {float(jnp.max(jnp.abs(out - ref)))}")

    # Unit check of the cdiv + masked-tail tiling path in the 1x1 conv kernel
    # (m=200 rows, cap 96 -> 3 tiles with an 8-valid-row tail).
    ku1, ku2 = jax.random.split(ku)
    xu = jax.random.normal(ku1, (200, 8), jnp.float32).astype(jnp.bfloat16)
    wu = (0.3 * jax.random.normal(ku2, (8, 32), jnp.float32)).astype(jnp.bfloat16)
    yu, stu = jax.block_until_ready(
        jax.jit(functools.partial(conv1x1_stats, tile_m=96,
                                  cdt=jnp.bfloat16))(xu, wu))
    yr = jnp.dot(xu, wu, preferred_element_type=jnp.float32)
    if not jnp.allclose(yu.astype(jnp.float32), yr, rtol=2e-2, atol=2e-2):
        raise AssertionError("masked-tail conv1x1 output mismatch")
    sr = jnp.stack([jnp.sum(yr, axis=0), jnp.sum(yr * yr, axis=0)])
    if not jnp.allclose(jnp.sum(stu, axis=0), sr, rtol=1e-2, atol=1e-2):
        raise AssertionError("masked-tail conv1x1 stats mismatch")

    print("KERNEL_OK")
</pallas_src>

<mosaic_0001>
module attributes {stable_mosaic.version = 11 : i64} {
  func.func @_mm_stats_kernel(%arg0: i32, %arg1: memref<128x4xbf16, #tpu.memory_space<vmem>>, %arg2: memref<1x4xf32, #tpu.memory_space<vmem>>, %arg3: memref<1x4xf32, #tpu.memory_space<vmem>>, %arg4: memref<4x16xbf16, #tpu.memory_space<vmem>>, %arg5: memref<128x16xbf16, #tpu.memory_space<vmem>>, %arg6: memref<1x2x16xf32, #tpu.memory_space<vmem>>) attributes {dimension_semantics = [#tpu.dimension_semantics<parallel>], iteration_bounds = array<i64: 4>, scalar_prefetch = 0 : i64, scratch_operands = 0 : i64, tpu.core_type = #tpu.core_type<tc>, window_params = [{transform_indices = @transform_0, window_bounds = array<i64: 128, 4>}, {pipeline_mode = #tpu.pipeline_mode<synchronous>, transform_indices = @transform_1, window_bounds = array<i64: 1, 4>}, {pipeline_mode = #tpu.pipeline_mode<synchronous>, transform_indices = @transform_2, window_bounds = array<i64: 1, 4>}, {pipeline_mode = #tpu.pipeline_mode<synchronous>, transform_indices = @transform_3, window_bounds = array<i64: 4, 16>}, {transform_indices = @transform_4, window_bounds = array<i64: 128, 16>}, {transform_indices = @transform_5, window_bounds = array<i64: 1, 2, 16>}]} {
    %c0 = arith.constant 0 : index
    %c0_0 = arith.constant 0 : index
    %0 = vector.load %arg1[%c0, %c0_0] : memref<128x4xbf16, #tpu.memory_space<vmem>>, vector<128x4xbf16>
    %c0_1 = arith.constant 0 : index
    %c0_2 = arith.constant 0 : index
    %1 = vector.load %arg4[%c0_1, %c0_2] : memref<4x16xbf16, #tpu.memory_space<vmem>>, vector<4x16xbf16>
    %cst = arith.constant dense<0.000000e+00> : vector<128x16xf32>
    %2 = tpu.matmul %0, %1, %cst {dimension_numbers = #tpu.dot_dimension_numbers<[1], [0], [0], [1], [0, 0, 1, 1], [], []>} : vector<128x4xbf16>, vector<4x16xbf16>, vector<128x16xf32> -> vector<128x16xf32>
    %cst_3 = arith.constant dense<0.000000e+00> : vector<16xf32>
    %3 = vector.multi_reduction <add>, %2, %cst_3 [0] : vector<128x16xf32> to vector<16xf32>
    %4 = vector.shape_cast %3 : vector<16xf32> to vector<1x16xf32>
    %5 = arith.mulf %2, %2 : vector<128x16xf32>
    %cst_4 = arith.constant dense<0.000000e+00> : vector<16xf32>
    %6 = vector.multi_reduction <add>, %5, %cst_4 [0] : vector<128x16xf32> to vector<16xf32>
    %7 = vector.shape_cast %6 : vector<16xf32> to vector<1x16xf32>
    %8 = tpu.concatenate %4, %7 in 0 : vector<1x16xf32>, vector<1x16xf32> -> vector<2x16xf32>
    %c0_5 = arith.constant 0 : index
    %c0_6 = arith.constant 0 : index
    %c0_7 = arith.constant 0 : index
    %9 = vector.load %arg6[%c0_5, %c0_6, %c0_7] : memref<1x2x16xf32, #tpu.memory_space<vmem>>, vector<1x2x16xf32>
    %10 = vector.shape_cast %9 : vector<1x2x16xf32> to vector<2x16xf32>
    %11 = vector.shape_cast %8 : vector<2x16xf32> to vector<1x2x16xf32>
    tpu.vector_store %arg6[%c0_5, %c0_6, %c0_7], %11 {strides = array<i32>} : memref<1x2x16xf32, #tpu.memory_space<vmem>>, vector<1x2x16xf32>,
    %12 = arith.truncf %2 : vector<128x16xf32> to vector<128x16xbf16>
    %c0_8 = arith.constant 0 : index
    %c0_9 = arith.constant 0 : index
    %13 = vector.load %arg5[%c0_8, %c0_9] : memref<128x16xbf16, #tpu.memory_space<vmem>>, vector<128x16xbf16>
    tpu.vector_store %arg5[%c0_8, %c0_9], %12 {strides = array<i32>} : memref<128x16xbf16, #tpu.memory_space<vmem>>, vector<128x16xbf16>,
    return
  }
  func.func @transform_0(%arg0: i32) -> (i32, i32) {
    %c0_i32 = arith.constant 0 : i32
    %c0_i32_0 = arith.constant 0 : i32
    return %arg0, %c0_i32 : i32, i32
  }
  func.func @transform_1(%arg0: i32) -> (i32, i32) {
    %c0_i32 = arith.constant 0 : i32
    %c0_i32_0 = arith.constant 0 : i32
    %c0_i32_1 = arith.constant 0 : i32
    return %c0_i32, %c0_i32_0 : i32, i32
  }
  func.func @transform_2(%arg0: i32) -> (i32, i32) {
    %c0_i32 = arith.constant 0 : i32
    %c0_i32_0 = arith.constant 0 : i32
    %c0_i32_1 = arith.constant 0 : i32
    return %c0_i32, %c0_i32_0 : i32, i32
  }
  func.func @transform_3(%arg0: i32) -> (i32, i32) {
    %c0_i32 = arith.constant 0 : i32
    %c0_i32_0 = arith.constant 0 : i32
    %c0_i32_1 = arith.constant 0 : i32
    return %c0_i32, %c0_i32_0 : i32, i32
  }
  func.func @transform_4(%arg0: i32) -> (i32, i32) {
    %c0_i32 = arith.constant 0 : i32
    %c0_i32_0 = arith.constant 0 : i32
    return %arg0, %c0_i32 : i32, i32
  }
  func.func @transform_5(%arg0: i32) -> (i32, i32, i32) {
    %c0_i32 = arith.constant 0 : i32
    %c0_i32_0 = arith.constant 0 : i32
    %c0_i32_1 = arith.constant 0 : i32
    return %arg0, %c0_i32, %c0_i32_0 : i32, i32, i32
  }
}

module attributes {stable_mosaic.version = 11 : i64} {
  func.func @_mm_stats_kernel(%arg0: i32, %arg1: memref<128x4xbf16, #tpu.memory_space<vmem>>, %arg2: memref<1x4xf32, #tpu.memory_space<vmem>>, %arg3: memref<1x4xf32, #tpu.memory_space<vmem>>, %arg4: memref<4x4xbf16, #tpu.memory_space<vmem>>, %arg5: memref<128x4xbf16, #tpu.memory_space<vmem>>, %arg6: memref<1x2x4xf32, #tpu.memory_space<vmem>>) attributes {dimension_semantics = [#tpu.dimension_semantics<parallel>], iteration_bounds = array<i64: 4>, scalar_prefetch = 0 : i64, scratch_operands = 0 : i64, tpu.core_type = #tpu.core_type<tc>, window_params = [{transform_indices = @transform_0, window_bounds = array<i64: 128, 4>}, {pipeline_mode = #tpu.pipeline_mode<synchronous>, transform_indices = @transform_1, window_bounds = array<i64: 1, 4>}, {pipeline_mode = #tpu.pipeline_mode<synchronous>, transform_indices = @transform_2, window_bounds = array<i64: 1, 4>}, {pipeline_mode = #tpu.pipeline_mode<synchronous>, transform_indices = @transform_3, window_bounds = array<i64: 4, 4>}, {transform_indices = @transform_4, window_bounds = array<i64: 128, 4>}, {transform_indices = @transform_5, window_bounds = array<i64: 1, 2, 4>}]} {
    %c0 = arith.constant 0 : index
    %c0_0 = arith.constant 0 : index
    %0 = vector.load %arg1[%c0, %c0_0] : memref<128x4xbf16, #tpu.memory_space<vmem>>, vector<128x4xbf16>
    %c0_1 = arith.constant 0 : index
    %c0_2 = arith.constant 0 : index
    %1 = vector.load %arg4[%c0_1, %c0_2] : memref<4x4xbf16, #tpu.memory_space<vmem>>, vector<4x4xbf16>
    %cst = arith.constant dense<0.000000e+00> : vector<128x4xf32>
    %2 = tpu.matmul %0, %1, %cst {dimension_numbers = #tpu.dot_dimension_numbers<[1], [0], [0], [1], [0, 0, 1, 1], [], []>} : vector<128x4xbf16>, vector<4x4xbf16>, vector<128x4xf32> -> vector<128x4xf32>
    %cst_3 = arith.constant dense<0.000000e+00> : vector<4xf32>
    %3 = vector.multi_reduction <add>, %2, %cst_3 [0] : vector<128x4xf32> to vector<4xf32>
    %4 = vector.shape_cast %3 : vector<4xf32> to vector<1x4xf32>
    %5 = arith.mulf %2, %2 : vector<128x4xf32>
    %cst_4 = arith.constant dense<0.000000e+00> : vector<4xf32>
    %6 = vector.multi_reduction <add>, %5, %cst_4 [0] : vector<128x4xf32> to vector<4xf32>
    %7 = vector.shape_cast %6 : vector<4xf32> to vector<1x4xf32>
    %8 = tpu.concatenate %4, %7 in 0 : vector<1x4xf32>, vector<1x4xf32> -> vector<2x4xf32>
    %c0_5 = arith.constant 0 : index
    %c0_6 = arith.constant 0 : index
    %c0_7 = arith.constant 0 : index
    %9 = vector.load %arg6[%c0_5, %c0_6, %c0_7] : memref<1x2x4xf32, #tpu.memory_space<vmem>>, vector<1x2x4xf32>
    %10 = vector.shape_cast %9 : vector<1x2x4xf32> to vector<2x4xf32>
    %11 = vector.shape_cast %8 : vector<2x4xf32> to vector<1x2x4xf32>
    tpu.vector_store %arg6[%c0_5, %c0_6, %c0_7], %11 {strides = array<i32>} : memref<1x2x4xf32, #tpu.memory_space<vmem>>, vector<1x2x4xf32>,
    %12 = arith.truncf %2 : vector<128x4xf32> to vector<128x4xbf16>
    %c0_8 = arith.constant 0 : index
    %c0_9 = arith.constant 0 : index
    %13 = vector.load %arg5[%c0_8, %c0_9] : memref<128x4xbf16, #tpu.memory_space<vmem>>, vector<128x4xbf16>
    tpu.vector_store %arg5[%c0_8, %c0_9], %12 {strides = array<i32>} : memref<128x4xbf16, #tpu.memory_space<vmem>>, vector<128x4xbf16>,
    return
  }
  func.func @transform_0(%arg0: i32) -> (i32, i32) {
    %c0_i32 = arith.constant 0 : i32
    %c0_i32_0 = arith.constant 0 : i32
    return %arg0, %c0_i32 : i32, i32
  }
  func.func @transform_1(%arg0: i32) -> (i32, i32) {
    %c0_i32 = arith.constant 0 : i32
    %c0_i32_0 = arith.constant 0 : i32
    %c0_i32_1 = arith.constant 0 : i32
    return %c0_i32, %c0_i32_0 : i32, i32
  }
  func.func @transform_2(%arg0: i32) -> (i32, i32) {
    %c0_i32 = arith.constant 0 : i32
    %c0_i32_0 = arith.constant 0 : i32
    %c0_i32_1 = arith.constant 0 : i32
    return %c0_i32, %c0_i32_0 : i32, i32
  }
  func.func @transform_3(%arg0: i32) -> (i32, i32) {
    %c0_i32 = arith.constant 0 : i32
    %c0_i32_0 = arith.constant 0 : i32
    %c0_i32_1 = arith.constant 0 : i32
    return %c0_i32, %c0_i32_0 : i32, i32
  }
  func.func @transform_4(%arg0: i32) -> (i32, i32) {
    %c0_i32 = arith.constant 0 : i32
    %c0_i32_0 = arith.constant 0 : i32
    return %arg0, %c0_i32 : i32, i32
  }
  func.func @transform_5(%arg0: i32) -> (i32, i32, i32) {
    %c0_i32 = arith.constant 0 : i32
    %c0_i32_0 = arith.constant 0 : i32
    %c0_i32_1 = arith.constant 0 : i32
    return %arg0, %c0_i32, %c0_i32_0 : i32, i32, i32
  }
}

module attributes {stable_mosaic.version = 11 : i64} {
  func.func @_conv3x3_stats_kernel(%arg0: i32, %arg1: i32, %arg2: memref<1x16x16x4xbf16, #tpu.memory_space<vmem>>, %arg3: memref<1x4xf32, #tpu.memory_space<vmem>>, %arg4: memref<1x4xf32, #tpu.memory_space<vmem>>, %arg5: memref<9x4x4xbf16, #tpu.memory_space<vmem>>, %arg6: memref<1x8x16x4xbf16, #tpu.memory_space<vmem>>, %arg7: memref<1x1x2x4xf32, #tpu.memory_space<vmem>>, %arg8: memref<18x18x4xbf16, #tpu.memory_space<vmem>>) attributes {dimension_semantics = [#tpu.dimension_semantics<parallel>, #tpu.dimension_semantics<arbitrary>], iteration_bounds = array<i64: 2, 2>, scalar_prefetch = 0 : i64, scratch_operands = 1 : i64, tpu.core_type = #tpu.core_type<tc>, window_params = [{transform_indices = @transform_0, window_bounds = array<i64: 1, 16, 16, 4>}, {pipeline_mode = #tpu.pipeline_mode<synchronous>, transform_indices = @transform_1, window_bounds = array<i64: 1, 4>}, {pipeline_mode = #tpu.pipeline_mode<synchronous>, transform_indices = @transform_2, window_bounds = array<i64: 1, 4>}, {pipeline_mode = #tpu.pipeline_mode<synchronous>, transform_indices = @transform_3, window_bounds = array<i64: 9, 4, 4>}, {transform_indices = @transform_4, window_bounds = array<i64: 1, 8, 16, 4>}, {transform_indices = @transform_5, window_bounds = array<i64: 1, 1, 2, 4>}]} {
    %c0_i32 = arith.constant 0 : i32
    %0 = arith.cmpi eq, %arg1, %c0_i32 : i32
    %1 = arith.extui %0 : i1 to i32
    %c0_i32_0 = arith.constant 0 : i32
    %2 = arith.cmpi ne, %1, %c0_i32_0 : i32
    scf.if %2 {
      %c0_29 = arith.constant 0 : index
      %c0_30 = arith.constant 0 : index
      %c0_31 = arith.constant 0 : index
      %c0_32 = arith.constant 0 : index
      %84 = vector.load %arg2[%c0_29, %c0_30, %c0_31, %c0_32] : memref<1x16x16x4xbf16, #tpu.memory_space<vmem>>, vector<1x16x16x4xbf16>
      %85 = vector.shape_cast %84 : vector<1x16x16x4xbf16> to vector<16x16x4xbf16>
      %86 = arith.extf %85 : vector<16x16x4xbf16> to vector<16x16x4xf32>
      %c0_33 = arith.constant 0 : index
      %c0_34 = arith.constant 0 : index
      %87 = vector.load %arg3[%c0_33, %c0_34] : memref<1x4xf32, #tpu.memory_space<vmem>>, vector<1x4xf32>
      %88 = vector.shape_cast %87 : vector<1x4xf32> to vector<1x1x4xf32>
      %89 = vector.broadcast %88 : vector<1x1x4xf32> to vector<16x16x4xf32>
      %90 = arith.mulf %86, %89 : vector<16x16x4xf32>
      %c0_35 = arith.constant 0 : index
      %c0_36 = arith.constant 0 : index
      %91 = vector.load %arg4[%c0_35, %c0_36] : memref<1x4xf32, #tpu.memory_space<vmem>>, vector<1x4xf32>
      %92 = vector.shape_cast %91 : vector<1x4xf32> to vector<1x1x4xf32>
      %93 = vector.broadcast %92 : vector<1x1x4xf32> to vector<16x16x4xf32>
      %94 = arith.addf %90, %93 : vector<16x16x4xf32>
      %cst_37 = arith.constant 0.000000e+00 : f32
      %95 = vector.broadcast %cst_37 : f32 to vector<16x16x4xf32>
      %96 = arith.maximumf %94, %95 : vector<16x16x4xf32>
      %97 = arith.truncf %96 : vector<16x16x4xf32> to vector<16x16x4xbf16>
      %cst_38 = arith.constant 0.000000e+00 : bf16
      %98 = vector.broadcast %cst_38 : bf16 to vector<1x18x4xbf16>
      %cst_39 = arith.constant 0.000000e+00 : bf16
      %99 = vector.broadcast %cst_39 : bf16 to vector<16x1x4xbf16>
      %c0_40 = arith.constant 0 : index
      %c0_41 = arith.constant 0 : index
      %c0_42 = arith.constant 0 : index
      %100 = vector.load %arg8[%c0_40, %c0_41, %c0_42] : memref<18x18x4xbf16, #tpu.memory_space<vmem>>, vector<1x18x4xbf16>
      tpu.vector_store %arg8[%c0_40, %c0_41, %c0_42], %98 {strides = array<i32>} : memref<18x18x4xbf16, #tpu.memory_space<vmem>>, vector<1x18x4xbf16>,
      %c17 = arith.constant 17 : index
      %c0_43 = arith.constant 0 : index
      %c0_44 = arith.constant 0 : index
      %101 = vector.load %arg8[%c17, %c0_43, %c0_44] : memref<18x18x4xbf16, #tpu.memory_space<vmem>>, vector<1x18x4xbf16>
      tpu.vector_store %arg8[%c17, %c0_43, %c0_44], %98 {strides = array<i32>} : memref<18x18x4xbf16, #tpu.memory_space<vmem>>, vector<1x18x4xbf16>,
      %102 = tpu.concatenate %99, %97, %99 in 1 : vector<16x1x4xbf16>, vector<16x16x4xbf16>, vector<16x1x4xbf16> -> vector<16x18x4xbf16>
      %c1 = arith.constant 1 : index
      %c0_45 = arith.constant 0 : index
      %c0_46 = arith.constant 0 : index
      %103 = vector.load %arg8[%c1, %c0_45, %c0_46] : memref<18x18x4xbf16, #tpu.memory_space<vmem>>, vector<16x18x4xbf16>
      tpu.vector_store %arg8[%c1, %c0_45, %c0_46], %102 {strides = array<i32>} : memref<18x18x4xbf16, #tpu.memory_space<vmem>>, vector<16x18x4xbf16>,
    } else {
    }
    %c0 = arith.constant 0 : index
    %c0_1 = arith.constant 0 : index
    %c0_2 = arith.constant 0 : index
    %3 = vector.load %arg5[%c0, %c0_1, %c0_2] : memref<9x4x4xbf16, #tpu.memory_space<vmem>>, vector<9x4x4xbf16>
    %c8_i32 = arith.constant 8 : i32
    %4 = arith.muli %arg1, %c8_i32 : i32
    %5 = tpu.assume_multiple %4, 8 : i32
    %cst = arith.constant 0.000000e+00 : f32
    %6 = vector.broadcast %cst : f32 to vector<128x4xf32>
    %c0_i32_3 = arith.constant 0 : i32
    %7 = arith.addi %5, %c0_i32_3 : i32
    %8 = arith.index_cast %7 : i32 to index
    %c0_4 = arith.constant 0 : index
    %c0_5 = arith.constant 0 : index
    %9 = vector.load %arg8[%8, %c0_4, %c0_5] : memref<18x18x4xbf16, #tpu.memory_space<vmem>>, vector<8x18x4xbf16>
    %10 = vector.extract_strided_slice %9 {offsets = [0, 0, 0], sizes = [8, 16, 4], strides = [1, 1, 1]} : vector<8x18x4xbf16> to vector<8x16x4xbf16>
    %11 = vector.shape_cast %10 : vector<8x16x4xbf16> to vector<128x4xbf16>
    %12 = vector.extract_strided_slice %3 {offsets = [0, 0, 0], sizes = [1, 4, 4], strides = [1, 1, 1]} : vector<9x4x4xbf16> to vector<1x4x4xbf16>
    %13 = vector.shape_cast %12 : vector<1x4x4xbf16> to vector<4x4xbf16>
    %cst_6 = arith.constant dense<0.000000e+00> : vector<128x4xf32>
    %14 = tpu.matmul %11, %13, %cst_6 {dimension_numbers = #tpu.dot_dimension_numbers<[1], [0], [0], [1], [0, 0, 1, 1], [], []>} : vector<128x4xbf16>, vector<4x4xbf16>, vector<128x4xf32> -> vector<128x4xf32>
    %15 = arith.addf %6, %14 : vector<128x4xf32>
    %16 = vector.extract_strided_slice %9 {offsets = [0, 1, 0], sizes = [8, 16, 4], strides = [1, 1, 1]} : vector<8x18x4xbf16> to vector<8x16x4xbf16>
    %17 = vector.shape_cast %16 : vector<8x16x4xbf16> to vector<128x4xbf16>
    %18 = vector.extract_strided_slice %3 {offsets = [1, 0, 0], sizes = [1, 4, 4], strides = [1, 1, 1]} : vector<9x4x4xbf16> to vector<1x4x4xbf16>
    %19 = vector.shape_cast %18 : vector<1x4x4xbf16> to vector<4x4xbf16>
    %cst_7 = arith.constant dense<0.000000e+00> : vector<128x4xf32>
    %20 = tpu.matmul %17, %19, %cst_7 {dimension_numbers = #tpu.dot_dimension_numbers<[1], [0], [0], [1], [0, 0, 1, 1], [], []>} : vector<128x4xbf16>, vector<4x4xbf16>, vector<128x4xf32> -> vector<128x4xf32>
    %21 = arith.addf %15, %20 : vector<128x4xf32>
    %22 = vector.extract_strided_slice %9 {offsets = [0, 2, 0], sizes = [8, 16, 4], strides = [1, 1, 1]} : vector<8x18x4xbf16> to vector<8x16x4xbf16>
    %23 = vector.shape_cast %22 : vector<8x16x4xbf16> to vector<128x4xbf16>
    %24 = vector.extract_strided_slice %3 {offsets = [2, 0, 0], sizes = [1, 4, 4], strides = [1, 1, 1]} : vector<9x4x4xbf16> to vector<1x4x4xbf16>
    %25 = vector.shape_cast %24 : vector<1x4x4xbf16> to vector<4x4xbf16>
    %cst_8 = arith.constant dense<0.000000e+00> : vector<128x4xf32>
    %26 = tpu.matmul %23, %25, %cst_8 {dimension_numbers = #tpu.dot_dimension_numbers<[1], [0], [0], [1], [0, 0, 1, 1], [], []>} : vector<128x4xbf16>, vector<4x4xbf16>, vector<128x4xf32> -> vector<128x4xf32>
    %27 = arith.addf %21, %26 : vector<128x4xf32>
    %c1_i32 = arith.constant 1 : i32
    %28 = arith.addi %5, %c1_i32 : i32
    %29 = arith.index_cast %28 : i32 to index
    %c0_9 = arith.constant 0 : index
    %c0_10 = arith.constant 0 : index
    %30 = vector.load %arg8[%29, %c0_9, %c0_10] : memref<18x18x4xbf16, #tpu.memory_space<vmem>>, vector<8x18x4xbf16>
    %31 = vector.extract_strided_slice %30 {offsets = [0, 0, 0], sizes = [8, 16, 4], strides = [1, 1, 1]} : vector<8x18x4xbf16> to vector<8x16x4xbf16>
    %32 = vector.shape_cast %31 : vector<8x16x4xbf16> to vector<128x4xbf16>
    %33 = vector.extract_strided_slice %3 {offsets = [3, 0, 0], sizes = [1, 4, 4], strides = [1, 1, 1]} : vector<9x4x4xbf16> to vector<1x4x4xbf16>
    %34 = vector.shape_cast %33 : vector<1x4x4xbf16> to vector<4x4xbf16>
    %cst_11 = arith.constant dense<0.000000e+00> : vector<128x4xf32>
    %35 = tpu.matmul %32, %34, %cst_11 {dimension_numbers = #tpu.dot_dimension_numbers<[1], [0], [0], [1], [0, 0, 1, 1], [], []>} : vector<128x4xbf16>, vector<4x4xbf16>, vector<128x4xf32> -> vector<128x4xf32>
    %36 = arith.addf %27, %35 : vector<128x4xf32>
    %37 = vector.extract_strided_slice %30 {offsets = [0, 1, 0], sizes = [8, 16, 4], strides = [1, 1, 1]} : vector<8x18x4xbf16> to vector<8x16x4xbf16>
    %38 = vector.shape_cast %37 : vector<8x16x4xbf16> to vector<128x4xbf16>
    %39 = vector.extract_strided_slice %3 {offsets = [4, 0, 0], sizes = [1, 4, 4], strides = [1, 1, 1]} : vector<9x4x4xbf16> to vector<1x4x4xbf16>
    %40 = vector.shape_cast %39 : vector<1x4x4xbf16> to vector<4x4xbf16>
    %cst_12 = arith.constant dense<0.000000e+00> : vector<128x4xf32>
    %41 = tpu.matmul %38, %40, %cst_12 {dimension_numbers = #tpu.dot_dimension_numbers<[1], [0], [0], [1], [0, 0, 1, 1], [], []>} : vector<128x4xbf16>, vector<4x4xbf16>, vector<128x4xf32> -> vector<128x4xf32>
    %42 = arith.addf %36, %41 : vector<128x4xf32>
    %43 = vector.extract_strided_slice %30 {offsets = [0, 2, 0], sizes = [8, 16, 4], strides = [1, 1, 1]} : vector<8x18x4xbf16> to vector<8x16x4xbf16>
    %44 = vector.shape_cast %43 : vector<8x16x4xbf16> to vector<128x4xbf16>
    %45 = vector.extract_strided_slice %3 {offsets = [5, 0, 0], sizes = [1, 4, 4], strides = [1, 1, 1]} : vector<9x4x4xbf16> to vector<1x4x4xbf16>
    %46 = vector.shape_cast %45 : vector<1x4x4xbf16> to vector<4x4xbf16>
    %cst_13 = arith.constant dense<0.000000e+00> : vector<128x4xf32>
    %47 = tpu.matmul %44, %46, %cst_13 {dimension_numbers = #tpu.dot_dimension_numbers<[1], [0], [0], [1], [0, 0, 1, 1], [], []>} : vector<128x4xbf16>, vector<4x4xbf16>, vector<128x4xf32> -> vector<128x4xf32>
    %48 = arith.addf %42, %47 : vector<128x4xf32>
    %c2_i32 = arith.constant 2 : i32
    %49 = arith.addi %5, %c2_i32 : i32
    %50 = arith.index_cast %49 : i32 to index
    %c0_14 = arith.constant 0 : index
    %c0_15 = arith.constant 0 : index
    %51 = vector.load %arg8[%50, %c0_14, %c0_15] : memref<18x18x4xbf16, #tpu.memory_space<vmem>>, vector<8x18x4xbf16>
    %52 = vector.extract_strided_slice %51 {offsets = [0, 0, 0], sizes = [8, 16, 4], strides = [1, 1, 1]} : vector<8x18x4xbf16> to vector<8x16x4xbf16>
    %53 = vector.shape_cast %52 : vector<8x16x4xbf16> to vector<128x4xbf16>
    %54 = vector.extract_strided_slice %3 {offsets = [6, 0, 0], sizes = [1, 4, 4], strides = [1, 1, 1]} : vector<9x4x4xbf16> to vector<1x4x4xbf16>
    %55 = vector.shape_cast %54 : vector<1x4x4xbf16> to vector<4x4xbf16>
    %cst_16 = arith.constant dense<0.000000e+00> : vector<128x4xf32>
    %56 = tpu.matmul %53, %55, %cst_16 {dimension_numbers = #tpu.dot_dimension_numbers<[1], [0], [0], [1], [0, 0, 1, 1], [], []>} : vector<128x4xbf16>, vector<4x4xbf16>, vector<128x4xf32> -> vector<128x4xf32>
    %57 = arith.addf %48, %56 : vector<128x4xf32>
    %58 = vector.extract_strided_slice %51 {offsets = [0, 1, 0], sizes = [8, 16, 4], strides = [1, 1, 1]} : vector<8x18x4xbf16> to vector<8x16x4xbf16>
    %59 = vector.shape_cast %58 : vector<8x16x4xbf16> to vector<128x4xbf16>
    %60 = vector.extract_strided_slice %3 {offsets = [7, 0, 0], sizes = [1, 4, 4], strides = [1, 1, 1]} : vector<9x4x4xbf16> to vector<1x4x4xbf16>
    %61 = vector.shape_cast %60 : vector<1x4x4xbf16> to vector<4x4xbf16>
    %cst_17 = arith.constant dense<0.000000e+00> : vector<128x4xf32>
    %62 = tpu.matmul %59, %61, %cst_17 {dimension_numbers = #tpu.dot_dimension_numbers<[1], [0], [0], [1], [0, 0, 1, 1], [], []>} : vector<128x4xbf16>, vector<4x4xbf16>, vector<128x4xf32> -> vector<128x4xf32>
    %63 = arith.addf %57, %62 : vector<128x4xf32>
    %64 = vector.extract_strided_slice %51 {offsets = [0, 2, 0], sizes = [8, 16, 4], strides = [1, 1, 1]} : vector<8x18x4xbf16> to vector<8x16x4xbf16>
    %65 = vector.shape_cast %64 : vector<8x16x4xbf16> to vector<128x4xbf16>
    %66 = vector.extract_strided_slice %3 {offsets = [8, 0, 0], sizes = [1, 4, 4], strides = [1, 1, 1]} : vector<9x4x4xbf16> to vector<1x4x4xbf16>
    %67 = vector.shape_cast %66 : vector<1x4x4xbf16> to vector<4x4xbf16>
    %cst_18 = arith.constant dense<0.000000e+00> : vector<128x4xf32>
    %68 = tpu.matmul %65, %67, %cst_18 {dimension_numbers = #tpu.dot_dimension_numbers<[1], [0], [0], [1], [0, 0, 1, 1], [], []>} : vector<128x4xbf16>, vector<4x4xbf16>, vector<128x4xf32> -> vector<128x4xf32>
    %69 = arith.addf %63, %68 : vector<128x4xf32>
    %70 = vector.shape_cast %69 : vector<128x4xf32> to vector<8x16x4xf32>
    %71 = arith.truncf %70 : vector<8x16x4xf32> to vector<8x16x4xbf16>
    %c0_19 = arith.constant 0 : index
    %c0_20 = arith.constant 0 : index
    %c0_21 = arith.constant 0 : index
    %c0_22 = arith.constant 0 : index
    %72 = vector.load %arg6[%c0_19, %c0_20, %c0_21, %c0_22] : memref<1x8x16x4xbf16, #tpu.memory_space<vmem>>, vector<1x8x16x4xbf16>
    %73 = vector.shape_cast %72 : vector<1x8x16x4xbf16> to vector<8x16x4xbf16>
    %74 = vector.shape_cast %71 : vector<8x16x4xbf16> to vector<1x8x16x4xbf16>
    tpu.vector_store %arg6[%c0_19, %c0_20, %c0_21, %c0_22], %74 {strides = array<i32>} : memref<1x8x16x4xbf16, #tpu.memory_space<vmem>>, vector<1x8x16x4xbf16>,
    %cst_23 = arith.constant dense<0.000000e+00> : vector<4xf32>
    %75 = vector.multi_reduction <add>, %69, %cst_23 [0] : vector<128x4xf32> to vector<4xf32>
    %76 = vector.shape_cast %75 : vector<4xf32> to vector<1x4xf32>
    %77 = arith.mulf %69, %69 : vector<128x4xf32>
    %cst_24 = arith.constant dense<0.000000e+00> : vector<4xf32>
    %78 = vector.multi_reduction <add>, %77, %cst_24 [0] : vector<128x4xf32> to vector<4xf32>
    %79 = vector.shape_cast %78 : vector<4xf32> to vector<1x4xf32>
    %80 = tpu.concatenate %76, %79 in 0 : vector<1x4xf32>, vector<1x4xf32> -> vector<2x4xf32>
    %c0_25 = arith.constant 0 : index
    %c0_26 = arith.constant 0 : index
    %c0_27 = arith.constant 0 : index
    %c0_28 = arith.constant 0 : index
    %81 = vector.load %arg7[%c0_25, %c0_26, %c0_27, %c0_28] : memref<1x1x2x4xf32, #tpu.memory_space<vmem>>, vector<1x1x2x4xf32>
    %82 = vector.shape_cast %81 : vector<1x1x2x4xf32> to vector<2x4xf32>
    %83 = vector.shape_cast %80 : vector<2x4xf32> to vector<1x1x2x4xf32>
    tpu.vector_store %arg7[%c0_25, %c0_26, %c0_27, %c0_28], %83 {strides = array<i32>} : memref<1x1x2x4xf32, #tpu.memory_space<vmem>>, vector<1x1x2x4xf32>,
    return
  }
  func.func @transform_0(%arg0: i32, %arg1: i32) -> (i32, i32, i32, i32) {
    %c0_i32 = arith.constant 0 : i32
    %c0_i32_0 = arith.constant 0 : i32
    %c0_i32_1 = arith.constant 0 : i32
    %c0_i32_2 = arith.constant 0 : i32
    return %arg0, %c0_i32, %c0_i32_0, %c0_i32_1 : i32, i32, i32, i32
  }
  func.func @transform_1(%arg0: i32, %arg1: i32) -> (i32, i32) {
    %c0_i32 = arith.constant 0 : i32
    %c0_i32_0 = arith.constant 0 : i32
    %c0_i32_1 = arith.constant 0 : i32
    return %c0_i32, %c0_i32_0 : i32, i32
  }
  func.func @transform_2(%arg0: i32, %arg1: i32) -> (i32, i32) {
    %c0_i32 = arith.constant 0 : i32
    %c0_i32_0 = arith.constant 0 : i32
    %c0_i32_1 = arith.constant 0 : i32
    return %c0_i32, %c0_i32_0 : i32, i32
  }
  func.func @transform_3(%arg0: i32, %arg1: i32) -> (i32, i32, i32) {
    %c0_i32 = arith.constant 0 : i32
    %c0_i32_0 = arith.constant 0 : i32
    %c0_i32_1 = arith.constant 0 : i32
    %c0_i32_2 = arith.constant 0 : i32
    return %c0_i32, %c0_i32_0, %c0_i32_1 : i32, i32, i32
  }
  func.func @transform_4(%arg0: i32, %arg1: i32) -> (i32, i32, i32, i32) {
    %c0_i32 = arith.constant 0 : i32
    %c0_i32_0 = arith.constant 0 : i32
    %c0_i32_1 = arith.constant 0 : i32
    return %arg0, %arg1, %c0_i32, %c0_i32_0 : i32, i32, i32, i32
  }
  func.func @transform_5(%arg0: i32, %arg1: i32) -> (i32, i32, i32, i32) {
    %c0_i32 = arith.constant 0 : i32
    %c0_i32_0 = arith.constant 0 : i32
    %c0_i32_1 = arith.constant 0 : i32
    return %arg0, %arg1, %c0_i32, %c0_i32_0 : i32, i32, i32, i32
  }
}

module attributes {stable_mosaic.version = 11 : i64} {
  func.func @_mm_stats_kernel(%arg0: i32, %arg1: memref<128x4xbf16, #tpu.memory_space<vmem>>, %arg2: memref<1x4xf32, #tpu.memory_space<vmem>>, %arg3: memref<1x4xf32, #tpu.memory_space<vmem>>, %arg4: memref<4x16xbf16, #tpu.memory_space<vmem>>, %arg5: memref<128x16xbf16, #tpu.memory_space<vmem>>, %arg6: memref<1x2x16xf32, #tpu.memory_space<vmem>>) attributes {dimension_semantics = [#tpu.dimension_semantics<parallel>], iteration_bounds = array<i64: 4>, scalar_prefetch = 0 : i64, scratch_operands = 0 : i64, tpu.core_type = #tpu.core_type<tc>, window_params = [{transform_indices = @transform_0, window_bounds = array<i64: 128, 4>}, {pipeline_mode = #tpu.pipeline_mode<synchronous>, transform_indices = @transform_1, window_bounds = array<i64: 1, 4>}, {pipeline_mode = #tpu.pipeline_mode<synchronous>, transform_indices = @transform_2, window_bounds = array<i64: 1, 4>}, {pipeline_mode = #tpu.pipeline_mode<synchronous>, transform_indices = @transform_3, window_bounds = array<i64: 4, 16>}, {transform_indices = @transform_4, window_bounds = array<i64: 128, 16>}, {transform_indices = @transform_5, window_bounds = array<i64: 1, 2, 16>}]} {
    %c0 = arith.constant 0 : index
    %c0_0 = arith.constant 0 : index
    %0 = vector.load %arg1[%c0, %c0_0] : memref<128x4xbf16, #tpu.memory_space<vmem>>, vector<128x4xbf16>
    %1 = arith.extf %0 : vector<128x4xbf16> to vector<128x4xf32>
    %c0_1 = arith.constant 0 : index
    %c0_2 = arith.constant 0 : index
    %2 = vector.load %arg2[%c0_1, %c0_2] : memref<1x4xf32, #tpu.memory_space<vmem>>, vector<1x4xf32>
    %3 = vector.broadcast %2 : vector<1x4xf32> to vector<128x4xf32>
    %4 = arith.mulf %1, %3 : vector<128x4xf32>
    %c0_3 = arith.constant 0 : index
    %c0_4 = arith.constant 0 : index
    %5 = vector.load %arg3[%c0_3, %c0_4] : memref<1x4xf32, #tpu.memory_space<vmem>>, vector<1x4xf32>
    %6 = vector.broadcast %5 : vector<1x4xf32> to vector<128x4xf32>
    %7 = arith.addf %4, %6 : vector<128x4xf32>
    %cst = arith.constant 0.000000e+00 : f32
    %8 = vector.broadcast %cst : f32 to vector<128x4xf32>
    %9 = arith.maximumf %7, %8 : vector<128x4xf32>
    %10 = arith.truncf %9 : vector<128x4xf32> to vector<128x4xbf16>
    %c0_5 = arith.constant 0 : index
    %c0_6 = arith.constant 0 : index
    %11 = vector.load %arg4[%c0_5, %c0_6] : memref<4x16xbf16, #tpu.memory_space<vmem>>, vector<4x16xbf16>
    %cst_7 = arith.constant dense<0.000000e+00> : vector<128x16xf32>
    %12 = tpu.matmul %10, %11, %cst_7 {dimension_numbers = #tpu.dot_dimension_numbers<[1], [0], [0], [1], [0, 0, 1, 1], [], []>} : vector<128x4xbf16>, vector<4x16xbf16>, vector<128x16xf32> -> vector<128x16xf32>
    %cst_8 = arith.constant dense<0.000000e+00> : vector<16xf32>
    %13 = vector.multi_reduction <add>, %12, %cst_8 [0] : vector<128x16xf32> to vector<16xf32>
    %14 = vector.shape_cast %13 : vector<16xf32> to vector<1x16xf32>
    %15 = arith.mulf %12, %12 : vector<128x16xf32>
    %cst_9 = arith.constant dense<0.000000e+00> : vector<16xf32>
    %16 = vector.multi_reduction <add>, %15, %cst_9 [0] : vector<128x16xf32> to vector<16xf32>
    %17 = vector.shape_cast %16 : vector<16xf32> to vector<1x16xf32>
    %18 = tpu.concatenate %14, %17 in 0 : vector<1x16xf32>, vector<1x16xf32> -> vector<2x16xf32>
    %c0_10 = arith.constant 0 : index
    %c0_11 = arith.constant 0 : index
    %c0_12 = arith.constant 0 : index
    %19 = vector.load %arg6[%c0_10, %c0_11, %c0_12] : memref<1x2x16xf32, #tpu.memory_space<vmem>>, vector<1x2x16xf32>
    %20 = vector.shape_cast %19 : vector<1x2x16xf32> to vector<2x16xf32>
    %21 = vector.shape_cast %18 : vector<2x16xf32> to vector<1x2x16xf32>
    tpu.vector_store %arg6[%c0_10, %c0_11, %c0_12], %21 {strides = array<i32>} : memref<1x2x16xf32, #tpu.memory_space<vmem>>, vector<1x2x16xf32>,
    %22 = arith.truncf %12 : vector<128x16xf32> to vector<128x16xbf16>
    %c0_13 = arith.constant 0 : index
    %c0_14 = arith.constant 0 : index
    %23 = vector.load %arg5[%c0_13, %c0_14] : memref<128x16xbf16, #tpu.memory_space<vmem>>, vector<128x16xbf16>
    tpu.vector_store %arg5[%c0_13, %c0_14], %22 {strides = array<i32>} : memref<128x16xbf16, #tpu.memory_space<vmem>>, vector<128x16xbf16>,
    return
  }
  func.func @transform_0(%arg0: i32) -> (i32, i32) {
    %c0_i32 = arith.constant 0 : i32
    %c0_i32_0 = arith.constant 0 : i32
    return %arg0, %c0_i32 : i32, i32
  }
  func.func @transform_1(%arg0: i32) -> (i32, i32) {
    %c0_i32 = arith.constant 0 : i32
    %c0_i32_0 = arith.constant 0 : i32
    %c0_i32_1 = arith.constant 0 : i32
    return %c0_i32, %c0_i32_0 : i32, i32
  }
  func.func @transform_2(%arg0: i32) -> (i32, i32) {
    %c0_i32 = arith.constant 0 : i32
    %c0_i32_0 = arith.constant 0 : i32
    %c0_i32_1 = arith.constant 0 : i32
    return %c0_i32, %c0_i32_0 : i32, i32
  }
  func.func @transform_3(%arg0: i32) -> (i32, i32) {
    %c0_i32 = arith.constant 0 : i32
    %c0_i32_0 = arith.constant 0 : i32
    %c0_i32_1 = arith.constant 0 : i32
    return %c0_i32, %c0_i32_0 : i32, i32
  }
  func.func @transform_4(%arg0: i32) -> (i32, i32) {
    %c0_i32 = arith.constant 0 : i32
    %c0_i32_0 = arith.constant 0 : i32
    return %arg0, %c0_i32 : i32, i32
  }
  func.func @transform_5(%arg0: i32) -> (i32, i32, i32) {
    %c0_i32 = arith.constant 0 : i32
    %c0_i32_0 = arith.constant 0 : i32
    %c0_i32_1 = arith.constant 0 : i32
    return %arg0, %c0_i32, %c0_i32_0 : i32, i32, i32
  }
}

module attributes {stable_mosaic.version = 11 : i64} {
  func.func @_finalize_kernel(%arg0: i32, %arg1: memref<128x16xbf16, #tpu.memory_space<vmem>>, %arg2: memref<128x16xbf16, #tpu.memory_space<vmem>>, %arg3: memref<1x16xf32, #tpu.memory_space<vmem>>, %arg4: memref<1x16xf32, #tpu.memory_space<vmem>>, %arg5: memref<1x16xf32, #tpu.memory_space<vmem>>, %arg6: memref<1x16xf32, #tpu.memory_space<vmem>>, %arg7: memref<128x16xf32, #tpu.memory_space<vmem>>) attributes {dimension_semantics = [#tpu.dimension_semantics<parallel>], iteration_bounds = array<i64: 4>, scalar_prefetch = 0 : i64, scratch_operands = 0 : i64, tpu.core_type = #tpu.core_type<tc>, window_params = [{transform_indices = @transform_0, window_bounds = array<i64: 128, 16>}, {transform_indices = @transform_1, window_bounds = array<i64: 128, 16>}, {pipeline_mode = #tpu.pipeline_mode<synchronous>, transform_indices = @transform_2, window_bounds = array<i64: 1, 16>}, {pipeline_mode = #tpu.pipeline_mode<synchronous>, transform_indices = @transform_3, window_bounds = array<i64: 1, 16>}, {pipeline_mode = #tpu.pipeline_mode<synchronous>, transform_indices = @transform_4, window_bounds = array<i64: 1, 16>}, {pipeline_mode = #tpu.pipeline_mode<synchronous>, transform_indices = @transform_5, window_bounds = array<i64: 1, 16>}, {transform_indices = @transform_6, window_bounds = array<i64: 128, 16>}]} {
    %c0 = arith.constant 0 : index
    %c0_0 = arith.constant 0 : index
    %0 = vector.load %arg1[%c0, %c0_0] : memref<128x16xbf16, #tpu.memory_space<vmem>>, vector<128x16xbf16>
    %1 = arith.extf %0 : vector<128x16xbf16> to vector<128x16xf32>
    %c0_1 = arith.constant 0 : index
    %c0_2 = arith.constant 0 : index
    %2 = vector.load %arg3[%c0_1, %c0_2] : memref<1x16xf32, #tpu.memory_space<vmem>>, vector<1x16xf32>
    %3 = vector.broadcast %2 : vector<1x16xf32> to vector<128x16xf32>
    %4 = arith.mulf %1, %3 : vector<128x16xf32>
    %c0_3 = arith.constant 0 : index
    %c0_4 = arith.constant 0 : index
    %5 = vector.load %arg4[%c0_3, %c0_4] : memref<1x16xf32, #tpu.memory_space<vmem>>, vector<1x16xf32>
    %6 = vector.broadcast %5 : vector<1x16xf32> to vector<128x16xf32>
    %7 = arith.addf %4, %6 : vector<128x16xf32>
    %c0_5 = arith.constant 0 : index
    %c0_6 = arith.constant 0 : index
    %8 = vector.load %arg2[%c0_5, %c0_6] : memref<128x16xbf16, #tpu.memory_space<vmem>>, vector<128x16xbf16>
    %9 = arith.extf %8 : vector<128x16xbf16> to vector<128x16xf32>
    %c0_7 = arith.constant 0 : index
    %c0_8 = arith.constant 0 : index
    %10 = vector.load %arg5[%c0_7, %c0_8] : memref<1x16xf32, #tpu.memory_space<vmem>>, vector<1x16xf32>
    %11 = vector.broadcast %10 : vector<1x16xf32> to vector<128x16xf32>
    %12 = arith.mulf %9, %11 : vector<128x16xf32>
    %c0_9 = arith.constant 0 : index
    %c0_10 = arith.constant 0 : index
    %13 = vector.load %arg6[%c0_9, %c0_10] : memref<1x16xf32, #tpu.memory_space<vmem>>, vector<1x16xf32>
    %14 = vector.broadcast %13 : vector<1x16xf32> to vector<128x16xf32>
    %15 = arith.addf %12, %14 : vector<128x16xf32>
    %16 = arith.addf %7, %15 : vector<128x16xf32>
    %cst = arith.constant 0.000000e+00 : f32
    %17 = vector.broadcast %cst : f32 to vector<128x16xf32>
    %18 = arith.maximumf %16, %17 : vector<128x16xf32>
    %c0_11 = arith.constant 0 : index
    %c0_12 = arith.constant 0 : index
    %19 = vector.load %arg7[%c0_11, %c0_12] : memref<128x16xf32, #tpu.memory_space<vmem>>, vector<128x16xf32>
    tpu.vector_store %arg7[%c0_11, %c0_12], %18 {strides = array<i32>} : memref<128x16xf32, #tpu.memory_space<vmem>>, vector<128x16xf32>,
    return
  }
  func.func @transform_0(%arg0: i32) -> (i32, i32) {
    %c0_i32 = arith.constant 0 : i32
    %c0_i32_0 = arith.constant 0 : i32
    return %arg0, %c0_i32 : i32, i32
  }
  func.func @transform_1(%arg0: i32) -> (i32, i32) {
    %c0_i32 = arith.constant 0 : i32
    %c0_i32_0 = arith.constant 0 : i32
    return %arg0, %c0_i32 : i32, i32
  }
  func.func @transform_2(%arg0: i32) -> (i32, i32) {
    %c0_i32 = arith.constant 0 : i32
    %c0_i32_0 = arith.constant 0 : i32
    %c0_i32_1 = arith.constant 0 : i32
    return %c0_i32, %c0_i32_0 : i32, i32
  }
  func.func @transform_3(%arg0: i32) -> (i32, i32) {
    %c0_i32 = arith.constant 0 : i32
    %c0_i32_0 = arith.constant 0 : i32
    %c0_i32_1 = arith.constant 0 : i32
    return %c0_i32, %c0_i32_0 : i32, i32
  }
  func.func @transform_4(%arg0: i32) -> (i32, i32) {
    %c0_i32 = arith.constant 0 : i32
    %c0_i32_0 = arith.constant 0 : i32
    %c0_i32_1 = arith.constant 0 : i32
    return %c0_i32, %c0_i32_0 : i32, i32
  }
  func.func @transform_5(%arg0: i32) -> (i32, i32) {
    %c0_i32 = arith.constant 0 : i32
    %c0_i32_0 = arith.constant 0 : i32
    %c0_i32_1 = arith.constant 0 : i32
    return %c0_i32, %c0_i32_0 : i32, i32
  }
  func.func @transform_6(%arg0: i32) -> (i32, i32) {
    %c0_i32 = arith.constant 0 : i32
    %c0_i32_0 = arith.constant 0 : i32
    return %arg0, %c0_i32 : i32, i32
  }
}

</mosaic_0001>

<bundles_post_ra>
// kernel: bottleneck_forward.8
= control target key start
LH: loop header
LB: loop body
LE: loop exit
PB: predicated region body
PF: predicated region fallthrough
CT: control target
= control target key end

     0   :  { %s831_s18 = smov 0   ;;  %s947_s0 = inlined_call_operand.vmem [shape: bf16[512,4], index: 0, kind: input, shape index: {}]   ;;  %s948_s1 = inlined_call_operand.vmem [shape: f32[1,4], index: 1, kind: input, shape index: {}]   ;;  %s949_s2 = inlined_call_operand.vmem [shape: f32[1,4], index: 2, kind: input, shape index: {}]   ;;  %s950_s3 = inlined_call_operand.vmem [shape: bf16[4,16], index: 3, kind: input, shape index: {}]   ;;  %s951_s4 = inlined_call_operand.vmem [shape: bf16[512,16], index: 4, kind: output, shape index: {0}]   ;;  %s952_s5 = inlined_call_operand.vmem [shape: f32[4,2,16], index: 5, kind: output, shape index: {1}]  }
   0x1 LB: > { %s837_s1 = sadd.s32 4294967295, %s799_s18   ;;  %p690_p0 = scmp.ge.s32.totalorder %s799_s18, 1  ;;  %s799_s18 = sphi %s831_s18, %s16_s18  }
   0x2   : > { %p191_p1 = scmp.lt.s32.totalorder %s799_s18, 5 }
   0x4   : > { %p192_p2 = pnand %p690_p0, %p191_p1 }
   0x5   : > { %v256_v0 = vld [vmem:[%s950_s3] sm:$0x3] (!%p192_p2)  ;;  %vm322_vm0 = vcmask (!%p192_p2), 1041408   ;;  %s691_s20 = sshll.u32 (!%p192_p2), %s837_s1, 4  ;;  %vm297_vm1 = vcmask (!%p192_p2), 31744   ;;  %vm582_vm2 = vcmask (!%p192_p2), 125952  }
   0x6   : > { %195 = sbr.rel (%p192_p2) target bundleno = 280 (0x118), region = 36  ;;  %775 = vmatprep.subr.msk.bf16.mxu0 (!%p192_p2), %vm322_vm0, %v256_v0  ;;  %v324_v1 = vsel (!%p192_p2), %vm322_vm0, %v256_v0, 0  ;;  %p224_p3 = scmp.lt.s32.totalorder (!%p192_p2), %s691_s20, 63  ;;  %776 = vmatprep.subr.msk.bf16.mxu1 (!%p192_p2), %vm322_vm0, %v256_v0  ;;  %vm423_vm3 = vcmask (!%p192_p2), 130048   ;;  %vm514_vm4 = vcmask (!%p192_p2), 1040384   ;;  %vm516_vm5 = vcmask (!%p192_p2), 123904  }
   0x7   : > { %756 = vmatpush3.bf16.msra.mxu0 (!%p192_p2), %v324_v1  ;;  %774 = vmatpush3.bf16.msra.mxu1 (!%p192_p2), %v324_v1  ;;  %p235_p4 = scmp.lt.s32.totalorder (!%p192_p2), %s837_s1, 3 }
   0xd   : > { %s954_s20 = smov (!%p224_p3, %s691_s20), 63  ;;  %s956_s1 = smov (!%p235_p4, %s837_s1), 3 }
   0xe   : > { %s692_s21 = sshll.u32 %s954_s20, 2  ;;  %s695_s28 = sshll.u32 %s956_s1, 1 }
   0xf   : > { %s227_s24 = scalar_lea.vmem %s947_s0, %s692_s21  ;;  %s859_s27 = scalar_lea.vmem %s951_s4, %s692_s21 }
  0x10   : > { %v785_v2 = vld [vmem:[%s227_s24] sm:$0xff]   ;;  %v786_v3 = vld [vmem:[%s227_s24 + $0x8] sm:$0xff]   ;;  %v787_v4 = vld [vmem:[%s227_s24 + $0x10] sm:$0xff]   ;;  %s238_s6 = scalar_lea.vmem %s952_s5, %s695_s28 }
  0x11   : > { %757 = vmatprep.mubr.msk.bf16.mxu0 %vm297_vm1, %v785_v2  ;;  %v789_v5 = vld [vmem:[%s227_s24 + $0x20] sm:$0xff]   ;;  %v790_v6 = vld [vmem:[%s227_s24 + $0x28] sm:$0xff]   ;;  %v791_v7 = vld [vmem:[%s227_s24 + $0x30] sm:$0xff]  }
  0x12   : > { %758 = vmatmul.mubr.msk.bf16.vlgmr.msra.gmra.mrb[0].mxu0 %vm297_vm1, %v786_v3  ;;  %765 = vmatprep.mubr.msk.bf16.mxu1 %vm297_vm1, %v789_v5  ;;  %v788_v8 = vld [vmem:[%s227_s24 + $0x18] sm:$0xff]  }
  0x13   : > { %761 = vmatprep.mubr.msk.bf16.mxu0 %vm297_vm1, %v787_v4  ;;  %766 = vmatmul.mubr.msk.bf16.vlgmr.msra.gmra.mrb[0].mxu1 %vm297_vm1, %v790_v6  ;;  %v792_v9 = vld [vmem:[%s227_s24 + $0x38] sm:$0xff]  }
  0x14   : > { %769 = vmatprep.mubr.msk.bf16.mxu1 %vm297_vm1, %v791_v7 }
  0x1a   : > { %762 = vmatmul.mubr.msk.bf16.gmra.mrb[4].mxu0 %vm297_vm1, %v788_v8 }
  0x1b   : > { %770 = vmatmul.mubr.msk.bf16.gmra.mrb[4].mxu1 %vm297_vm1, %v792_v9 }
  0xe5   : > { %v759_v10 = vpop.f32.mrb[0].mxu0 }
  0xe6   : > { %v732_v11 = vpack.c.bf16 %v759_v10, %v759_v10  ;;  %v360_v12 = vpop.f32.mrb[1].mxu0  ;;  %v463_v16 = vmul.f32 %v759_v10, %v759_v10  ;;  %v867_v23 = vpop.f32.mrb[0].mxu1  ;;  %v427_v27 = vsel %vm423_vm3, %v759_v10, 0.0 }
  0xe7   : > { %v461_v13 = vmul.f32 %v360_v12, %v360_v12  ;;  %v730_v14 = vpack.c.bf16 %v360_v12, %v360_v12  ;;  %v760_v15 = vpop.f32.mrb[2].mxu0  ;;  %v424_v19 = vsel %vm423_vm3, %v360_v12, 0.0  ;;  %v392_v26 = vpop.f32.mrb[1].mxu1  ;;  %v740_v30 = vpack.c.bf16 %v867_v23, %v867_v23 }
  0xe8   : > { %585 = vst.msk [vmem:[%s859_s27 + $0x8] sm:$0xf] %vm582_vm2, %v732_v11  ;;  %v733_v17 = vpack.c.bf16 %v760_v15, %v760_v15  ;;  %v363_v18 = vpop.f32.mrb[3].mxu0  ;;  %v464_v24 = vmul.f32 %v760_v15, %v760_v15  ;;  %v878_v31 = vpop.f32.mrb[2].mxu1  ;;  %v738_v34 = vpack.c.bf16 %v392_v26, %v392_v26  ;;  %v480_v36 = vsel %vm423_vm3, %v463_v16, 0.0 }
  0xe9   : > { %583 = vst.msk [vmem:[%s859_s27] sm:$0xf] %vm582_vm2, %v730_v14  ;;  %v425_v20 = vsel %vm423_vm3, %v363_v18, 0.0  ;;  %v462_v21 = vmul.f32 %v363_v18, %v363_v18  ;;  %v731_v22 = vpack.c.bf16 %v363_v18, %v363_v18  ;;  %v477_v28 = vsel %vm423_vm3, %v461_v13, 0.0  ;;  %v395_v35 = vpop.f32.mrb[3].mxu1 }
  0xea   : > { %586 = vst.msk [vmem:[%s859_s27 + $0xc] sm:$0xf] %vm582_vm2, %v733_v17  ;;  %v426_v25 = vadd.f32 %v425_v20, %v424_v19  ;;  %593 = vst.msk [vmem:[%s859_s27 + $0x28] sm:$0xf] %vm582_vm2, %v740_v30  ;;  %v741_v38 = vpack.c.bf16 %v878_v31, %v878_v31  ;;  %v429_v39 = vsel %vm423_vm3, %v760_v15, 0.0  ;;  %v482_v40 = vsel %vm423_vm3, %v464_v24, 0.0 }
  0xeb   : > { %v478_v29 = vsel %vm423_vm3, %v462_v21, 0.0  ;;  %584 = vst.msk [vmem:[%s859_s27 + $0x4] sm:$0xf] %vm582_vm2, %v731_v22  ;;  %591 = vst.msk [vmem:[%s859_s27 + $0x20] sm:$0xf] %vm582_vm2, %v738_v34  ;;  %v469_v62 = vmul.f32 %v392_v26, %v392_v26  ;;  %v739_v3 = vpack.c.bf16 %v395_v35, %v395_v35  ;;  %v439_v10 = vsel %vm423_vm3, %v392_v26, 0.0 }
  0xec   : > { %v428_v32 = vadd.f32 %v427_v27, %v426_v25  ;;  %v479_v33 = vadd.f32 %v478_v29, %v477_v28  ;;  %594 = vst.msk [vmem:[%s859_s27 + $0x2c] sm:$0xf] %vm582_vm2, %v741_v38  ;;  %v470_v16 = vmul.f32 %v395_v35, %v395_v35  ;;  %v471_v21 = vmul.f32 %v867_v23, %v867_v23 }
  0xed   : > { %v763_v37 = vpop.f32.mrb[4].mxu0  ;;  %592 = vst.msk [vmem:[%s859_s27 + $0x24] sm:$0xf] %vm582_vm2, %v739_v3  ;;  %v492_v15 = vsel %vm423_vm3, %v469_v62, 0.0  ;;  %v441_v22 = vsel %vm423_vm3, %v395_v35, 0.0  ;;  %v443_v26 = vsel %vm423_vm3, %v867_v23, 0.0  ;;  %v472_v27 = vmul.f32 %v878_v31, %v878_v31 }
  0xee   : > { %v481_v41 = vadd.f32 %v480_v36, %v479_v33  ;;  %v736_v42 = vpack.c.bf16 %v763_v37, %v763_v37  ;;  %v376_v43 = vpop.f32.mrb[5].mxu0  ;;  %v430_v44 = vadd.f32 %v429_v39, %v428_v32  ;;  %v771_v55 = vpop.f32.mrb[4].mxu1  ;;  %v467_v56 = vmul.f32 %v763_v37, %v763_v37 }
  0xef   : > { %v431_v45 = vsel %vm423_vm3, %v376_v43, 0.0  ;;  %v465_v46 = vmul.f32 %v376_v43, %v376_v43  ;;  %v734_v47 = vpack.c.bf16 %v376_v43, %v376_v43  ;;  %v764_v48 = vpop.f32.mrb[6].mxu0  ;;  %v408_v60 = vpop.f32.mrb[5].mxu1  ;;  %v435_v0 = vsel %vm423_vm3, %v763_v37, 0.0 }
  0xf0   : > { %589 = vst.msk [vmem:[%s859_s27 + $0x18] sm:$0xf] %vm582_vm2, %v736_v42  ;;  %v483_v49 = vadd.f32 %v482_v40, %v481_v41  ;;  %v379_v50 = vpop.f32.mrb[7].mxu0  ;;  %v432_v51 = vadd.f32 %v431_v45, %v430_v44  ;;  %v737_v53 = vpack.c.bf16 %v764_v48, %v764_v48  ;;  %v772_v63 = vpop.f32.mrb[6].mxu1  ;;  %v468_v1 = vmul.f32 %v764_v48, %v764_v48 }
  0xf1   : > { %v484_v52 = vsel %vm423_vm3, %v465_v46, 0.0  ;;  %587 = vst.msk [vmem:[%s859_s27 + $0x10] sm:$0xf] %vm582_vm2, %v734_v47  ;;  %v433_v54 = vsel %vm423_vm3, %v379_v50, 0.0  ;;  %v466_v58 = vmul.f32 %v379_v50, %v379_v50  ;;  %v735_v59 = vpack.c.bf16 %v379_v50, %v379_v50  ;;  %v411_v4 = vpop.f32.mrb[7].mxu1 }
  0xf2   : > { %v485_v57 = vadd.f32 %v484_v52, %v483_v49  ;;  %590 = vst.msk [vmem:[%s859_s27 + $0x1c] sm:$0xf] %vm582_vm2, %v737_v53  ;;  %v434_v61 = vadd.f32 %v433_v54, %v432_v51  ;;  %v744_v7 = vpack.c.bf16 %v771_v55, %v771_v55  ;;  %v488_v8 = vsel %vm423_vm3, %v467_v56, 0.0 }
  0xf3   : > { %v486_v2 = vsel %vm423_vm3, %v466_v58, 0.0  ;;  %588 = vst.msk [vmem:[%s859_s27 + $0x14] sm:$0xf] %vm582_vm2, %v735_v59  ;;  %v437_v9 = vsel %vm423_vm3, %v764_v48, 0.0  ;;  %v742_v11 = vpack.c.bf16 %v408_v60, %v408_v60  ;;  %v490_v14 = vsel %vm423_vm3, %v468_v1, 0.0 }
  0xf4   : > { %v436_v5 = vadd.f32 %v435_v0, %v434_v61  ;;  %v487_v6 = vadd.f32 %v486_v2, %v485_v57  ;;  %597 = vst.msk [vmem:[%s859_s27 + $0x38] sm:$0xf] %vm582_vm2, %v744_v7  ;;  %v745_v17 = vpack.c.bf16 %v772_v63, %v772_v63  ;;  %v743_v20 = vpack.c.bf16 %v411_v4, %v411_v4 }
  0xf5   : > { %595 = vst.msk [vmem:[%s859_s27 + $0x30] sm:$0xf] %vm582_vm2, %v742_v11  ;;  %v494_v28 = vsel %vm423_vm3, %v470_v16, 0.0  ;;  %v473_v29 = vmul.f32 %v408_v60, %v408_v60  ;;  %v496_v33 = vsel %vm423_vm3, %v471_v21, 0.0  ;;  %v445_v34 = vsel %vm423_vm3, %v878_v31, 0.0 }
  0xf6   : > { %v489_v12 = vadd.f32 %v488_v8, %v487_v6  ;;  %v438_v13 = vadd.f32 %v437_v9, %v436_v5  ;;  %598 = vst.msk [vmem:[%s859_s27 + $0x3c] sm:$0xf] %vm582_vm2, %v745_v17  ;;  %596 = vst.msk [vmem:[%s859_s27 + $0x34] sm:$0xf] %vm582_vm2, %v743_v20  ;;  %v447_v35 = vsel %vm423_vm3, %v408_v60, 0.0  ;;  %v498_v38 = vsel %vm423_vm3, %v472_v27, 0.0 }
  0xf7   : > { %v500_v23 = vsel %vm423_vm3, %v473_v29, 0.0  ;;  %v474_v39 = vmul.f32 %v411_v4, %v411_v4  ;;  %v475_v42 = vmul.f32 %v771_v55, %v771_v55  ;;  %v449_v43 = vsel %vm423_vm3, %v411_v4, 0.0 }
  0xf8   : > { %v440_v18 = vadd.f32 %v439_v10, %v438_v13  ;;  %v491_v19 = vadd.f32 %v490_v14, %v489_v12  ;;  %v451_v46 = vsel %vm423_vm3, %v771_v55, 0.0  ;;  %v476_v31 = vmul.f32 %v772_v63, %v772_v63 }
  0xf9   : > { %v502_v47 = vsel %vm423_vm3, %v474_v39, 0.0  ;;  %v504_v50 = vsel %vm423_vm3, %v475_v42, 0.0  ;;  %v453_v51 = vsel %vm423_vm3, %v772_v63, 0.0 }
  0xfa   : > { %v493_v24 = vadd.f32 %v492_v15, %v491_v19  ;;  %v442_v25 = vadd.f32 %v441_v22, %v440_v18  ;;  %v506_v54 = vsel %vm423_vm3, %v476_v31, 0.0 }
  0xfc   : > { %v444_v30 = vadd.f32 %v443_v26, %v442_v25  ;;  %v495_v32 = vadd.f32 %v494_v28, %v493_v24 }
  0xfe   : > { %v497_v36 = vadd.f32 %v496_v33, %v495_v32  ;;  %v446_v37 = vadd.f32 %v445_v34, %v444_v30 }
 0x100   : > { %v448_v40 = vadd.f32 %v447_v35, %v446_v37  ;;  %v499_v41 = vadd.f32 %v498_v38, %v497_v36 }
 0x102   : > { %v501_v44 = vadd.f32 %v500_v23, %v499_v41  ;;  %v450_v45 = vadd.f32 %v449_v43, %v448_v40 }
 0x104   : > { %v452_v48 = vadd.f32 %v451_v46, %v450_v45  ;;  %v503_v49 = vadd.f32 %v502_v47, %v501_v44 }
 0x106   : > { %v454_v52 = vadd.f32 %v453_v51, %v452_v48  ;;  %v505_v53 = vadd.f32 %v504_v50, %v503_v49 }
 0x108   : > { %v455_v56 = vrot.slane %v454_v52, 4  ;;  %v507_v57 = vadd.f32 %v506_v54, %v505_v53 }
 0x10a   : > { %v456_v58 = vadd.f32 %v455_v56, %v454_v52  ;;  %v508_v59 = vrot.slane %v507_v57, 4 }
 0x10c   : > { %v457_v55 = vrot.slane %v456_v58, 2  ;;  %v509_v60 = vadd.f32 %v508_v59, %v507_v57 }
 0x10e   : > { %v458_v61 = vadd.f32 %v457_v55, %v456_v58  ;;  %v510_v62 = vrot.slane %v509_v60, 2 }
 0x110   : > { %v459_v0 = vrot.slane %v458_v61, 1  ;;  %v511_v1 = vadd.f32 %v510_v62, %v509_v60 }
 0x112   : > { %v512_v2 = vrot.slane %v511_v1, 1  ;;  %v460_v63 = vadd.f32 %v459_v0, %v458_v61 }
 0x114   : > { %v513_v3 = vadd.f32 %v512_v2, %v511_v1 }
 0x116   : > { %v515_v4 = vsel %vm514_vm4, %v460_v63, %v513_v3 }
 0x117   : > { %517 = vst.msk [vmem:[%s238_s6] sm:$0x3] %vm516_vm5, %v515_v4 }
 0x118 PF: > { %s16_s18 = sadd.s32 1, %s799_s18  }
 0x119   : > { %p13_p5 = scmp.ge.s32.totalorder %s16_s18, 6  }
 0x11b   :  { %15 = sbr.rel (!%p13_p5) target bundleno = 1 (0x1), region = 78 }

// kernel: bottleneck_forward.7
= control target key start
LH: loop header
LB: loop body
LE: loop exit
PB: predicated region body
PF: predicated region fallthrough
CT: control target
= control target key end

     0   :  { %s902_s18 = smov 0   ;;  %s1070_s0 = inlined_call_operand.vmem [shape: bf16[512,4], index: 0, kind: input, shape index: {}]   ;;  %s1071_s1 = inlined_call_operand.vmem [shape: f32[1,4], index: 1, kind: input, shape index: {}]   ;;  %s1072_s2 = inlined_call_operand.vmem [shape: f32[1,4], index: 2, kind: input, shape index: {}]   ;;  %s1073_s3 = inlined_call_operand.vmem [shape: bf16[4,16], index: 3, kind: input, shape index: {}]   ;;  %s1074_s4 = inlined_call_operand.vmem [shape: bf16[512,16], index: 4, kind: output, shape index: {0}]   ;;  %s1075_s5 = inlined_call_operand.vmem [shape: f32[4,2,16], index: 5, kind: output, shape index: {1}]  }
   0x1 LB: > { %s908_s19 = sadd.s32 4294967295, %s870_s18   ;;  %p736_p0 = scmp.ge.s32.totalorder %s870_s18, 1  ;;  %s870_s18 = sphi %s902_s18, %s16_s18  }
   0x2   : > { %p191_p1 = scmp.lt.s32.totalorder %s870_s18, 5 }
   0x4   : > { %p192_p2 = pnand %p736_p0, %p191_p1 }
   0x5   : > { %v342_v0 = vld [vmem:[%s1073_s3] sm:$0x3] (!%p192_p2)  ;;  %vm368_vm0 = vcmask (!%p192_p2), 1041408   ;;  %s737_s22 = sshll.u32 (!%p192_p2), %s908_s19, 4  ;;  %vm343_vm1 = vcmask (!%p192_p2), 31744   ;;  %vm628_vm2 = vcmask (!%p192_p2), 125952  }
   0x6   : > { %195 = sbr.rel (%p192_p2) target bundleno = 290 (0x122), region = 36  ;;  %854 = vmatprep.subr.msk.bf16.mxu0 (!%p192_p2), %vm368_vm0, %v342_v0  ;;  %v370_v1 = vsel (!%p192_p2), %vm368_vm0, %v342_v0, 0  ;;  %p224_p3 = scmp.lt.s32.totalorder (!%p192_p2), %s737_s22, 63  ;;  %855 = vmatprep.subr.msk.bf16.mxu1 (!%p192_p2), %vm368_vm0, %v342_v0  ;;  %v929_v2 = vld [vmem:[%s1071_s1] ss:$0 sm:$0xff] (!%p192_p2)  ;;  %vm469_vm3 = vcmask (!%p192_p2), 130048  }
   0x7   : > { %835 = vmatpush3.bf16.msra.mxu0 (!%p192_p2), %v370_v1  ;;  %853 = vmatpush3.bf16.msra.mxu1 (!%p192_p2), %v370_v1  ;;  %v938_v11 = vld [vmem:[%s1072_s2] ss:$0 sm:$0xff] (!%p192_p2)  ;;  %p235_p4 = scmp.lt.s32.totalorder (!%p192_p2), %s908_s19, 3  ;;  %vm560_vm4 = vcmask (!%p192_p2), 1040384   ;;  %vm562_vm5 = vcmask (!%p192_p2), 123904  }
   0xd   : > { %s1077_s22 = smov (!%p224_p3, %s737_s22), 63  ;;  %s1079_s19 = smov (!%p235_p4, %s908_s19), 3 }
   0xe   : > { %s738_s23 = sshll.u32 %s1077_s22, 2  ;;  %s741_s9 = sshll.u32 %s1079_s19, 1 }
   0xf   : > { %s924_s26 = scalar_lea.vmem %s1070_s0, %s738_s23  ;;  %s989_s8 = scalar_lea.vmem %s1074_s4, %s738_s23 }
  0x10   : > { %v787_v3 = vld [vmem:[%s924_s26] sm:$0xff]   ;;  %v818_v4 = vld [vmem:[%s924_s26 + $0x8] sm:$0xff]   ;;  %v819_v5 = vld [vmem:[%s924_s26 + $0x10] sm:$0xff]   ;;  %s238_s12 = scalar_lea.vmem %s1075_s5, %s741_s9 }
  0x11   : > { %v788_v6 = vunpack.c.l.bf16 %v787_v3  ;;  %v789_v7 = vunpack.c.h.bf16 %v787_v3  ;;  %v792_v8 = vunpack.c.l.bf16 %v818_v4  ;;  %v793_v9 = vunpack.c.h.bf16 %v818_v4  ;;  %v820_v10 = vld [vmem:[%s924_s26 + $0x18] sm:$0xff]   ;;  %v821_v32 = vld [vmem:[%s924_s26 + $0x20] sm:$0xff]   ;;  %v822_v37 = vld [vmem:[%s924_s26 + $0x28] sm:$0xff]  }
  0x12   : > { %v796_v12 = vunpack.c.l.bf16 %v819_v5  ;;  %v797_v13 = vunpack.c.h.bf16 %v819_v5  ;;  %v800_v14 = vunpack.c.l.bf16 %v820_v10  ;;  %v801_v15 = vunpack.c.h.bf16 %v820_v10  ;;  %v823_v42 = vld [vmem:[%s924_s26 + $0x30] sm:$0xff]   ;;  %v824_v47 = vld [vmem:[%s924_s26 + $0x38] sm:$0xff]  }
  0x13   : > { %v279_v16 = vmul.f32 %v788_v6, %v929_v2  ;;  %v280_v17 = vmul.f32 %v789_v7, %v929_v2  ;;  %v281_v18 = vmul.f32 %v792_v8, %v929_v2  ;;  %v282_v19 = vmul.f32 %v793_v9, %v929_v2 }
  0x14   : > { %v283_v20 = vmul.f32 %v796_v12, %v929_v2  ;;  %v284_v21 = vmul.f32 %v797_v13, %v929_v2  ;;  %v285_v22 = vmul.f32 %v800_v14, %v929_v2  ;;  %v286_v23 = vmul.f32 %v801_v15, %v929_v2 }
  0x15   : > { %v302_v24 = vadd.f32 %v938_v11, %v279_v16  ;;  %v303_v25 = vadd.f32 %v938_v11, %v280_v17  ;;  %v304_v26 = vadd.f32 %v938_v11, %v281_v18  ;;  %v305_v27 = vadd.f32 %v938_v11, %v282_v19 }
  0x16   : > { %v306_v28 = vadd.f32 %v938_v11, %v283_v20  ;;  %v307_v29 = vadd.f32 %v938_v11, %v284_v21  ;;  %v308_v30 = vadd.f32 %v938_v11, %v285_v22  ;;  %v309_v31 = vadd.f32 %v938_v11, %v286_v23 }
  0x17   : > { %v318_v33 = vmax.f32 %v302_v24, 0.0  ;;  %v319_v34 = vmax.f32 %v303_v25, 0.0  ;;  %v320_v35 = vmax.f32 %v304_v26, 0.0  ;;  %v321_v36 = vmax.f32 %v305_v27, 0.0 }
  0x18   : > { %v322_v38 = vmax.f32 %v306_v28, 0.0  ;;  %v323_v39 = vmax.f32 %v307_v29, 0.0  ;;  %v324_v40 = vmax.f32 %v308_v30, 0.0  ;;  %v325_v41 = vmax.f32 %v309_v31, 0.0 }
  0x19   : > { %v334_v43 = vpack.c.bf16 %v319_v34, %v318_v33  ;;  %v335_v44 = vpack.c.bf16 %v321_v36, %v320_v35  ;;  %v804_v45 = vunpack.c.l.bf16 %v821_v32  ;;  %v805_v46 = vunpack.c.h.bf16 %v821_v32 }
  0x1a   : > { %v336_v48 = vpack.c.bf16 %v323_v39, %v322_v38  ;;  %v337_v49 = vpack.c.bf16 %v325_v41, %v324_v40  ;;  %v808_v50 = vunpack.c.l.bf16 %v822_v37  ;;  %v809_v51 = vunpack.c.h.bf16 %v822_v37 }
  0x1b   : > { %836 = vmatprep.mubr.msk.bf16.mxu0 %vm343_vm1, %v334_v43  ;;  %v287_v52 = vmul.f32 %v804_v45, %v929_v2  ;;  %v288_v53 = vmul.f32 %v805_v46, %v929_v2  ;;  %v812_v54 = vunpack.c.l.bf16 %v823_v42  ;;  %v813_v55 = vunpack.c.h.bf16 %v823_v42 }
  0x1c   : > { %837 = vmatmul.mubr.msk.bf16.vlgmr.msra.gmra.mrb[0].mxu0 %vm343_vm1, %v335_v44  ;;  %v289_v56 = vmul.f32 %v808_v50, %v929_v2  ;;  %v290_v57 = vmul.f32 %v809_v51, %v929_v2  ;;  %v816_v58 = vunpack.c.l.bf16 %v824_v47  ;;  %v817_v59 = vunpack.c.h.bf16 %v824_v47 }
  0x1d   : > { %840 = vmatprep.mubr.msk.bf16.mxu0 %vm343_vm1, %v336_v48  ;;  %v310_v60 = vadd.f32 %v938_v11, %v287_v52  ;;  %v311_v61 = vadd.f32 %v938_v11, %v288_v53  ;;  %v291_v62 = vmul.f32 %v812_v54, %v929_v2  ;;  %v292_v63 = vmul.f32 %v813_v55, %v929_v2 }
  0x1e   : > { %v312_v0 = vadd.f32 %v938_v11, %v289_v56  ;;  %v313_v1 = vadd.f32 %v938_v11, %v290_v57  ;;  %v293_v3 = vmul.f32 %v816_v58, %v929_v2  ;;  %v294_v4 = vmul.f32 %v817_v59, %v929_v2 }
  0x1f   : > { %v326_v5 = vmax.f32 %v310_v60, 0.0  ;;  %v327_v6 = vmax.f32 %v311_v61, 0.0  ;;  %v314_v7 = vadd.f32 %v938_v11, %v291_v62  ;;  %v315_v8 = vadd.f32 %v938_v11, %v292_v63 }
  0x20   : > { %v328_v9 = vmax.f32 %v312_v0, 0.0  ;;  %v329_v10 = vmax.f32 %v313_v1, 0.0  ;;  %v316_v12 = vadd.f32 %v938_v11, %v293_v3  ;;  %v317_v13 = vadd.f32 %v938_v11, %v294_v4 }
  0x21   : > { %v338_v14 = vpack.c.bf16 %v327_v6, %v326_v5  ;;  %v330_v15 = vmax.f32 %v314_v7, 0.0  ;;  %v331_v16 = vmax.f32 %v315_v8, 0.0 }
  0x22   : > { %v339_v17 = vpack.c.bf16 %v329_v10, %v328_v9  ;;  %v332_v18 = vmax.f32 %v316_v12, 0.0  ;;  %v333_v19 = vmax.f32 %v317_v13, 0.0 }
  0x23   : > { %844 = vmatprep.mubr.msk.bf16.mxu1 %vm343_vm1, %v338_v14  ;;  %v340_v2 = vpack.c.bf16 %v331_v16, %v330_v15 }
  0x24   : > { %841 = vmatmul.mubr.msk.bf16.gmra.mrb[4].mxu0 %vm343_vm1, %v337_v49  ;;  %845 = vmatmul.mubr.msk.bf16.vlgmr.msra.gmra.mrb[0].mxu1 %vm343_vm1, %v339_v17  ;;  %v341_v20 = vpack.c.bf16 %v333_v19, %v332_v18 }
  0x25   : > { %848 = vmatprep.mubr.msk.bf16.mxu1 %vm343_vm1, %v340_v2 }
  0x2c   : > { %849 = vmatmul.mubr.msk.bf16.gmra.mrb[4].mxu1 %vm343_vm1, %v341_v20 }
  0xef   : > { %v838_v11 = vpop.f32.mrb[0].mxu0 }
  0xf0   : > { %v772_v21 = vpack.c.bf16 %v838_v11, %v838_v11  ;;  %v406_v22 = vpop.f32.mrb[1].mxu0  ;;  %v509_v26 = vmul.f32 %v838_v11, %v838_v11  ;;  %v473_v35 = vsel %vm469_vm3, %v838_v11, 0.0 }
  0xf1   : > { %v507_v23 = vmul.f32 %v406_v22, %v406_v22  ;;  %v770_v24 = vpack.c.bf16 %v406_v22, %v406_v22  ;;  %v839_v25 = vpop.f32.mrb[2].mxu0  ;;  %v470_v29 = vsel %vm469_vm3, %v406_v22, 0.0 }
  0xf2   : > { %631 = vst.msk [vmem:[%s989_s8 + $0x8] sm:$0xf] %vm628_vm2, %v772_v21  ;;  %v773_v27 = vpack.c.bf16 %v839_v25, %v839_v25  ;;  %v409_v28 = vpop.f32.mrb[3].mxu0  ;;  %v510_v33 = vmul.f32 %v839_v25, %v839_v25  ;;  %v526_v40 = vsel %vm469_vm3, %v509_v26, 0.0  ;;  %v475_v43 = vsel %vm469_vm3, %v839_v25, 0.0 }
  0xf3   : > { %629 = vst.msk [vmem:[%s989_s8] sm:$0xf] %vm628_vm2, %v770_v24  ;;  %v471_v30 = vsel %vm469_vm3, %v409_v28, 0.0  ;;  %v508_v31 = vmul.f32 %v409_v28, %v409_v28  ;;  %v771_v32 = vpack.c.bf16 %v409_v28, %v409_v28  ;;  %v523_v36 = vsel %vm469_vm3, %v507_v23, 0.0 }
  0xf4   : > { %632 = vst.msk [vmem:[%s989_s8 + $0xc] sm:$0xf] %vm628_vm2, %v773_v27  ;;  %v472_v34 = vadd.f32 %v471_v30, %v470_v29  ;;  %v528_v44 = vsel %vm469_vm3, %v510_v33, 0.0 }
  0xf5   : > { %v524_v37 = vsel %vm469_vm3, %v508_v31, 0.0  ;;  %630 = vst.msk [vmem:[%s989_s8 + $0x4] sm:$0xf] %vm628_vm2, %v771_v32 }
  0xf6   : > { %v474_v38 = vadd.f32 %v473_v35, %v472_v34  ;;  %v525_v39 = vadd.f32 %v524_v37, %v523_v36 }
  0xf7   : > { %v842_v41 = vpop.f32.mrb[4].mxu0  ;;  %v846_v42 = vpop.f32.mrb[0].mxu1 }
  0xf8   : > { %v527_v45 = vadd.f32 %v526_v40, %v525_v39  ;;  %v776_v46 = vpack.c.bf16 %v842_v41, %v842_v41  ;;  %v422_v47 = vpop.f32.mrb[5].mxu0  ;;  %v438_v48 = vpop.f32.mrb[1].mxu1  ;;  %v476_v49 = vadd.f32 %v475_v43, %v474_v38  ;;  %v513_v62 = vmul.f32 %v842_v41, %v842_v41 }
  0xf9   : > { %v477_v50 = vsel %vm469_vm3, %v422_v47, 0.0  ;;  %v511_v51 = vmul.f32 %v422_v47, %v422_v47  ;;  %v774_v52 = vpack.c.bf16 %v422_v47, %v422_v47  ;;  %v843_v53 = vpop.f32.mrb[6].mxu0  ;;  %v1008_v54 = vpop.f32.mrb[2].mxu1  ;;  %v481_v3 = vsel %vm469_vm3, %v842_v41, 0.0 }
  0xfa   : > { %635 = vst.msk [vmem:[%s989_s8 + $0x18] sm:$0xf] %vm628_vm2, %v776_v46  ;;  %v529_v55 = vadd.f32 %v528_v44, %v527_v45  ;;  %v425_v56 = vpop.f32.mrb[7].mxu0  ;;  %v441_v57 = vpop.f32.mrb[3].mxu1  ;;  %v478_v58 = vadd.f32 %v477_v50, %v476_v49  ;;  %v777_v60 = vpack.c.bf16 %v843_v53, %v843_v53  ;;  %v780_v5 = vpack.c.bf16 %v846_v42, %v846_v42 }
  0xfb   : > { %v530_v59 = vsel %vm469_vm3, %v511_v51, 0.0  ;;  %633 = vst.msk [vmem:[%s989_s8 + $0x10] sm:$0xf] %vm628_vm2, %v774_v52  ;;  %v479_v61 = vsel %vm469_vm3, %v425_v56, 0.0  ;;  %v512_v0 = vmul.f32 %v425_v56, %v425_v56  ;;  %v775_v1 = vpack.c.bf16 %v425_v56, %v425_v56 }
  0xfc   : > { %v531_v63 = vadd.f32 %v530_v59, %v529_v55  ;;  %636 = vst.msk [vmem:[%s989_s8 + $0x1c] sm:$0xf] %vm628_vm2, %v777_v60  ;;  %v480_v4 = vadd.f32 %v479_v61, %v478_v58  ;;  %v514_v6 = vmul.f32 %v843_v53, %v843_v53  ;;  %v515_v8 = vmul.f32 %v438_v48, %v438_v48 }
  0xfd   : > { %v532_v7 = vsel %vm469_vm3, %v512_v0, 0.0  ;;  %634 = vst.msk [vmem:[%s989_s8 + $0x14] sm:$0xf] %vm628_vm2, %v775_v1  ;;  %v778_v9 = vpack.c.bf16 %v438_v48, %v438_v48  ;;  %639 = vst.msk [vmem:[%s989_s8 + $0x28] sm:$0xf] %vm628_vm2, %v780_v5  ;;  %v534_v14 = vsel %vm469_vm3, %v513_v62, 0.0  ;;  %v781_v17 = vpack.c.bf16 %v1008_v54, %v1008_v54 }
  0xfe   : > { %v482_v10 = vadd.f32 %v481_v3, %v480_v4  ;;  %v533_v12 = vadd.f32 %v532_v7, %v531_v63  ;;  %v483_v15 = vsel %vm469_vm3, %v843_v53, 0.0  ;;  %v485_v16 = vsel %vm469_vm3, %v438_v48, 0.0 }
  0xff   : > { %v850_v13 = vpop.f32.mrb[4].mxu1  ;;  %637 = vst.msk [vmem:[%s989_s8 + $0x20] sm:$0xf] %vm628_vm2, %v778_v9  ;;  %v779_v20 = vpack.c.bf16 %v441_v57, %v441_v57  ;;  %v536_v21 = vsel %vm469_vm3, %v514_v6, 0.0  ;;  %v538_v22 = vsel %vm469_vm3, %v515_v8, 0.0  ;;  %v516_v23 = vmul.f32 %v441_v57, %v441_v57 }
 0x100   : > { %v454_v2 = vpop.f32.mrb[5].mxu1  ;;  %v535_v18 = vadd.f32 %v534_v14, %v533_v12  ;;  %v484_v19 = vadd.f32 %v483_v15, %v482_v10  ;;  %640 = vst.msk [vmem:[%s989_s8 + $0x2c] sm:$0xf] %vm628_vm2, %v781_v17  ;;  %v784_v24 = vpack.c.bf16 %v850_v13, %v850_v13  ;;  %v517_v28 = vmul.f32 %v846_v42, %v846_v42 }
 0x101   : > { %v851_v11 = vpop.f32.mrb[6].mxu1  ;;  %638 = vst.msk [vmem:[%s989_s8 + $0x24] sm:$0xf] %vm628_vm2, %v779_v20  ;;  %v487_v29 = vsel %vm469_vm3, %v441_v57, 0.0  ;;  %v782_v30 = vpack.c.bf16 %v454_v2, %v454_v2  ;;  %v489_v31 = vsel %vm469_vm3, %v846_v42, 0.0  ;;  %v518_v35 = vmul.f32 %v1008_v54, %v1008_v54 }
 0x102   : > { %v457_v25 = vpop.f32.mrb[7].mxu1  ;;  %v486_v26 = vadd.f32 %v485_v16, %v484_v19  ;;  %v537_v27 = vadd.f32 %v536_v21, %v535_v18  ;;  %643 = vst.msk [vmem:[%s989_s8 + $0x38] sm:$0xf] %vm628_vm2, %v784_v24  ;;  %v785_v34 = vpack.c.bf16 %v851_v11, %v851_v11  ;;  %v540_v36 = vsel %vm469_vm3, %v516_v23, 0.0 }
 0x103   : > { %v519_v37 = vmul.f32 %v454_v2, %v454_v2  ;;  %641 = vst.msk [vmem:[%s989_s8 + $0x30] sm:$0xf] %vm628_vm2, %v782_v30  ;;  %v783_v38 = vpack.c.bf16 %v457_v25, %v457_v25  ;;  %v542_v41 = vsel %vm469_vm3, %v517_v28, 0.0  ;;  %v491_v42 = vsel %vm469_vm3, %v1008_v54, 0.0 }
 0x104   : > { %v539_v32 = vadd.f32 %v538_v22, %v537_v27  ;;  %v488_v33 = vadd.f32 %v487_v29, %v486_v26  ;;  %644 = vst.msk [vmem:[%s989_s8 + $0x3c] sm:$0xf] %vm628_vm2, %v785_v34  ;;  %v493_v43 = vsel %vm469_vm3, %v454_v2, 0.0  ;;  %v544_v46 = vsel %vm469_vm3, %v518_v35, 0.0 }
 0x105   : > { %642 = vst.msk [vmem:[%s989_s8 + $0x34] sm:$0xf] %vm628_vm2, %v783_v38  ;;  %v546_v47 = vsel %vm469_vm3, %v519_v37, 0.0  ;;  %v520_v48 = vmul.f32 %v457_v25, %v457_v25  ;;  %v521_v51 = vmul.f32 %v850_v13, %v850_v13  ;;  %v495_v52 = vsel %vm469_vm3, %v457_v25, 0.0 }
 0x106   : > { %v490_v39 = vadd.f32 %v489_v31, %v488_v33  ;;  %v541_v40 = vadd.f32 %v540_v36, %v539_v32  ;;  %v497_v54 = vsel %vm469_vm3, %v850_v13, 0.0  ;;  %v522_v56 = vmul.f32 %v851_v11, %v851_v11 }
 0x107   : > { %v548_v57 = vsel %vm469_vm3, %v520_v48, 0.0  ;;  %v550_v60 = vsel %vm469_vm3, %v521_v51, 0.0  ;;  %v499_v61 = vsel %vm469_vm3, %v851_v11, 0.0 }
 0x108   : > { %v543_v44 = vadd.f32 %v542_v41, %v541_v40  ;;  %v492_v45 = vadd.f32 %v491_v42, %v490_v39  ;;  %v552_v0 = vsel %vm469_vm3, %v522_v56, 0.0 }
 0x10a   : > { %v494_v49 = vadd.f32 %v493_v43, %v492_v45  ;;  %v545_v50 = vadd.f32 %v544_v46, %v543_v44 }
 0x10c   : > { %v547_v53 = vadd.f32 %v546_v47, %v545_v50  ;;  %v496_v55 = vadd.f32 %v495_v52, %v494_v49 }
 0x10e   : > { %v498_v58 = vadd.f32 %v497_v54, %v496_v55  ;;  %v549_v59 = vadd.f32 %v548_v57, %v547_v53 }
 0x110   : > { %v500_v62 = vadd.f32 %v499_v61, %v498_v58  ;;  %v551_v63 = vadd.f32 %v550_v60, %v549_v59 }
 0x112   : > { %v501_v1 = vrot.slane %v500_v62, 4  ;;  %v553_v3 = vadd.f32 %v552_v0, %v551_v63 }
 0x114   : > { %v502_v4 = vadd.f32 %v501_v1, %v500_v62  ;;  %v554_v5 = vrot.slane %v553_v3, 4 }
 0x116   : > { %v503_v6 = vrot.slane %v502_v4, 2  ;;  %v555_v7 = vadd.f32 %v554_v5, %v553_v3 }
 0x118   : > { %v504_v8 = vadd.f32 %v503_v6, %v502_v4  ;;  %v556_v9 = vrot.slane %v555_v7, 2 }
 0x11a   : > { %v505_v10 = vrot.slane %v504_v8, 1  ;;  %v557_v12 = vadd.f32 %v556_v9, %v555_v7 }
 0x11c   : > { %v558_v13 = vrot.slane %v557_v12, 1  ;;  %v506_v14 = vadd.f32 %v505_v10, %v504_v8 }
 0x11e   : > { %v559_v15 = vadd.f32 %v558_v13, %v557_v12 }
 0x120   : > { %v561_v16 = vsel %vm560_vm4, %v506_v14, %v559_v15 }
 0x121   : > { %563 = vst.msk [vmem:[%s238_s12] sm:$0x3] %vm562_vm5, %v561_v16 }
 0x122 PF: > { %s16_s18 = sadd.s32 1, %s870_s18  }
 0x123   : > { %p13_p5 = scmp.ge.s32.totalorder %s16_s18, 6  }
 0x125   :  { %15 = sbr.rel (!%p13_p5) target bundleno = 1 (0x1), region = 78 }

// kernel: bottleneck_forward.5
= control target key start
LH: loop header
LB: loop body
LE: loop exit
PB: predicated region body
PF: predicated region fallthrough
CT: control target
= control target key end

     0   :  { %s830_s18 = smov 0   ;;  %s946_s0 = inlined_call_operand.vmem [shape: bf16[512,4], index: 0, kind: input, shape index: {}]   ;;  %s947_s1 = inlined_call_operand.vmem [shape: f32[1,4], index: 1, kind: input, shape index: {}]   ;;  %s948_s2 = inlined_call_operand.vmem [shape: f32[1,4], index: 2, kind: input, shape index: {}]   ;;  %s949_s3 = inlined_call_operand.vmem [shape: bf16[4,4], index: 3, kind: input, shape index: {}]   ;;  %s950_s4 = inlined_call_operand.vmem [shape: bf16[512,4], index: 4, kind: output, shape index: {0}]   ;;  %s951_s5 = inlined_call_operand.vmem [shape: f32[4,2,4], index: 5, kind: output, shape index: {1}]  }
   0x1 LB: > { %s836_s1 = sadd.s32 4294967295, %s798_s18   ;;  %p689_p0 = scmp.ge.s32.totalorder %s798_s18, 1  ;;  %s798_s18 = sphi %s830_s18, %s16_s18  }
   0x2   : > { %p191_p1 = scmp.lt.s32.totalorder %s798_s18, 5 }
   0x4   : > { %p192_p2 = pnand %p689_p0, %p191_p1 }
   0x5   : > { %v256_v0 = vld [vmem:[%s949_s3] sm:$0x3] (!%p192_p2)  ;;  %vm322_vm0 = vcmask (!%p192_p2), 1041408   ;;  %s690_s20 = sshll.u32 (!%p192_p2), %s836_s1, 4  ;;  %vm297_vm1 = vcmask (!%p192_p2), 31744   ;;  %vm581_vm2 = vcmask (!%p192_p2), 27648  }
   0x6   : > { %195 = sbr.rel (%p192_p2) target bundleno = 280 (0x118), region = 36  ;;  %774 = vmatprep.subr.msk.bf16.mxu0 (!%p192_p2), %vm322_vm0, %v256_v0  ;;  %v324_v1 = vsel (!%p192_p2), %vm322_vm0, %v256_v0, 0  ;;  %p224_p3 = scmp.lt.s32.totalorder (!%p192_p2), %s690_s20, 63  ;;  %775 = vmatprep.subr.msk.bf16.mxu1 (!%p192_p2), %vm322_vm0, %v256_v0  ;;  %vm513_vm3 = vcmask (!%p192_p2), 1040384   ;;  %vm515_vm4 = vcmask (!%p192_p2), 25600  }
   0x7   : > { %755 = vmatpush3.bf16.msra.mxu0 (!%p192_p2), %v324_v1  ;;  %773 = vmatpush3.bf16.msra.mxu1 (!%p192_p2), %v324_v1  ;;  %p235_p4 = scmp.lt.s32.totalorder (!%p192_p2), %s836_s1, 3 }
   0xd   : > { %s953_s20 = smov (!%p224_p3, %s690_s20), 63  ;;  %s955_s1 = smov (!%p235_p4, %s836_s1), 3 }
   0xe   : > { %s691_s21 = sshll.u32 %s953_s20, 2  ;;  %s694_s28 = sshll.u32 %s955_s1, 1 }
   0xf   : > { %s227_s24 = scalar_lea.vmem %s946_s0, %s691_s21  ;;  %s858_s27 = scalar_lea.vmem %s950_s4, %s691_s21 }
  0x10   : > { %v784_v2 = vld [vmem:[%s227_s24] sm:$0xff]   ;;  %v785_v3 = vld [vmem:[%s227_s24 + $0x8] sm:$0xff]   ;;  %v786_v4 = vld [vmem:[%s227_s24 + $0x10] sm:$0xff]   ;;  %s238_s6 = scalar_lea.vmem %s951_s5, %s694_s28 }
  0x11   : > { %756 = vmatprep.mubr.msk.bf16.mxu0 %vm297_vm1, %v784_v2  ;;  %v788_v5 = vld [vmem:[%s227_s24 + $0x20] sm:$0xff]   ;;  %v789_v6 = vld [vmem:[%s227_s24 + $0x28] sm:$0xff]   ;;  %v790_v7 = vld [vmem:[%s227_s24 + $0x30] sm:$0xff]  }
  0x12   : > { %757 = vmatmul.mubr.msk.bf16.vlgmr.msra.gmra.mrb[0].mxu0 %vm297_vm1, %v785_v3  ;;  %764 = vmatprep.mubr.msk.bf16.mxu1 %vm297_vm1, %v788_v5  ;;  %v787_v8 = vld [vmem:[%s227_s24 + $0x18] sm:$0xff]  }
  0x13   : > { %760 = vmatprep.mubr.msk.bf16.mxu0 %vm297_vm1, %v786_v4  ;;  %765 = vmatmul.mubr.msk.bf16.vlgmr.msra.gmra.mrb[0].mxu1 %vm297_vm1, %v789_v6  ;;  %v791_v9 = vld [vmem:[%s227_s24 + $0x38] sm:$0xff]  }
  0x14   : > { %768 = vmatprep.mubr.msk.bf16.mxu1 %vm297_vm1, %v790_v7 }
  0x1a   : > { %761 = vmatmul.mubr.msk.bf16.gmra.mrb[4].mxu0 %vm297_vm1, %v787_v8 }
  0x1b   : > { %769 = vmatmul.mubr.msk.bf16.gmra.mrb[4].mxu1 %vm297_vm1, %v791_v9 }
  0xe5   : > { %v758_v10 = vpop.f32.mrb[0].mxu0 }
  0xe6   : > { %v731_v11 = vpack.c.bf16 %v758_v10, %v758_v10  ;;  %v360_v12 = vpop.f32.mrb[1].mxu0  ;;  %v462_v16 = vmul.f32 %v758_v10, %v758_v10  ;;  %v866_v23 = vpop.f32.mrb[0].mxu1  ;;  %v426_v27 = vsel %vm297_vm1, %v758_v10, 0.0 }
  0xe7   : > { %v460_v13 = vmul.f32 %v360_v12, %v360_v12  ;;  %v729_v14 = vpack.c.bf16 %v360_v12, %v360_v12  ;;  %v759_v15 = vpop.f32.mrb[2].mxu0  ;;  %v423_v19 = vsel %vm297_vm1, %v360_v12, 0.0  ;;  %v392_v26 = vpop.f32.mrb[1].mxu1  ;;  %v739_v30 = vpack.c.bf16 %v866_v23, %v866_v23 }
  0xe8   : > { %584 = vst.msk [vmem:[%s858_s27 + $0x8] sm:$0xf] %vm581_vm2, %v731_v11  ;;  %v732_v17 = vpack.c.bf16 %v759_v15, %v759_v15  ;;  %v363_v18 = vpop.f32.mrb[3].mxu0  ;;  %v463_v24 = vmul.f32 %v759_v15, %v759_v15  ;;  %v877_v31 = vpop.f32.mrb[2].mxu1  ;;  %v737_v34 = vpack.c.bf16 %v392_v26, %v392_v26  ;;  %v479_v36 = vsel %vm297_vm1, %v462_v16, 0.0 }
  0xe9   : > { %582 = vst.msk [vmem:[%s858_s27] sm:$0xf] %vm581_vm2, %v729_v14  ;;  %v424_v20 = vsel %vm297_vm1, %v363_v18, 0.0  ;;  %v461_v21 = vmul.f32 %v363_v18, %v363_v18  ;;  %v730_v22 = vpack.c.bf16 %v363_v18, %v363_v18  ;;  %v476_v28 = vsel %vm297_vm1, %v460_v13, 0.0  ;;  %v395_v35 = vpop.f32.mrb[3].mxu1 }
  0xea   : > { %585 = vst.msk [vmem:[%s858_s27 + $0xc] sm:$0xf] %vm581_vm2, %v732_v17  ;;  %v425_v25 = vadd.f32 %v424_v20, %v423_v19  ;;  %592 = vst.msk [vmem:[%s858_s27 + $0x28] sm:$0xf] %vm581_vm2, %v739_v30  ;;  %v740_v38 = vpack.c.bf16 %v877_v31, %v877_v31  ;;  %v428_v39 = vsel %vm297_vm1, %v759_v15, 0.0  ;;  %v481_v40 = vsel %vm297_vm1, %v463_v24, 0.0 }
  0xeb   : > { %v477_v29 = vsel %vm297_vm1, %v461_v21, 0.0  ;;  %583 = vst.msk [vmem:[%s858_s27 + $0x4] sm:$0xf] %vm581_vm2, %v730_v22  ;;  %590 = vst.msk [vmem:[%s858_s27 + $0x20] sm:$0xf] %vm581_vm2, %v737_v34  ;;  %v468_v62 = vmul.f32 %v392_v26, %v392_v26  ;;  %v738_v3 = vpack.c.bf16 %v395_v35, %v395_v35  ;;  %v438_v10 = vsel %vm297_vm1, %v392_v26, 0.0 }
  0xec   : > { %v427_v32 = vadd.f32 %v426_v27, %v425_v25  ;;  %v478_v33 = vadd.f32 %v477_v29, %v476_v28  ;;  %593 = vst.msk [vmem:[%s858_s27 + $0x2c] sm:$0xf] %vm581_vm2, %v740_v38  ;;  %v469_v16 = vmul.f32 %v395_v35, %v395_v35  ;;  %v470_v21 = vmul.f32 %v866_v23, %v866_v23 }
  0xed   : > { %v762_v37 = vpop.f32.mrb[4].mxu0  ;;  %591 = vst.msk [vmem:[%s858_s27 + $0x24] sm:$0xf] %vm581_vm2, %v738_v3  ;;  %v491_v15 = vsel %vm297_vm1, %v468_v62, 0.0  ;;  %v440_v22 = vsel %vm297_vm1, %v395_v35, 0.0  ;;  %v442_v26 = vsel %vm297_vm1, %v866_v23, 0.0  ;;  %v471_v27 = vmul.f32 %v877_v31, %v877_v31 }
  0xee   : > { %v480_v41 = vadd.f32 %v479_v36, %v478_v33  ;;  %v735_v42 = vpack.c.bf16 %v762_v37, %v762_v37  ;;  %v376_v43 = vpop.f32.mrb[5].mxu0  ;;  %v429_v44 = vadd.f32 %v428_v39, %v427_v32  ;;  %v770_v55 = vpop.f32.mrb[4].mxu1  ;;  %v466_v56 = vmul.f32 %v762_v37, %v762_v37 }
  0xef   : > { %v430_v45 = vsel %vm297_vm1, %v376_v43, 0.0  ;;  %v464_v46 = vmul.f32 %v376_v43, %v376_v43  ;;  %v733_v47 = vpack.c.bf16 %v376_v43, %v376_v43  ;;  %v763_v48 = vpop.f32.mrb[6].mxu0  ;;  %v408_v60 = vpop.f32.mrb[5].mxu1  ;;  %v434_v0 = vsel %vm297_vm1, %v762_v37, 0.0 }
  0xf0   : > { %588 = vst.msk [vmem:[%s858_s27 + $0x18] sm:$0xf] %vm581_vm2, %v735_v42  ;;  %v482_v49 = vadd.f32 %v481_v40, %v480_v41  ;;  %v379_v50 = vpop.f32.mrb[7].mxu0  ;;  %v431_v51 = vadd.f32 %v430_v45, %v429_v44  ;;  %v736_v53 = vpack.c.bf16 %v763_v48, %v763_v48  ;;  %v771_v63 = vpop.f32.mrb[6].mxu1  ;;  %v467_v1 = vmul.f32 %v763_v48, %v763_v48 }
  0xf1   : > { %v483_v52 = vsel %vm297_vm1, %v464_v46, 0.0  ;;  %586 = vst.msk [vmem:[%s858_s27 + $0x10] sm:$0xf] %vm581_vm2, %v733_v47  ;;  %v432_v54 = vsel %vm297_vm1, %v379_v50, 0.0  ;;  %v465_v58 = vmul.f32 %v379_v50, %v379_v50  ;;  %v734_v59 = vpack.c.bf16 %v379_v50, %v379_v50  ;;  %v411_v4 = vpop.f32.mrb[7].mxu1 }
  0xf2   : > { %v484_v57 = vadd.f32 %v483_v52, %v482_v49  ;;  %589 = vst.msk [vmem:[%s858_s27 + $0x1c] sm:$0xf] %vm581_vm2, %v736_v53  ;;  %v433_v61 = vadd.f32 %v432_v54, %v431_v51  ;;  %v743_v7 = vpack.c.bf16 %v770_v55, %v770_v55  ;;  %v487_v8 = vsel %vm297_vm1, %v466_v56, 0.0 }
  0xf3   : > { %v485_v2 = vsel %vm297_vm1, %v465_v58, 0.0  ;;  %587 = vst.msk [vmem:[%s858_s27 + $0x14] sm:$0xf] %vm581_vm2, %v734_v59  ;;  %v436_v9 = vsel %vm297_vm1, %v763_v48, 0.0  ;;  %v741_v11 = vpack.c.bf16 %v408_v60, %v408_v60  ;;  %v489_v14 = vsel %vm297_vm1, %v467_v1, 0.0 }
  0xf4   : > { %v435_v5 = vadd.f32 %v434_v0, %v433_v61  ;;  %v486_v6 = vadd.f32 %v485_v2, %v484_v57  ;;  %596 = vst.msk [vmem:[%s858_s27 + $0x38] sm:$0xf] %vm581_vm2, %v743_v7  ;;  %v744_v17 = vpack.c.bf16 %v771_v63, %v771_v63  ;;  %v742_v20 = vpack.c.bf16 %v411_v4, %v411_v4 }
  0xf5   : > { %594 = vst.msk [vmem:[%s858_s27 + $0x30] sm:$0xf] %vm581_vm2, %v741_v11  ;;  %v493_v28 = vsel %vm297_vm1, %v469_v16, 0.0  ;;  %v472_v29 = vmul.f32 %v408_v60, %v408_v60  ;;  %v495_v33 = vsel %vm297_vm1, %v470_v21, 0.0  ;;  %v444_v34 = vsel %vm297_vm1, %v877_v31, 0.0 }
  0xf6   : > { %v488_v12 = vadd.f32 %v487_v8, %v486_v6  ;;  %v437_v13 = vadd.f32 %v436_v9, %v435_v5  ;;  %597 = vst.msk [vmem:[%s858_s27 + $0x3c] sm:$0xf] %vm581_vm2, %v744_v17  ;;  %595 = vst.msk [vmem:[%s858_s27 + $0x34] sm:$0xf] %vm581_vm2, %v742_v20  ;;  %v446_v35 = vsel %vm297_vm1, %v408_v60, 0.0  ;;  %v497_v38 = vsel %vm297_vm1, %v471_v27, 0.0 }
  0xf7   : > { %v499_v23 = vsel %vm297_vm1, %v472_v29, 0.0  ;;  %v473_v39 = vmul.f32 %v411_v4, %v411_v4  ;;  %v474_v42 = vmul.f32 %v770_v55, %v770_v55  ;;  %v448_v43 = vsel %vm297_vm1, %v411_v4, 0.0 }
  0xf8   : > { %v439_v18 = vadd.f32 %v438_v10, %v437_v13  ;;  %v490_v19 = vadd.f32 %v489_v14, %v488_v12  ;;  %v450_v46 = vsel %vm297_vm1, %v770_v55, 0.0  ;;  %v475_v31 = vmul.f32 %v771_v63, %v771_v63 }
  0xf9   : > { %v501_v47 = vsel %vm297_vm1, %v473_v39, 0.0  ;;  %v503_v50 = vsel %vm297_vm1, %v474_v42, 0.0  ;;  %v452_v51 = vsel %vm297_vm1, %v771_v63, 0.0 }
  0xfa   : > { %v492_v24 = vadd.f32 %v491_v15, %v490_v19  ;;  %v441_v25 = vadd.f32 %v440_v22, %v439_v18  ;;  %v505_v54 = vsel %vm297_vm1, %v475_v31, 0.0 }
  0xfc   : > { %v443_v30 = vadd.f32 %v442_v26, %v441_v25  ;;  %v494_v32 = vadd.f32 %v493_v28, %v492_v24 }
  0xfe   : > { %v496_v36 = vadd.f32 %v495_v33, %v494_v32  ;;  %v445_v37 = vadd.f32 %v444_v34, %v443_v30 }
 0x100   : > { %v447_v40 = vadd.f32 %v446_v35, %v445_v37  ;;  %v498_v41 = vadd.f32 %v497_v38, %v496_v36 }
 0x102   : > { %v500_v44 = vadd.f32 %v499_v23, %v498_v41  ;;  %v449_v45 = vadd.f32 %v448_v43, %v447_v40 }
 0x104   : > { %v451_v48 = vadd.f32 %v450_v46, %v449_v45  ;;  %v502_v49 = vadd.f32 %v501_v47, %v500_v44 }
 0x106   : > { %v453_v52 = vadd.f32 %v452_v51, %v451_v48  ;;  %v504_v53 = vadd.f32 %v503_v50, %v502_v49 }
 0x108   : > { %v454_v56 = vrot.slane %v453_v52, 4  ;;  %v506_v57 = vadd.f32 %v505_v54, %v504_v53 }
 0x10a   : > { %v455_v58 = vadd.f32 %v454_v56, %v453_v52  ;;  %v507_v59 = vrot.slane %v506_v57, 4 }
 0x10c   : > { %v456_v55 = vrot.slane %v455_v58, 2  ;;  %v508_v60 = vadd.f32 %v507_v59, %v506_v57 }
 0x10e   : > { %v457_v61 = vadd.f32 %v456_v55, %v455_v58  ;;  %v509_v62 = vrot.slane %v508_v60, 2 }
 0x110   : > { %v458_v0 = vrot.slane %v457_v61, 1  ;;  %v510_v1 = vadd.f32 %v509_v62, %v508_v60 }
 0x112   : > { %v511_v2 = vrot.slane %v510_v1, 1  ;;  %v459_v63 = vadd.f32 %v458_v0, %v457_v61 }
 0x114   : > { %v512_v3 = vadd.f32 %v511_v2, %v510_v1 }
 0x116   : > { %v514_v4 = vsel %vm513_vm3, %v459_v63, %v512_v3 }
 0x117   : > { %516 = vst.msk [vmem:[%s238_s6] sm:$0x3] %vm515_vm4, %v514_v4 }
 0x118 PF: > { %s16_s18 = sadd.s32 1, %s798_s18  }
 0x119   : > { %p13_p5 = scmp.ge.s32.totalorder %s16_s18, 6  }
 0x11b   :  { %15 = sbr.rel (!%p13_p5) target bundleno = 1 (0x1), region = 78 }

// kernel: bottleneck_forward.9
= control target key start
LH: loop header
LB: loop body
LE: loop exit
PB: predicated region body
PF: predicated region fallthrough
CT: control target
= control target key end

     0   :  { %s696_s21 = smov 0   ;;  %s858_s0 = inlined_call_operand.vmem [shape: bf16[512,16], index: 0, kind: input, shape index: {}]   ;;  %s859_s1 = inlined_call_operand.vmem [shape: bf16[512,16], index: 1, kind: input, shape index: {}]   ;;  %s860_s2 = inlined_call_operand.vmem [shape: f32[1,16], index: 2, kind: input, shape index: {}]   ;;  %s861_s3 = inlined_call_operand.vmem [shape: f32[1,16], index: 3, kind: input, shape index: {}]   ;;  %s862_s4 = inlined_call_operand.vmem [shape: f32[1,16], index: 4, kind: input, shape index: {}]   ;;  %s863_s5 = inlined_call_operand.vmem [shape: f32[1,16], index: 5, kind: input, shape index: {}]   ;;  %s864_s6 = inlined_call_operand.vmem [shape: f32[512,16], index: 6, kind: output, shape index: {}]  }
   0x1 LB: > { %s550_s22 = sadd.s32 4294967295, %s659_s21   ;;  %p554_p0 = scmp.ge.s32.totalorder %s659_s21, 1  ;;  %s659_s21 = sphi %s696_s21, %s16_s21  }
   0x2   : > { %p224_p1 = scmp.lt.s32.totalorder %s659_s21, 5 }
   0x4   : > { %p225_p2 = pnand %p554_p0, %p224_p1 }
   0x5   : > { %s555_s23 = sshll.u32 (!%p225_p2), %s550_s22, 4  ;;  %v720_v0 = vld [vmem:[%s860_s2] ss:$0 sm:$0xff] (!%p225_p2)  ;;  %vm465_vm0 = vcmask (!%p225_p2), 130048  }
   0x6   : > { %228 = sbr.rel (%p225_p2) target bundleno = 55 (0x37), region = 44  ;;  %p260_p3 = scmp.lt.s32.totalorder (!%p225_p2), %s555_s23, 63  ;;  %v725_v1 = vld [vmem:[%s862_s4] ss:$0 sm:$0xff] (!%p225_p2) }
   0x7   : > { %v734_v10 = vld [vmem:[%s861_s3] ss:$0 sm:$0xff] (!%p225_p2) }
   0x8   : > { %v739_v11 = vld [vmem:[%s863_s5] ss:$0 sm:$0xff] (!%p225_p2) }
   0xd   : > { %s866_s23 = smov (!%p260_p3, %s555_s23), 63 }
   0xe   : > { %s556_s24 = sshll.u32 %s866_s23, 2  ;;  %s560_s15 = sshll.u32 %s866_s23, 3 }
   0xf   : > { %s710_s27 = scalar_lea.vmem %s858_s0, %s556_s24  ;;  %s715_s30 = scalar_lea.vmem %s859_s1, %s556_s24 }
  0x10   : > { %v568_v2 = vld [vmem:[%s710_s27] sm:$0xff]   ;;  %v631_v4 = vld [vmem:[%s710_s27 + $0x8] sm:$0xff]   ;;  %v632_v24 = vld [vmem:[%s710_s27 + $0x10] sm:$0xff]   ;;  %s763_s18 = scalar_lea.vmem %s864_s6, %s560_s15 }
  0x11   : > { %v600_v3 = vld [vmem:[%s715_s30] sm:$0xff]   ;;  %v569_v5 = vunpack.c.l.bf16 %v568_v2  ;;  %v570_v7 = vunpack.c.h.bf16 %v568_v2  ;;  %v638_v9 = vld [vmem:[%s715_s30 + $0x8] sm:$0xff]   ;;  %v573_v12 = vunpack.c.l.bf16 %v631_v4  ;;  %v574_v14 = vunpack.c.h.bf16 %v631_v4  ;;  %v639_v25 = vld [vmem:[%s715_s30 + $0x10] sm:$0xff]  }
  0x12   : > { %v601_v6 = vunpack.c.l.bf16 %v600_v3  ;;  %v602_v8 = vunpack.c.h.bf16 %v600_v3  ;;  %v605_v13 = vunpack.c.l.bf16 %v638_v9  ;;  %v606_v15 = vunpack.c.h.bf16 %v638_v9  ;;  %v633_v42 = vld [vmem:[%s710_s27 + $0x18] sm:$0xff]   ;;  %v634_v52 = vld [vmem:[%s710_s27 + $0x20] sm:$0xff]  }
  0x13   : > { %v316_v16 = vmul.f32 %v569_v5, %v720_v0  ;;  %v317_v18 = vmul.f32 %v570_v7, %v720_v0  ;;  %v318_v20 = vmul.f32 %v573_v12, %v720_v0  ;;  %v319_v22 = vmul.f32 %v574_v14, %v720_v0  ;;  %v640_v43 = vld [vmem:[%s715_s30 + $0x18] sm:$0xff]   ;;  %v641_v57 = vld [vmem:[%s715_s30 + $0x20] sm:$0xff]   ;;  %v635_v14 = vld [vmem:[%s710_s27 + $0x28] sm:$0xff]  }
  0x14   : > { %v394_v17 = vmul.f32 %v601_v6, %v725_v1  ;;  %v395_v19 = vmul.f32 %v602_v8, %v725_v1  ;;  %v396_v21 = vmul.f32 %v605_v13, %v725_v1  ;;  %v397_v23 = vmul.f32 %v606_v15, %v725_v1  ;;  %v642_v15 = vld [vmem:[%s715_s30 + $0x28] sm:$0xff]  }
  0x15   : > { %v339_v26 = vadd.f32 %v734_v10, %v316_v16  ;;  %v340_v28 = vadd.f32 %v734_v10, %v317_v18  ;;  %v341_v30 = vadd.f32 %v734_v10, %v318_v20  ;;  %v342_v32 = vadd.f32 %v734_v10, %v319_v22 }
  0x16   : > { %v417_v27 = vadd.f32 %v739_v11, %v394_v17  ;;  %v418_v29 = vadd.f32 %v739_v11, %v395_v19  ;;  %v419_v31 = vadd.f32 %v739_v11, %v396_v21  ;;  %v420_v33 = vadd.f32 %v739_v11, %v397_v23 }
  0x17   : > { %v577_v36 = vunpack.c.l.bf16 %v632_v24  ;;  %v609_v37 = vunpack.c.l.bf16 %v639_v25  ;;  %v578_v40 = vunpack.c.h.bf16 %v632_v24  ;;  %v610_v41 = vunpack.c.h.bf16 %v639_v25 }
  0x18   : > { %v433_v34 = vadd.f32 %v417_v27, %v339_v26  ;;  %v434_v35 = vadd.f32 %v418_v29, %v340_v28  ;;  %v435_v38 = vadd.f32 %v419_v31, %v341_v30  ;;  %v436_v39 = vadd.f32 %v420_v33, %v342_v32  ;;  %v636_v32 = vld [vmem:[%s710_s27 + $0x30] sm:$0xff]  }
  0x19   : > { %v320_v46 = vmul.f32 %v577_v36, %v720_v0  ;;  %v398_v47 = vmul.f32 %v609_v37, %v725_v1  ;;  %v321_v50 = vmul.f32 %v578_v40, %v720_v0  ;;  %v399_v51 = vmul.f32 %v610_v41, %v725_v1  ;;  %v643_v37 = vld [vmem:[%s715_s30 + $0x30] sm:$0xff]  }
  0x1a   : > { %v449_v44 = vmax.f32 %v433_v34, 0.0  ;;  %v450_v45 = vmax.f32 %v434_v35, 0.0  ;;  %v451_v48 = vmax.f32 %v435_v38, 0.0  ;;  %v452_v49 = vmax.f32 %v436_v39, 0.0 }
  0x1b   : > { %v343_v53 = vadd.f32 %v734_v10, %v320_v46  ;;  %v421_v54 = vadd.f32 %v739_v11, %v398_v47  ;;  %v581_v55 = vunpack.c.l.bf16 %v633_v42  ;;  %v613_v56 = vunpack.c.l.bf16 %v640_v43  ;;  %v637_v46 = vld [vmem:[%s710_s27 + $0x38] sm:$0xff]  }
  0x1c   : > { %466 = vst.msk [vmem:[%s763_s18] sm:$0xff] %vm465_vm0, %v449_v44  ;;  %467 = vst.msk [vmem:[%s763_s18 + $0x8] sm:$0xff] %vm465_vm0, %v450_v45  ;;  %v344_v58 = vadd.f32 %v734_v10, %v321_v50  ;;  %v422_v59 = vadd.f32 %v739_v11, %v399_v51  ;;  %v582_v60 = vunpack.c.h.bf16 %v633_v42  ;;  %v614_v61 = vunpack.c.h.bf16 %v640_v43 }
  0x1d   : > { %468 = vst.msk [vmem:[%s763_s18 + $0x10] sm:$0xff] %vm465_vm0, %v451_v48  ;;  %469 = vst.msk [vmem:[%s763_s18 + $0x18] sm:$0xff] %vm465_vm0, %v452_v49  ;;  %v437_v62 = vadd.f32 %v421_v54, %v343_v53  ;;  %v322_v63 = vmul.f32 %v581_v55, %v720_v0  ;;  %v400_v2 = vmul.f32 %v613_v56, %v725_v1  ;;  %v585_v3 = vunpack.c.l.bf16 %v634_v52  ;;  %v644_v55 = vld [vmem:[%s715_s30 + $0x38] sm:$0xff]  }
  0x1e   : > { %v438_v4 = vadd.f32 %v422_v59, %v344_v58  ;;  %v323_v5 = vmul.f32 %v582_v60, %v720_v0  ;;  %v401_v6 = vmul.f32 %v614_v61, %v725_v1  ;;  %v617_v7 = vunpack.c.l.bf16 %v641_v57 }
  0x1f   : > { %v453_v8 = vmax.f32 %v437_v62, 0.0  ;;  %v345_v9 = vadd.f32 %v734_v10, %v322_v63  ;;  %v423_v12 = vadd.f32 %v739_v11, %v400_v2  ;;  %v324_v13 = vmul.f32 %v585_v3, %v720_v0 }
  0x20   : > { %v454_v16 = vmax.f32 %v438_v4, 0.0  ;;  %v346_v17 = vadd.f32 %v734_v10, %v323_v5  ;;  %v424_v18 = vadd.f32 %v739_v11, %v401_v6  ;;  %v402_v19 = vmul.f32 %v617_v7, %v725_v1 }
  0x21   : > { %470 = vst.msk [vmem:[%s763_s18 + $0x20] sm:$0xff] %vm465_vm0, %v453_v8  ;;  %v439_v20 = vadd.f32 %v423_v12, %v345_v9  ;;  %v347_v21 = vadd.f32 %v734_v10, %v324_v13  ;;  %v586_v22 = vunpack.c.h.bf16 %v634_v52  ;;  %v618_v23 = vunpack.c.h.bf16 %v641_v57 }
  0x22   : > { %471 = vst.msk [vmem:[%s763_s18 + $0x28] sm:$0xff] %vm465_vm0, %v454_v16  ;;  %v440_v24 = vadd.f32 %v424_v18, %v346_v17  ;;  %v425_v25 = vadd.f32 %v739_v11, %v402_v19  ;;  %v589_v26 = vunpack.c.l.bf16 %v635_v14  ;;  %v621_v27 = vunpack.c.l.bf16 %v642_v15 }
  0x23   : > { %v455_v28 = vmax.f32 %v439_v20, 0.0  ;;  %v325_v29 = vmul.f32 %v586_v22, %v720_v0  ;;  %v403_v30 = vmul.f32 %v618_v23, %v725_v1  ;;  %v590_v31 = vunpack.c.h.bf16 %v635_v14 }
  0x24   : > { %v456_v33 = vmax.f32 %v440_v24, 0.0  ;;  %v441_v34 = vadd.f32 %v425_v25, %v347_v21  ;;  %v326_v35 = vmul.f32 %v589_v26, %v720_v0  ;;  %v404_v36 = vmul.f32 %v621_v27, %v725_v1 }
  0x25   : > { %472 = vst.msk [vmem:[%s763_s18 + $0x30] sm:$0xff] %vm465_vm0, %v455_v28  ;;  %v348_v38 = vadd.f32 %v734_v10, %v325_v29  ;;  %v426_v39 = vadd.f32 %v739_v11, %v403_v30  ;;  %v327_v40 = vmul.f32 %v590_v31, %v720_v0  ;;  %v622_v41 = vunpack.c.h.bf16 %v642_v15 }
  0x26   : > { %473 = vst.msk [vmem:[%s763_s18 + $0x38] sm:$0xff] %vm465_vm0, %v456_v33  ;;  %v457_v42 = vmax.f32 %v441_v34, 0.0  ;;  %v349_v43 = vadd.f32 %v734_v10, %v326_v35  ;;  %v427_v44 = vadd.f32 %v739_v11, %v404_v36  ;;  %v593_v45 = vunpack.c.l.bf16 %v636_v32 }
  0x27   : > { %v442_v47 = vadd.f32 %v426_v39, %v348_v38  ;;  %v350_v48 = vadd.f32 %v734_v10, %v327_v40  ;;  %v405_v49 = vmul.f32 %v622_v41, %v725_v1  ;;  %v625_v50 = vunpack.c.l.bf16 %v643_v37 }
  0x28   : > { %474 = vst.msk [vmem:[%s763_s18 + $0x40] sm:$0xff] %vm465_vm0, %v457_v42  ;;  %v443_v51 = vadd.f32 %v427_v44, %v349_v43  ;;  %v328_v52 = vmul.f32 %v593_v45, %v720_v0  ;;  %v594_v53 = vunpack.c.h.bf16 %v636_v32  ;;  %v626_v54 = vunpack.c.h.bf16 %v643_v37 }
  0x29   : > { %v458_v56 = vmax.f32 %v442_v47, 0.0  ;;  %v428_v57 = vadd.f32 %v739_v11, %v405_v49  ;;  %v406_v58 = vmul.f32 %v625_v50, %v725_v1  ;;  %v597_v59 = vunpack.c.l.bf16 %v637_v46 }
  0x2a   : > { %v459_v60 = vmax.f32 %v443_v51, 0.0  ;;  %v351_v61 = vadd.f32 %v734_v10, %v328_v52  ;;  %v329_v62 = vmul.f32 %v594_v53, %v720_v0  ;;  %v407_v63 = vmul.f32 %v626_v54, %v725_v1 }
  0x2b   : > { %475 = vst.msk [vmem:[%s763_s18 + $0x48] sm:$0xff] %vm465_vm0, %v458_v56  ;;  %v444_v2 = vadd.f32 %v428_v57, %v350_v48  ;;  %v429_v3 = vadd.f32 %v739_v11, %v406_v58  ;;  %v330_v4 = vmul.f32 %v597_v59, %v720_v0  ;;  %v629_v5 = vunpack.c.l.bf16 %v644_v55 }
  0x2c   : > { %476 = vst.msk [vmem:[%s763_s18 + $0x50] sm:$0xff] %vm465_vm0, %v459_v60  ;;  %v352_v6 = vadd.f32 %v734_v10, %v329_v62  ;;  %v430_v7 = vadd.f32 %v739_v11, %v407_v63  ;;  %v598_v8 = vunpack.c.h.bf16 %v637_v46  ;;  %v630_v9 = vunpack.c.h.bf16 %v644_v55 }
  0x2d   : > { %v460_v12 = vmax.f32 %v444_v2, 0.0  ;;  %v445_v13 = vadd.f32 %v429_v3, %v351_v61  ;;  %v353_v14 = vadd.f32 %v734_v10, %v330_v4  ;;  %v408_v15 = vmul.f32 %v629_v5, %v725_v1 }
  0x2e   : > { %v446_v16 = vadd.f32 %v430_v7, %v352_v6  ;;  %v331_v17 = vmul.f32 %v598_v8, %v720_v0  ;;  %v409_v18 = vmul.f32 %v630_v9, %v725_v1 }
  0x2f   : > { %477 = vst.msk [vmem:[%s763_s18 + $0x58] sm:$0xff] %vm465_vm0, %v460_v12  ;;  %v461_v19 = vmax.f32 %v445_v13, 0.0  ;;  %v431_v20 = vadd.f32 %v739_v11, %v408_v15 }
  0x30   : > { %v462_v21 = vmax.f32 %v446_v16, 0.0  ;;  %v354_v22 = vadd.f32 %v734_v10, %v331_v17  ;;  %v432_v23 = vadd.f32 %v739_v11, %v409_v18 }
  0x31   : > { %478 = vst.msk [vmem:[%s763_s18 + $0x60] sm:$0xff] %vm465_vm0, %v461_v19  ;;  %v447_v24 = vadd.f32 %v431_v20, %v353_v14 }
  0x32   : > { %479 = vst.msk [vmem:[%s763_s18 + $0x68] sm:$0xff] %vm465_vm0, %v462_v21  ;;  %v448_v25 = vadd.f32 %v432_v23, %v354_v22 }
  0x33   : > { %v463_v26 = vmax.f32 %v447_v24, 0.0 }
  0x34   : > { %v464_v0 = vmax.f32 %v448_v25, 0.0 }
  0x35   : > { %480 = vst.msk [vmem:[%s763_s18 + $0x70] sm:$0xff] %vm465_vm0, %v463_v26 }
  0x36   : > { %481 = vst.msk [vmem:[%s763_s18 + $0x78] sm:$0xff] %vm465_vm0, %v464_v0 }
  0x37 PF: > { %s16_s21 = sadd.s32 1, %s659_s21  }
  0x38   : > { %p13_p4 = scmp.ge.s32.totalorder %s16_s21, 6  }
  0x3a   :  { %15 = sbr.rel (!%p13_p4) target bundleno = 1 (0x1), region = 77 }

// kernel: bottleneck_forward.6
= control target key start
LH: loop header
LB: loop body
LE: loop exit
PB: predicated region body
PF: predicated region fallthrough
CT: control target
= control target key end

     0   :  { %s4492_s18 = smov 0   ;;  %s4494_s19 = smov 0   ;;  %s5792_s0 = inlined_call_operand.vmem [shape: bf16[2,16,16,4], index: 0, kind: input, shape index: {}]   ;;  %s5793_s1 = inlined_call_operand.vmem [shape: f32[1,4], index: 1, kind: input, shape index: {}]   ;;  %s5794_s2 = inlined_call_operand.vmem [shape: f32[1,4], index: 2, kind: input, shape index: {}]   ;;  %s5795_s3 = inlined_call_operand.vmem [shape: bf16[9,4,4], index: 3, kind: input, shape index: {}]   ;;  %s5796_s4 = inlined_call_operand.vmem [shape: bf16[2,16,16,4], index: 4, kind: output, shape index: {0}]   ;;  %s5797_s5 = inlined_call_operand.vmem [shape: f32[2,2,2,4], index: 5, kind: output, shape index: {1}]  }
   0x1   :  { %s4496_s20 = smov 0   ;;  %s4498_s21 = smov 0  }
   0x2   :  { %s4500_s22 = smov 0  }
   0x3 LB: > { %s25_s23 = sadd.s32 1, %s4451_s20  ;;  %s28_s24 = sadd.s32 1, %s4455_s21  ;;  %s4459_s22 = sphi %s4500_s22, %s16_s22   ;;  %s4455_s21 = sphi %s4498_s21, %s5880_s21   ;;  %s4451_s20 = sphi %s4496_s20, %s5879_s20   ;;  %s4447_s19 = sphi %s4494_s19, %s5878_s19   ;;  %s4443_s18 = sphi %s4492_s18, %s5877_s18  }
   0x4   : > { %p26_p0 = scmp.ge.s32.totalorder %s25_s23, 2  ;;  %p3566_p1 = scmp.ge.s32.totalorder %s4459_s22, 1 }
   0x5   : > { %p206_p2 = scmp.lt.s32.totalorder %s4459_s22, 5 }
   0x6   : > { %s5882_s23 = smov (%p26_p0, %s25_s23), 0  ;;  %s5884_s24 = smov (!%p26_p0, %s28_s24), %s4455_s21 }
   0x7   : > { %p207_p3 = pnand %p3566_p1, %p206_p2  ;;  %p30_p4 = scmp.ge.s32.totalorder %s5884_s24, 2 }
   0x9   : > { %s5886_s24 = smov (%p30_p4, %s5884_s24), 0  ;;  %210 = sbr.rel (%p207_p3) target bundleno = 528 (0x210), region = 36 }
   0xa   : > { %5818 = sst [smem:[#allocation3_spill]] %s5886_s24 }
  0x10   : > { %p247_p5 = scmp.lt.s32.totalorder %s4447_s19, 1  ;;  %s3569_s25 = sshll.u32 %s4443_s18, 3 }
  0x11   : > { %p255_p6 = scmp.lt.s32.totalorder %s3569_s25, 15  ;;  %p265_p7 = scmp.lt.s32.totalorder %s4443_s18, 1 }
  0x12   : > { %s5888_s19 = smov (!%p247_p5, %s4447_s19), 1  ;;  %p3575_p8 = scmp.ne.s32.totalorder %s4443_s18, 0 }
  0x13   : > { %s5890_s25 = smov (!%p255_p6, %s3569_s25), 15  ;;  %s3867_s26 = sshll.u32 %s5888_s19, 7  ;;  %vm466_vm0 = vcmask (!%p3575_p8), 27648   ;;  %vm469_vm1 = vcmask (!%p3575_p8), 24576   ;;  %v4547_v1 = vld [vmem:[%s5793_s1] ss:$0 sm:$0xff] (!%p3575_p8) }
  0x14   : > { %s3571_s27 = sshll.u32 %s5888_s19, 5  ;;  %s4529_s30 = scalar_lea.vmem %s5792_s0, %s3867_s26  ;;  %v4461_v2 = vmov (!%p3575_p8), 0   ;;  %v4558_v5 = vld [vmem:[%s5794_s2] ss:$0 sm:$0xff] (!%p3575_p8)  ;;  %vm619_vm2 = vcmask (!%p3575_p8), 1040384  }
  0x15   : > { %s3570_s6 = sshll.u32 %s5890_s25, 1  ;;  %s3573_s12 = sshll.u32 %s5888_s19, 1  ;;  %v3886_v0 = vld [vmem:[%s4529_s30] sm:$0xff] (!%p3575_p8)   ;;  %467 = vst.msk [vmem:[#allocation2] sm:$0xf] (!%p3575_p8), %vm466_vm0, %v4461_v2  ;;  %v3949_v6 = vld [vmem:[%s4529_s30 + $0x8] sm:$0xff] (!%p3575_p8)  }
  0x16   : > { %s259_s7 = sadd.s32 %s3571_s27, %s3570_s6  ;;  %468 = vst.msk [vmem:[#allocation2 + $0x4] sm:$0xf] (!%p3575_p8), %vm466_vm0, %v4461_v2  ;;  %472 = vst.msk [vmem:[#allocation2 + $0xcc] sm:$0xf] (!%p3575_p8), %vm466_vm0, %v4461_v2  ;;  %v3887_v3 = vunpack.c.l.bf16 (!%p3575_p8), %v3886_v0  ;;  %v3888_v4 = vunpack.c.h.bf16 (!%p3575_p8), %v3886_v0  ;;  %vm620_vm3 = vsmask.f32 (!%p3575_p8), 256  ;;  %v3891_v7 = vunpack.c.l.bf16 (!%p3575_p8), %v3949_v6 }
  0x17   : > { %s3572_s8 = sshll.u32 %s259_s7, 2  ;;  %275 = sbr.rel (%p3575_p8) target bundleno = 104 (0x68), region = 40  ;;  %473 = vst.msk [vmem:[#allocation2 + $0xd0] sm:$0xf] (!%p3575_p8), %vm466_vm0, %v4461_v2  ;;  %v3892_v8 = vunpack.c.h.bf16 (!%p3575_p8), %v3949_v6  ;;  %v3950_v9 = vld [vmem:[%s4529_s30 + $0x10] sm:$0xff] (!%p3575_p8)   ;;  %v3951_v10 = vld [vmem:[%s4529_s30 + $0x18] sm:$0xff] (!%p3575_p8)   ;;  %vm4583_vm4 = vmand (!%p3575_p8), %vm619_vm2, %vm620_vm3 }
  0x18   : > { %s4534_s11 = scalar_lea.vmem %s5796_s4, %s3572_s8  ;;  %470 = vst.msk [vmem:[#allocation2 + $0x8] sm:$0x1] (!%p3575_p8), %vm469_vm1, %v4461_v2  ;;  %474 = vst.msk [vmem:[#allocation2 + $0xd4] sm:$0x1] (!%p3575_p8), %vm469_vm1, %v4461_v2  ;;  %v347_v11 = vmul.f32 (!%p3575_p8), %v3887_v3, %v4547_v1  ;;  %v348_v12 = vmul.f32 (!%p3575_p8), %v3888_v4, %v4547_v1  ;;  %v3895_v13 = vunpack.c.l.bf16 (!%p3575_p8), %v3950_v9  ;;  %v3896_v14 = vunpack.c.h.bf16 (!%p3575_p8), %v3950_v9  ;;  %v3952_v27 = vld [vmem:[%s4529_s30 + $0x20] sm:$0xff] (!%p3575_p8)  }
  0x19   : > { %s266_s13 = scalar_select %p265_p7, %s4443_s18, 1 }
  0x1a   : > { %v349_v15 = vmul.f32 (!%p3575_p8), %v3891_v7, %v4547_v1  ;;  %v350_v16 = vmul.f32 (!%p3575_p8), %v3892_v8, %v4547_v1  ;;  %v3899_v17 = vunpack.c.l.bf16 (!%p3575_p8), %v3951_v10  ;;  %v3900_v18 = vunpack.c.h.bf16 (!%p3575_p8), %v3951_v10 }
  0x1b   : > { %s268_s14 = sadd.s32 %s3573_s12, %s266_s13  ;;  %v386_v19 = vadd.f32 (!%p3575_p8), %v4558_v5, %v347_v11  ;;  %v387_v20 = vadd.f32 (!%p3575_p8), %v4558_v5, %v348_v12  ;;  %v351_v21 = vmul.f32 (!%p3575_p8), %v3895_v13, %v4547_v1  ;;  %v352_v22 = vmul.f32 (!%p3575_p8), %v3896_v14, %v4547_v1 }
  0x1c   : > { %s3574_s15 = sshll.u32 %s268_s14, 1  ;;  %v388_v23 = vadd.f32 (!%p3575_p8), %v4558_v5, %v349_v15  ;;  %v389_v24 = vadd.f32 (!%p3575_p8), %v4558_v5, %v350_v16  ;;  %v353_v25 = vmul.f32 (!%p3575_p8), %v3899_v17, %v4547_v1  ;;  %v354_v26 = vmul.f32 (!%p3575_p8), %v3900_v18, %v4547_v1  ;;  %v3953_v15 = vld [vmem:[%s4529_s30 + $0x28] sm:$0xff] (!%p3575_p8)  }
  0x1d   : > { %s4540_s24 = scalar_lea.vmem %s5797_s5, %s3574_s15  ;;  %v418_v28 = vmax.f32 (!%p3575_p8), %v386_v19, 0.0  ;;  %v419_v29 = vmax.f32 (!%p3575_p8), %v387_v20, 0.0  ;;  %v390_v30 = vadd.f32 (!%p3575_p8), %v4558_v5, %v351_v21  ;;  %v391_v31 = vadd.f32 (!%p3575_p8), %v4558_v5, %v352_v22  ;;  %v3954_v20 = vld [vmem:[%s4529_s30 + $0x30] sm:$0xff] (!%p3575_p8)  }
  0x1e   : > { %v420_v32 = vmax.f32 %v388_v23, 0.0  ;;  %v421_v33 = vmax.f32 %v389_v24, 0.0  ;;  %v392_v34 = vadd.f32 %v4558_v5, %v353_v25  ;;  %v393_v35 = vadd.f32 %v4558_v5, %v354_v26  ;;  %v3955_v25 = vld [vmem:[%s4529_s30 + $0x38] sm:$0xff]  }
  0x1f   : > { %v450_v36 = vpack.c.bf16 %v419_v29, %v418_v28  ;;  %v422_v37 = vmax.f32 %v390_v30, 0.0  ;;  %v423_v38 = vmax.f32 %v391_v31, 0.0  ;;  %v3903_v39 = vunpack.c.l.bf16 %v3952_v27 }
  0x20   : > { %v451_v40 = vpack.c.bf16 %v421_v33, %v420_v32  ;;  %v424_v41 = vmax.f32 %v392_v34, 0.0  ;;  %v425_v42 = vmax.f32 %v393_v35, 0.0  ;;  %v3904_v43 = vunpack.c.h.bf16 %v3952_v27 }
  0x21   : > { %v476_v44 = vshrl.u32 %v450_v36, 16  ;;  %v479_v45 = vshll.u32 %v450_v36, 16  ;;  %v452_v46 = vpack.c.bf16 %v423_v38, %v422_v37  ;;  %v355_v47 = vmul.f32 %v3903_v39, %v4547_v1  ;;  %v3956_v38 = vld [vmem:[%s4529_s30 + $0x40] sm:$0xff]  }
  0x22   : > { %v483_v49 = vshrl.u32 %v451_v40, 16  ;;  %v486_v50 = vshll.u32 %v451_v40, 16  ;;  %v453_v51 = vpack.c.bf16 %v425_v42, %v424_v41  ;;  %v356_v52 = vmul.f32 %v3904_v43, %v4547_v1 }
  0x23   : > { %v478_v53 = vrot.slane %v476_v44, 7  ;;  %v490_v54 = vshrl.u32 %v452_v46, 16  ;;  %v493_v55 = vshll.u32 %v452_v46, 16  ;;  %v394_v56 = vadd.f32 %v4558_v5, %v355_v47 }
  0x24   : > { %v485_v57 = vrot.slane %v483_v49, 7  ;;  %v497_v58 = vshrl.u32 %v453_v51, 16  ;;  %v500_v59 = vshll.u32 %v453_v51, 16  ;;  %v395_v60 = vadd.f32 %v4558_v5, %v356_v52 }
  0x25   : > { %v481_v61 = vor.u32 %v479_v45, %v478_v53  ;;  %v638_v62 = vsel %vm4583_vm4, %v478_v53, 0  ;;  %v492_v63 = vrot.slane %v490_v54, 7  ;;  %v426_v0 = vmax.f32 %v394_v56, 0.0 }
  0x26   : > { %v3580_v2 = vcombine.low %v638_v62, %v638_v62  ;;  %v488_v3 = vor.u32 %v486_v50, %v485_v57  ;;  %v639_v4 = vsel %vm4583_vm4, %v485_v57, 0  ;;  %v499_v6 = vrot.slane %v497_v58, 7 }
  0x27   : > { %v622_v7 = vsel %vm4583_vm4, 0, %v481_v61  ;;  %v3583_v8 = vcombine.low %v639_v4, %v639_v4  ;;  %v495_v9 = vor.u32 %v493_v55, %v492_v63  ;;  %v640_v10 = vsel %vm4583_vm4, %v492_v63, 0 }
  0x28   : > { %v3578_v11 = vcombine.low %v622_v7, %v622_v7  ;;  %v3579_v12 = vcombine.high %v622_v7, %v622_v7  ;;  %833 = vst.msk [vmem:[#allocation2 + $0x14] sm:$0x1] %vm469_vm1, %v3580_v2  ;;  %v623_v13 = vsel %vm4583_vm4, 0, %v488_v3  ;;  %v3586_v14 = vcombine.low %v640_v10, %v640_v10  ;;  %v4641_v7 = vld [vmem:[%s4529_s30 + $0x50] sm:$0xff]  }
  0x29   : > { %v3581_v16 = vcombine.low %v623_v13, %v623_v13  ;;  %v3582_v17 = vcombine.high %v623_v13, %v623_v13  ;;  %836 = vst.msk [vmem:[#allocation2 + $0x20] sm:$0x1] %vm469_vm1, %v3583_v8  ;;  %v624_v18 = vsel %vm4583_vm4, 0, %v495_v9  ;;  %v502_v19 = vor.u32 %v500_v59, %v499_v6 }
  0x2a   : > { %831 = vst.msk [vmem:[#allocation2 + $0xc] sm:$0xf] %vm466_vm0, %v3578_v11  ;;  %832 = vst.msk [vmem:[#allocation2 + $0x10] sm:$0xf] %vm466_vm0, %v3579_v12  ;;  %v3584_v21 = vcombine.low %v624_v18, %v624_v18  ;;  %v3585_v22 = vcombine.high %v624_v18, %v624_v18  ;;  %v641_v23 = vsel %vm4583_vm4, %v499_v6, 0  ;;  %v427_v24 = vmax.f32 %v395_v60, 0.0 }
  0x2b   : > { %839 = vst.msk [vmem:[#allocation2 + $0x2c] sm:$0x1] %vm469_vm1, %v3586_v14  ;;  %v625_v26 = vsel %vm4583_vm4, 0, %v502_v19  ;;  %v3589_v27 = vcombine.low %v641_v23, %v641_v23  ;;  %v3907_v28 = vunpack.c.l.bf16 %v3953_v15  ;;  %v3908_v29 = vunpack.c.h.bf16 %v3953_v15  ;;  %v3957_v6 = vld [vmem:[%s4529_s30 + $0x48] sm:$0xff]  }
  0x2c   : > { %834 = vst.msk [vmem:[#allocation2 + $0x18] sm:$0xf] %vm466_vm0, %v3581_v16  ;;  %835 = vst.msk [vmem:[#allocation2 + $0x1c] sm:$0xf] %vm466_vm0, %v3582_v17  ;;  %v3587_v30 = vcombine.low %v625_v26, %v625_v26  ;;  %v3588_v31 = vcombine.high %v625_v26, %v625_v26  ;;  %v454_v32 = vpack.c.bf16 %v427_v24, %v426_v0  ;;  %v3911_v33 = vunpack.c.l.bf16 %v3954_v20 }
  0x2d   : > { %837 = vst.msk [vmem:[#allocation2 + $0x24] sm:$0xf] %vm466_vm0, %v3584_v21  ;;  %838 = vst.msk [vmem:[#allocation2 + $0x28] sm:$0xf] %vm466_vm0, %v3585_v22  ;;  %v357_v34 = vmul.f32 %v3907_v28, %v4547_v1  ;;  %v358_v35 = vmul.f32 %v3908_v29, %v4547_v1  ;;  %v3912_v36 = vunpack.c.h.bf16 %v3954_v20  ;;  %v3915_v37 = vunpack.c.l.bf16 %v3955_v25 }
  0x2e   : > { %842 = vst.msk [vmem:[#allocation2 + $0x38] sm:$0x1] %vm469_vm1, %v3589_v27  ;;  %v504_v39 = vshrl.u32 %v454_v32, 16  ;;  %v507_v40 = vshll.u32 %v454_v32, 16  ;;  %v359_v41 = vmul.f32 %v3911_v33, %v4547_v1  ;;  %v3916_v42 = vunpack.c.h.bf16 %v3955_v25 }
  0x2f   : > { %840 = vst.msk [vmem:[#allocation2 + $0x30] sm:$0xf] %vm466_vm0, %v3587_v30  ;;  %841 = vst.msk [vmem:[#allocation2 + $0x34] sm:$0xf] %vm466_vm0, %v3588_v31  ;;  %v396_v43 = vadd.f32 %v4558_v5, %v357_v34  ;;  %v397_v44 = vadd.f32 %v4558_v5, %v358_v35  ;;  %v360_v45 = vmul.f32 %v3912_v36, %v4547_v1  ;;  %v3919_v51 = vunpack.c.l.bf16 %v3956_v38 }
  0x30   : > { %v361_v46 = vmul.f32 %v3915_v37, %v4547_v1  ;;  %v506_v47 = vrot.slane %v504_v39, 7  ;;  %v398_v49 = vadd.f32 %v4558_v5, %v359_v41  ;;  %v362_v50 = vmul.f32 %v3916_v42, %v4547_v1 }
  0x31   : > { %v428_v52 = vmax.f32 %v396_v43, 0.0  ;;  %v429_v53 = vmax.f32 %v397_v44, 0.0  ;;  %v399_v54 = vadd.f32 %v4558_v5, %v360_v45  ;;  %v3920_v3 = vunpack.c.h.bf16 %v3956_v38 }
  0x32   : > { %v400_v55 = vadd.f32 %v4558_v5, %v361_v46  ;;  %v509_v56 = vor.u32 %v507_v40, %v506_v47  ;;  %v642_v57 = vsel %vm4583_vm4, %v506_v47, 0  ;;  %v430_v58 = vmax.f32 %v398_v49, 0.0 }
  0x33   : > { %v401_v59 = vadd.f32 %v4558_v5, %v362_v50  ;;  %v3592_v60 = vcombine.low %v642_v57, %v642_v57  ;;  %v455_v61 = vpack.c.bf16 %v429_v53, %v428_v52  ;;  %v431_v62 = vmax.f32 %v399_v54, 0.0  ;;  %v3959_v53 = vld [vmem:[%s4529_s30 + $0x58] sm:$0xff]   ;;  %v3960_v54 = vld [vmem:[%s4529_s30 + $0x60] sm:$0xff]  }
  0x34   : > { %v432_v63 = vmax.f32 %v400_v55, 0.0  ;;  %v626_v0 = vsel %vm4583_vm4, 0, %v509_v56  ;;  %v363_v4 = vmul.f32 %v3919_v51, %v4547_v1  ;;  %v364_v14 = vmul.f32 %v3920_v3, %v4547_v1 }
  0x35   : > { %v433_v2 = vmax.f32 %v401_v59, 0.0  ;;  %v3590_v8 = vcombine.low %v626_v0, %v626_v0  ;;  %v3591_v9 = vcombine.high %v626_v0, %v626_v0  ;;  %845 = vst.msk [vmem:[#allocation2 + $0x44] sm:$0x1] %vm469_vm1, %v3592_v60  ;;  %v511_v10 = vshrl.u32 %v455_v61, 16 }
  0x36   : > { %v514_v11 = vshll.u32 %v455_v61, 16  ;;  %v456_v12 = vpack.c.bf16 %v431_v62, %v430_v58  ;;  %v402_v15 = vadd.f32 %v4558_v5, %v363_v4  ;;  %v3923_v17 = vunpack.c.l.bf16 %v3957_v6 }
  0x37   : > { %v457_v13 = vpack.c.bf16 %v433_v2, %v432_v63  ;;  %843 = vst.msk [vmem:[#allocation2 + $0x3c] sm:$0xf] %vm466_vm0, %v3590_v8  ;;  %844 = vst.msk [vmem:[#allocation2 + $0x40] sm:$0xf] %vm466_vm0, %v3591_v9  ;;  %v513_v16 = vrot.slane %v511_v10, 7  ;;  %v3924_v18 = vunpack.c.h.bf16 %v3957_v6  ;;  %v3927_v19 = vunpack.c.l.bf16 %v4641_v7 }
  0x38   : > { %v518_v20 = vshrl.u32 %v456_v12, 16  ;;  %v521_v21 = vshll.u32 %v456_v12, 16  ;;  %v403_v26 = vadd.f32 %v4558_v5, %v364_v14  ;;  %v434_v27 = vmax.f32 %v402_v15, 0.0 }
  0x39   : > { %v525_v22 = vshrl.u32 %v457_v13, 16  ;;  %v528_v23 = vshll.u32 %v457_v13, 16  ;;  %v516_v24 = vor.u32 %v514_v11, %v513_v16  ;;  %v643_v25 = vsel %vm4583_vm4, %v513_v16, 0 }
  0x3a   : > { %v3595_v28 = vcombine.low %v643_v25, %v643_v25  ;;  %v520_v29 = vrot.slane %v518_v20, 7  ;;  %v365_v31 = vmul.f32 %v3923_v17, %v4547_v1  ;;  %v435_v33 = vmax.f32 %v403_v26, 0.0  ;;  %v3961_v17 = vld [vmem:[%s4529_s30 + $0x68] sm:$0xff]  }
  0x3b   : > { %v527_v30 = vrot.slane %v525_v22, 7  ;;  %v627_v32 = vsel %vm4583_vm4, 0, %v516_v24  ;;  %v366_v34 = vmul.f32 %v3924_v18, %v4547_v1  ;;  %v3928_v35 = vunpack.c.h.bf16 %v4641_v7 }
  0x3c   : > { %v3593_v36 = vcombine.low %v627_v32, %v627_v32  ;;  %v3594_v37 = vcombine.high %v627_v32, %v627_v32  ;;  %848 = vst.msk [vmem:[#allocation2 + $0x50] sm:$0x1] %vm469_vm1, %v3595_v28  ;;  %v523_v38 = vor.u32 %v521_v21, %v520_v29  ;;  %v644_v39 = vsel %vm4583_vm4, %v520_v29, 0 }
  0x3d   : > { %v3598_v40 = vcombine.low %v644_v39, %v644_v39  ;;  %v530_v41 = vor.u32 %v528_v23, %v527_v30  ;;  %v645_v42 = vsel %vm4583_vm4, %v527_v30, 0  ;;  %v458_v43 = vpack.c.bf16 %v435_v33, %v434_v27 }
  0x3e   : > { %846 = vst.msk [vmem:[#allocation2 + $0x48] sm:$0xf] %vm466_vm0, %v3593_v36  ;;  %847 = vst.msk [vmem:[#allocation2 + $0x4c] sm:$0xf] %vm466_vm0, %v3594_v37  ;;  %v628_v44 = vsel %vm4583_vm4, 0, %v523_v38  ;;  %v3601_v45 = vcombine.low %v645_v42, %v645_v42  ;;  %v404_v46 = vadd.f32 %v4558_v5, %v365_v31  ;;  %v405_v47 = vadd.f32 %v4558_v5, %v366_v34  ;;  %v3962_v42 = vld [vmem:[%s4529_s30 + $0x70] sm:$0xff]  }
  0x3f   : > { %v3596_v49 = vcombine.low %v628_v44, %v628_v44  ;;  %v3597_v50 = vcombine.high %v628_v44, %v628_v44  ;;  %851 = vst.msk [vmem:[#allocation2 + $0x5c] sm:$0x1] %vm469_vm1, %v3598_v40  ;;  %v629_v51 = vsel %vm4583_vm4, 0, %v530_v41  ;;  %v532_v52 = vshrl.u32 %v458_v43, 16 }
  0x40   : > { %v3599_v55 = vcombine.low %v629_v51, %v629_v51  ;;  %v3600_v56 = vcombine.high %v629_v51, %v629_v51  ;;  %854 = vst.msk [vmem:[#allocation2 + $0x68] sm:$0x1] %vm469_vm1, %v3601_v45  ;;  %v535_v57 = vshll.u32 %v458_v43, 16  ;;  %v436_v58 = vmax.f32 %v404_v46, 0.0 }
  0x41   : > { %849 = vst.msk [vmem:[#allocation2 + $0x54] sm:$0xf] %vm466_vm0, %v3596_v49  ;;  %850 = vst.msk [vmem:[#allocation2 + $0x58] sm:$0xf] %vm466_vm0, %v3597_v50  ;;  %v534_v59 = vrot.slane %v532_v52, 7  ;;  %v437_v60 = vmax.f32 %v405_v47, 0.0  ;;  %v367_v61 = vmul.f32 %v3927_v19, %v4547_v1  ;;  %v368_v62 = vmul.f32 %v3928_v35, %v4547_v1 }
  0x42   : > { %852 = vst.msk [vmem:[#allocation2 + $0x60] sm:$0xf] %vm466_vm0, %v3599_v55  ;;  %853 = vst.msk [vmem:[#allocation2 + $0x64] sm:$0xf] %vm466_vm0, %v3600_v56  ;;  %v3931_v63 = vunpack.c.l.bf16 %v3959_v53  ;;  %v3932_v0 = vunpack.c.h.bf16 %v3959_v53  ;;  %v3935_v2 = vunpack.c.l.bf16 %v3960_v54  ;;  %v3936_v3 = vunpack.c.h.bf16 %v3960_v54 }
  0x43   : > { %v537_v4 = vor.u32 %v535_v57, %v534_v59  ;;  %v646_v6 = vsel %vm4583_vm4, %v534_v59, 0  ;;  %v459_v7 = vpack.c.bf16 %v437_v60, %v436_v58  ;;  %v406_v8 = vadd.f32 %v4558_v5, %v367_v61 }
  0x44   : > { %v3604_v9 = vcombine.low %v646_v6, %v646_v6  ;;  %v407_v10 = vadd.f32 %v4558_v5, %v368_v62  ;;  %v369_v11 = vmul.f32 %v3931_v63, %v4547_v1  ;;  %v370_v12 = vmul.f32 %v3932_v0, %v4547_v1  ;;  %v3963_v0 = vld [vmem:[%s4529_s30 + $0x78] sm:$0xff]  }
  0x45   : > { %v630_v13 = vsel %vm4583_vm4, 0, %v537_v4  ;;  %v539_v14 = vshrl.u32 %v459_v7, 16  ;;  %v542_v15 = vshll.u32 %v459_v7, 16  ;;  %v438_v16 = vmax.f32 %v406_v8, 0.0 }
  0x46   : > { %v3602_v18 = vcombine.low %v630_v13, %v630_v13  ;;  %v3603_v19 = vcombine.high %v630_v13, %v630_v13  ;;  %857 = vst.msk [vmem:[#allocation2 + $0x74] sm:$0x1] %vm469_vm1, %v3604_v9  ;;  %v439_v20 = vmax.f32 %v407_v10, 0.0  ;;  %v408_v21 = vadd.f32 %v4558_v5, %v369_v11 }
  0x47   : > { %v541_v22 = vrot.slane %v539_v14, 7  ;;  %v409_v23 = vadd.f32 %v4558_v5, %v370_v12  ;;  %v371_v24 = vmul.f32 %v3935_v2, %v4547_v1  ;;  %v372_v25 = vmul.f32 %v3936_v3, %v4547_v1 }
  0x48   : > { %855 = vst.msk [vmem:[#allocation2 + $0x6c] sm:$0xf] %vm466_vm0, %v3602_v18  ;;  %856 = vst.msk [vmem:[#allocation2 + $0x70] sm:$0xf] %vm466_vm0, %v3603_v19  ;;  %v460_v26 = vpack.c.bf16 %v439_v20, %v438_v16  ;;  %v440_v27 = vmax.f32 %v408_v21, 0.0  ;;  %v3939_v28 = vunpack.c.l.bf16 %v3961_v17  ;;  %v3940_v29 = vunpack.c.h.bf16 %v3961_v17 }
  0x49   : > { %v544_v30 = vor.u32 %v542_v15, %v541_v22  ;;  %v647_v31 = vsel %vm4583_vm4, %v541_v22, 0  ;;  %v441_v32 = vmax.f32 %v409_v23, 0.0  ;;  %v410_v33 = vadd.f32 %v4558_v5, %v371_v24 }
  0x4a   : > { %v3607_v34 = vcombine.low %v647_v31, %v647_v31  ;;  %v546_v35 = vshrl.u32 %v460_v26, 16  ;;  %v549_v36 = vshll.u32 %v460_v26, 16  ;;  %v411_v37 = vadd.f32 %v4558_v5, %v372_v25 }
  0x4b   : > { %v631_v38 = vsel %vm4583_vm4, 0, %v544_v30  ;;  %v461_v39 = vpack.c.bf16 %v441_v32, %v440_v27  ;;  %v442_v40 = vmax.f32 %v410_v33, 0.0  ;;  %v373_v41 = vmul.f32 %v3939_v28, %v4547_v1 }
  0x4c   : > { %v3605_v43 = vcombine.low %v631_v38, %v631_v38  ;;  %v3606_v44 = vcombine.high %v631_v38, %v631_v38  ;;  %860 = vst.msk [vmem:[#allocation2 + $0x80] sm:$0x1] %vm469_vm1, %v3607_v34  ;;  %v548_v45 = vrot.slane %v546_v35, 7  ;;  %v443_v46 = vmax.f32 %v411_v37, 0.0 }
  0x4d   : > { %v553_v47 = vshrl.u32 %v461_v39, 16  ;;  %v556_v49 = vshll.u32 %v461_v39, 16  ;;  %v374_v50 = vmul.f32 %v3940_v29, %v4547_v1  ;;  %v412_v51 = vadd.f32 %v4558_v5, %v373_v41 }
  0x4e   : > { %858 = vst.msk [vmem:[#allocation2 + $0x78] sm:$0xf] %vm466_vm0, %v3605_v43  ;;  %859 = vst.msk [vmem:[#allocation2 + $0x7c] sm:$0xf] %vm466_vm0, %v3606_v44  ;;  %v551_v52 = vor.u32 %v549_v36, %v548_v45  ;;  %v648_v53 = vsel %vm4583_vm4, %v548_v45, 0  ;;  %v462_v54 = vpack.c.bf16 %v443_v46, %v442_v40  ;;  %v3943_v55 = vunpack.c.l.bf16 %v3962_v42 }
  0x4f   : > { %v3610_v56 = vcombine.low %v648_v53, %v648_v53  ;;  %v555_v57 = vrot.slane %v553_v47, 7  ;;  %v413_v58 = vadd.f32 %v4558_v5, %v374_v50  ;;  %v444_v59 = vmax.f32 %v412_v51, 0.0 }
  0x50   : > { %v632_v60 = vsel %vm4583_vm4, 0, %v551_v52  ;;  %v560_v61 = vshrl.u32 %v462_v54, 16  ;;  %v563_v62 = vshll.u32 %v462_v54, 16  ;;  %v3944_v63 = vunpack.c.h.bf16 %v3962_v42 }
  0x51   : > { %v3608_v2 = vcombine.low %v632_v60, %v632_v60  ;;  %v3609_v3 = vcombine.high %v632_v60, %v632_v60  ;;  %863 = vst.msk [vmem:[#allocation2 + $0x8c] sm:$0x1] %vm469_vm1, %v3610_v56  ;;  %v558_v4 = vor.u32 %v556_v49, %v555_v57  ;;  %v649_v6 = vsel %vm4583_vm4, %v555_v57, 0 }
  0x52   : > { %v3613_v7 = vcombine.low %v649_v6, %v649_v6  ;;  %v562_v8 = vrot.slane %v560_v61, 7  ;;  %v445_v9 = vmax.f32 %v413_v58, 0.0  ;;  %v375_v10 = vmul.f32 %v3943_v55, %v4547_v1 }
  0x53   : > { %861 = vst.msk [vmem:[#allocation2 + $0x84] sm:$0xf] %vm466_vm0, %v3608_v2  ;;  %862 = vst.msk [vmem:[#allocation2 + $0x88] sm:$0xf] %vm466_vm0, %v3609_v3  ;;  %v633_v11 = vsel %vm4583_vm4, 0, %v558_v4  ;;  %v376_v12 = vmul.f32 %v3944_v63, %v4547_v1  ;;  %v3947_v13 = vunpack.c.l.bf16 %v3963_v0  ;;  %v3948_v14 = vunpack.c.h.bf16 %v3963_v0 }
  0x54   : > { %v3611_v15 = vcombine.low %v633_v11, %v633_v11  ;;  %v3612_v16 = vcombine.high %v633_v11, %v633_v11  ;;  %866 = vst.msk [vmem:[#allocation2 + $0x98] sm:$0x1] %vm469_vm1, %v3613_v7  ;;  %v565_v17 = vor.u32 %v563_v62, %v562_v8  ;;  %v650_v18 = vsel %vm4583_vm4, %v562_v8, 0 }
  0x55   : > { %v3616_v19 = vcombine.low %v650_v18, %v650_v18  ;;  %v463_v20 = vpack.c.bf16 %v445_v9, %v444_v59  ;;  %v414_v21 = vadd.f32 %v4558_v5, %v375_v10  ;;  %v415_v22 = vadd.f32 %v4558_v5, %v376_v12 }
  0x56   : > { %864 = vst.msk [vmem:[#allocation2 + $0x90] sm:$0xf] %vm466_vm0, %v3611_v15  ;;  %865 = vst.msk [vmem:[#allocation2 + $0x94] sm:$0xf] %vm466_vm0, %v3612_v16  ;;  %v634_v23 = vsel %vm4583_vm4, 0, %v565_v17  ;;  %v377_v24 = vmul.f32 %v3947_v13, %v4547_v1  ;;  %v378_v25 = vmul.f32 %v3948_v14, %v4547_v1 }
  0x57   : > { %v3614_v26 = vcombine.low %v634_v23, %v634_v23  ;;  %v3615_v27 = vcombine.high %v634_v23, %v634_v23  ;;  %869 = vst.msk [vmem:[#allocation2 + $0xa4] sm:$0x1] %vm469_vm1, %v3616_v19  ;;  %v567_v28 = vshrl.u32 %v463_v20, 16  ;;  %v570_v29 = vshll.u32 %v463_v20, 16 }
  0x58   : > { %v446_v30 = vmax.f32 %v414_v21, 0.0  ;;  %v447_v31 = vmax.f32 %v415_v22, 0.0  ;;  %v416_v32 = vadd.f32 %v4558_v5, %v377_v24  ;;  %v417_v33 = vadd.f32 %v4558_v5, %v378_v25 }
  0x59   : > { %867 = vst.msk [vmem:[#allocation2 + $0x9c] sm:$0xf] %vm466_vm0, %v3614_v26  ;;  %868 = vst.msk [vmem:[#allocation2 + $0xa0] sm:$0xf] %vm466_vm0, %v3615_v27  ;;  %v569_v34 = vrot.slane %v567_v28, 7 }
  0x5a   : > { %v464_v35 = vpack.c.bf16 %v447_v31, %v446_v30  ;;  %v448_v36 = vmax.f32 %v416_v32, 0.0  ;;  %v449_v1 = vmax.f32 %v417_v33, 0.0 }
  0x5b   : > { %v572_v37 = vor.u32 %v570_v29, %v569_v34  ;;  %v651_v38 = vsel %vm4583_vm4, %v569_v34, 0 }
  0x5c   : > { %v3619_v39 = vcombine.low %v651_v38, %v651_v38  ;;  %v574_v40 = vshrl.u32 %v464_v35, 16  ;;  %v577_v41 = vshll.u32 %v464_v35, 16  ;;  %v465_v42 = vpack.c.bf16 %v449_v1, %v448_v36 }
  0x5d   : > { %v635_v43 = vsel %vm4583_vm4, 0, %v572_v37 }
  0x5e   : > { %v3617_v5 = vcombine.low %v635_v43, %v635_v43  ;;  %v3618_v44 = vcombine.high %v635_v43, %v635_v43  ;;  %872 = vst.msk [vmem:[#allocation2 + $0xb0] sm:$0x1] %vm469_vm1, %v3619_v39  ;;  %v576_v45 = vrot.slane %v574_v40, 7  ;;  %v581_v46 = vshrl.u32 %v465_v42, 16 }
  0x5f   : > { %v584_v47 = vshll.u32 %v465_v42, 16 }
  0x60   : > { %870 = vst.msk [vmem:[#allocation2 + $0xa8] sm:$0xf] %vm466_vm0, %v3617_v5  ;;  %871 = vst.msk [vmem:[#allocation2 + $0xac] sm:$0xf] %vm466_vm0, %v3618_v44  ;;  %v579_v49 = vor.u32 %v577_v41, %v576_v45  ;;  %v652_v50 = vsel %vm4583_vm4, %v576_v45, 0  ;;  %v583_v51 = vrot.slane %v581_v46, 7 }
  0x61   : > { %v3622_v52 = vcombine.low %v652_v50, %v652_v50 }
  0x62   : > { %v636_v53 = vsel %vm4583_vm4, 0, %v579_v49  ;;  %v586_v54 = vor.u32 %v584_v47, %v583_v51  ;;  %v653_v55 = vsel %vm4583_vm4, %v583_v51, 0 }
  0x63   : > { %v3620_v56 = vcombine.low %v636_v53, %v636_v53  ;;  %v3621_v57 = vcombine.high %v636_v53, %v636_v53  ;;  %875 = vst.msk [vmem:[#allocation2 + $0xbc] sm:$0x1] %vm469_vm1, %v3622_v52  ;;  %v3625_v58 = vcombine.low %v653_v55, %v653_v55 }
  0x64   : > { %v637_v59 = vsel %vm4583_vm4, 0, %v586_v54 }
  0x65   : > { %873 = vst.msk [vmem:[#allocation2 + $0xb4] sm:$0xf] %vm466_vm0, %v3620_v56  ;;  %874 = vst.msk [vmem:[#allocation2 + $0xb8] sm:$0xf] %vm466_vm0, %v3621_v57  ;;  %v3623_v60 = vcombine.low %v637_v59, %v637_v59  ;;  %v3624_v61 = vcombine.high %v637_v59, %v637_v59 }
  0x66   : > { %878 = vst.msk [vmem:[#allocation2 + $0xc8] sm:$0x1] %vm469_vm1, %v3625_v58 }
  0x67   : > { %876 = vst.msk [vmem:[#allocation2 + $0xc0] sm:$0xf] %vm466_vm0, %v3623_v60  ;;  %877 = vst.msk [vmem:[#allocation2 + $0xc4] sm:$0xf] %vm466_vm0, %v3624_v61 }
  0x68 PF: > { %v880_v62 = vld [vmem:[%s5795_s3 + $0x2] sm:$0x3]  ;;  %vm1160_vm5 = vcmask 1041408   ;;  %v883_v48 = vld [vmem:[%s5795_s3 + $0x8] sm:$0x3]  ;;  %s3868_s7 = smul.u32 96, %s4443_s18 }
  0x69   : > { %4337 = vmatprep.subr.msk.bf16.mxu1 %vm1160_vm5, %v880_v62  ;;  %4341 = vmatprep.subr.msk.bf16.mxu0 %vm1160_vm5, %v883_v48  ;;  %v1162_v63 = vsel %vm1160_vm5, %v880_v62, 0  ;;  %v4772_v0 = vsel %vm1160_vm5, %v883_v48, 0  ;;  %vm916_vm6 = vsmask.f32 3328  ;;  %vm917_vm7 = vsmask.f32 7440 }
  0x6a   : > { %5821 = vst [vmem:[#allocation4_spill] sm:$0xff] %v4772_v0  ;;  %4046 = vmatpush3.bf16.msra.mxu1 %v1162_v63  ;;  %4118 = vmatpush3.bf16.msra.mxu0 %v4772_v0  ;;  %v4778_v2 = vld [vmem:[%s5795_s3] sm:$0x3]  ;;  %v4783_v3 = vld [vmem:[%s5795_s3 + $0xa] sm:$0x3]  ;;  %s4785_s12 = scalar_lea.vmem [#allocation2], %s3868_s7  ;;  %vm4827_vm8 = vmor %vm916_vm6, %vm917_vm7 }
  0x6b   : > { %4338 = vmatprep.subr.msk.bf16.mxu1 %vm1160_vm5, %v4778_v2  ;;  %4343 = vmatprep.subr.msk.bf16.mxu0 %vm1160_vm5, %v4783_v3  ;;  %vm1135_vm9 = vcmask 31744   ;;  %v1326_v48 = vsel %vm1160_vm5, %v4778_v2, 0  ;;  %vm1433_vm10 = vcmask 1042432   ;;  %vm1434_vm11 = vcmask 1046532  }
  0x6c   : > { %vm4984_vm12 = vmor %vm1433_vm10, %vm1434_vm11  ;;  %vm3304_vm13 = vcmask 27648   ;;  %vm3411_vm14 = vcmask 1040384   ;;  %vm3413_vm15 = vcmask 25600  }
  0x6e   : > { %v4788_v4 = vld [vmem:[%s4785_s12] sm:$0xf]  ;;  %v4791_v6 = vld [vmem:[%s4785_s12 + $0x4] sm:$0xf]  ;;  %v4794_v7 = vld [vmem:[%s4785_s12 + $0x8] sm:$0x1] }
  0x6f   : > { %v920_v8 = vshrl.u32 %v4788_v4, 16  ;;  %v923_v9 = vshll.u32 %v4788_v4, 16  ;;  %v929_v10 = vshll.u32 %v4791_v6, 16  ;;  %v933_v11 = vshrl.u32 %v4791_v6, 16  ;;  %v4805_v12 = vld [vmem:[%s4785_s12 + $0xc] sm:$0xf] }
  0x70   : > { %v939_v13 = vshll.u32 %v4794_v7, 16  ;;  %v4809_v14 = vld [vmem:[%s4785_s12 + $0x10] sm:$0xf]  ;;  %v4812_v15 = vld [vmem:[%s4785_s12 + $0x14] sm:$0x1]  ;;  %v1865_v21 = vshrl.u32 %v4805_v12, 16 }
  0x71   : > { %v922_v16 = vrot.slane %v920_v8, 4  ;;  %v925_v17 = vrot.slane %v923_v9, 5  ;;  %v931_v18 = vrot.slane %v929_v10, 5  ;;  %v935_v19 = vrot.slane %v933_v11, 4  ;;  %v4820_v28 = vld [vmem:[%s4785_s12 + $0xc] sm:$0xf] }
  0x72   : > { %v941_v20 = vrot.slane %v939_v13, 5  ;;  %v1868_v22 = vshll.u32 %v4805_v12, 16  ;;  %v1874_v23 = vshll.u32 %v4809_v14, 16  ;;  %v1878_v26 = vshrl.u32 %v4809_v14, 16  ;;  %v4823_v29 = vld [vmem:[%s4785_s12 + $0x10] sm:$0xf] }
  0x73   : > { %v926_v24 = vor.u32 %v925_v17, %v922_v16  ;;  %v936_v25 = vor.u32 %v935_v19, %v931_v18  ;;  %v1884_v27 = vshll.u32 %v4812_v15, 16  ;;  %v1867_v31 = vrot.slane %v1865_v21, 4  ;;  %v4832_v38 = vld [vmem:[%s4785_s12 + $0x14] sm:$0x1]  ;;  %v4844_v54 = vld [vmem:[%s4785_s12 + $0x18] sm:$0xf] }
  0x74   : > { %v1870_v32 = vrot.slane %v1868_v22, 5  ;;  %v1876_v33 = vrot.slane %v1874_v23, 5  ;;  %v1880_v36 = vrot.slane %v1878_v26, 4  ;;  %v944_v39 = vshrl.u32 %v4820_v28, 16  ;;  %v4851_v58 = vld [vmem:[%s4785_s12 + $0x1c] sm:$0xf] }
  0x75   : > { %v927_v34 = vrot.slane %v926_v24, 4  ;;  %v937_v35 = vrot.slane %v936_v25, 4  ;;  %v1886_v1 = vrot.slane %v1884_v27, 5  ;;  %v947_v40 = vshll.u32 %v4820_v28, 16  ;;  %v4854_v59 = vld [vmem:[%s4785_s12 + $0x20] sm:$0x1] }
  0x76   : > { %v1871_v37 = vor.u32 %v1870_v32, %v1867_v31  ;;  %v953_v41 = vshll.u32 %v4823_v29, 16  ;;  %v1881_v5 = vor.u32 %v1880_v36, %v1876_v33  ;;  %v957_v44 = vshrl.u32 %v4823_v29, 16  ;;  %v4863_v11 = vld [vmem:[%s4785_s12 + $0x18] sm:$0xf]  ;;  %v4869_v19 = vld [vmem:[%s4785_s12 + $0x1c] sm:$0xf] }
  0x77   : > { %v932_v42 = vsel %vm4827_vm8, %v927_v34, %v931_v18  ;;  %v942_v43 = vsel %vm4827_vm8, %v937_v35, %v941_v20  ;;  %v946_v47 = vrot.slane %v944_v39, 4  ;;  %v949_v49 = vrot.slane %v947_v40, 5  ;;  %v4876_v23 = vld [vmem:[%s4785_s12 + $0x20] sm:$0x1]  ;;  %v4881_v31 = vld [vmem:[%s4785_s12 + $0x24] sm:$0xf] }
  0x78   : > { %v3629_v45 = vcombine.low %v932_v42, %v942_v43  ;;  %v1872_v46 = vrot.slane %v1871_v37, 4  ;;  %v1882_v50 = vrot.slane %v1881_v5, 4  ;;  %v955_v51 = vrot.slane %v953_v41, 5  ;;  %v4893_v43 = vld [vmem:[%s4785_s12 + $0x28] sm:$0xf] }
  0x79   : > { %v959_v52 = vrot.slane %v957_v44, 4  ;;  %v963_v53 = vshll.u32 %v4832_v38, 16  ;;  %v2233_v56 = vrot.slane %v4812_v15, 5  ;;  %v950_v57 = vor.u32 %v949_v49, %v946_v47  ;;  %v4897_v47 = vld [vmem:[%s4785_s12 + $0x2c] sm:$0x1] }
  0x7a   : > { %4047 = vmatprep.mubr.msk.bf16.mxu1 %vm1135_vm9, %v3629_v45  ;;  %v1877_v55 = vsel %vm4827_vm8, %v1872_v46, %v1876_v33  ;;  %v1887_v60 = vsel %vm4827_vm8, %v1882_v50, %v1886_v1  ;;  %v1889_v9 = vshrl.u32 %v4844_v54, 16  ;;  %v1892_v10 = vshll.u32 %v4844_v54, 16 }
  0x7b   : > { %v960_v61 = vor.u32 %v959_v52, %v955_v51  ;;  %v965_v62 = vrot.slane %v963_v53, 5  ;;  %v3727_v63 = vcombine.low %v1877_v55, %v1887_v60  ;;  %v951_v8 = vrot.slane %v950_v57, 4  ;;  %v4902_v53 = vld [vmem:[%s4785_s12 + $0x24] sm:$0xf] }
  0x7c   : > { %v1898_v16 = vshll.u32 %v4851_v58, 16  ;;  %v1902_v17 = vshrl.u32 %v4851_v58, 16  ;;  %v1908_v18 = vshll.u32 %v4854_v59, 16  ;;  %v1891_v20 = vrot.slane %v1889_v9, 4  ;;  %v4911_v9 = vld [vmem:[%s4785_s12 + $0x28] sm:$0xf] }
  0x7d   : > { %v961_v13 = vrot.slane %v960_v61, 4  ;;  %4119 = vmatprep.mubr.msk.bf16.mxu0 %vm1135_vm9, %v3727_v63  ;;  %v956_v2 = vsel %vm4827_vm8, %v951_v8, %v955_v51  ;;  %v1894_v21 = vrot.slane %v1892_v10, 5  ;;  %v2237_v22 = vrot.slane %v4851_v58, 5 }
  0x7e   : > { %v1900_v25 = vrot.slane %v1898_v16, 5  ;;  %v1904_v26 = vrot.slane %v1902_v17, 4  ;;  %v1910_v27 = vrot.slane %v1908_v18, 5  ;;  %v2240_v34 = vrot.slane %v4854_v59, 5  ;;  %v4917_v18 = vld [vmem:[%s5795_s3 + $0xc] sm:$0x3] }
  0x7f   : > { %v966_v24 = vsel %vm4827_vm8, %v961_v13, %v965_v62  ;;  %v1895_v33 = vor.u32 %v1894_v21, %v1891_v20  ;;  %v2333_v35 = vsel %vm1160_vm5, %v4783_v3, 0  ;;  %v968_v1 = vshrl.u32 %v4863_v11, 16 }
  0x80   : > { %v3630_v32 = vcombine.low %v956_v2, %v966_v24  ;;  %v1905_v36 = vor.u32 %v1904_v26, %v1900_v25  ;;  %v971_v37 = vshll.u32 %v4863_v11, 16  ;;  %v977_v39 = vshll.u32 %v4869_v19, 16  ;;  %v4921_v24 = vld [vmem:[%s4785_s12 + $0x2c] sm:$0x1] }
  0x81   : > { %v1896_v40 = vrot.slane %v1895_v33, 4  ;;  %v981_v41 = vshrl.u32 %v4869_v19, 16  ;;  %v987_v42 = vshll.u32 %v4876_v23, 16  ;;  %v1913_v3 = vshrl.u32 %v4881_v31, 16 }
  0x82   : > { %4048 = vmatmul.mubr.msk.bf16.vlgmr.msra.gmra.mrb[0].mxu1 %vm1135_vm9, %v3630_v32  ;;  %v1906_v5 = vrot.slane %v1905_v36, 4  ;;  %v970_v44 = vrot.slane %v968_v1, 4  ;;  %v973_v45 = vrot.slane %v971_v37, 5  ;;  %v979_v46 = vrot.slane %v977_v39, 5  ;;  %v4928_v36 = vld [vmem:[%s4785_s12 + $0x30] sm:$0xf] }
  0x83   : > { %4064 = vmatpush3.bf16.msra.mxu1 %v1326_v48  ;;  %v1901_v49 = vsel %vm4827_vm8, %v1896_v40, %v1900_v25  ;;  %v983_v50 = vrot.slane %v981_v41, 4  ;;  %v989_v51 = vrot.slane %v987_v42, 5  ;;  %v1915_v52 = vrot.slane %v1913_v3, 4  ;;  %v4933_v1 = vld [vmem:[%s5795_s3 + $0x4] sm:$0x3] }
  0x84   : > { %v1911_v55 = vsel %vm4827_vm8, %v1906_v5, %v1910_v27  ;;  %v974_v57 = vor.u32 %v973_v45, %v970_v44  ;;  %v1916_v60 = vshll.u32 %v4881_v31, 16  ;;  %v1922_v61 = vshll.u32 %v4893_v43, 16  ;;  %v4939_v41 = vld [vmem:[%s4785_s12 + $0x34] sm:$0xf]  ;;  %4339 = vmatprep.subr.msk.bf16.mxu1 %vm1160_vm5, %v4933_v1 }
  0x85   : > { %v3728_v62 = vcombine.low %v1901_v49, %v1911_v55  ;;  %v984_v48 = vor.u32 %v983_v50, %v979_v46  ;;  %v1926_v63 = vshrl.u32 %v4893_v43, 16  ;;  %v1932_v8 = vshll.u32 %v4897_v47, 16  ;;  %v4947_v50 = vld [vmem:[%s4785_s12 + $0x38] sm:$0x1] }
  0x86   : > { %v975_v10 = vrot.slane %v974_v57, 4  ;;  %v1918_v13 = vrot.slane %v1916_v60, 5  ;;  %v1924_v16 = vrot.slane %v1922_v61, 5  ;;  %v992_v17 = vshrl.u32 %v4902_v53, 16  ;;  %v4956_v61 = vld [vmem:[%s4785_s12 + $0x30] sm:$0xf] }
  0x87   : > { %4120 = vmatmul.mubr.msk.bf16.vlgmr.msra.gmra.mrb[0].mxu0 %vm1135_vm9, %v3728_v62  ;;  %v985_v2 = vrot.slane %v984_v48, 4  ;;  %v1928_v20 = vrot.slane %v1926_v63, 4  ;;  %v1934_v21 = vrot.slane %v1932_v8, 5  ;;  %v995_v25 = vshll.u32 %v4902_v53, 16 }
  0x88   : > { %4136 = vmatpush3.bf16.msra.mxu0 %v2333_v35  ;;  %v980_v26 = vsel %vm4827_vm8, %v975_v10, %v979_v46  ;;  %v1919_v27 = vor.u32 %v1918_v13, %v1915_v52  ;;  %v994_v32 = vrot.slane %v992_v17, 4  ;;  %v1001_v33 = vshll.u32 %v4911_v9, 16  ;;  %v4961_v10 = vld [vmem:[%s4785_s12 + $0x34] sm:$0xf] }
  0x89   : > { %v990_v37 = vsel %vm4827_vm8, %v985_v2, %v989_v51  ;;  %v1929_v39 = vor.u32 %v1928_v20, %v1924_v16  ;;  %v997_v35 = vrot.slane %v995_v25, 5  ;;  %v1005_v40 = vshrl.u32 %v4911_v9, 16  ;;  %4344 = vmatprep.subr.msk.bf16.mxu0 %vm1160_vm5, %v4917_v18 }
  0x8a   : > { %v3631_v42 = vcombine.low %v980_v26, %v990_v37  ;;  %v1920_v3 = vrot.slane %v1919_v27, 4  ;;  %v1003_v5 = vrot.slane %v1001_v33, 5  ;;  %v1011_v44 = vshll.u32 %v4921_v24, 16  ;;  %v4970_v33 = vld [vmem:[%s4785_s12 + $0x38] sm:$0x1] }
  0x8b   : > { %v1930_v45 = vrot.slane %v1929_v39, 4  ;;  %v998_v46 = vor.u32 %v997_v35, %v994_v32  ;;  %v1007_v49 = vrot.slane %v1005_v40, 4  ;;  %v1937_v51 = vshrl.u32 %v4928_v36, 16 }
  0x8c   : > { %4051 = vmatprep.mubr.msk.bf16.mxu1 %vm1135_vm9, %v3631_v42  ;;  %v1925_v52 = vsel %vm4827_vm8, %v1920_v3, %v1924_v16  ;;  %v1013_v55 = vrot.slane %v1011_v44, 5  ;;  %v1940_v57 = vshll.u32 %v4928_v36, 16  ;;  %v1946_v60 = vshll.u32 %v4939_v41, 16 }
  0x8d   : > { %v1935_v62 = vsel %vm4827_vm8, %v1930_v45, %v1934_v21  ;;  %v999_v48 = vrot.slane %v998_v46, 4  ;;  %v1008_v63 = vor.u32 %v1007_v49, %v1003_v5  ;;  %v1939_v8 = vrot.slane %v1937_v51, 4 }
  0x8e   : > { %v3729_v13 = vcombine.low %v1925_v52, %v1935_v62  ;;  %v1942_v17 = vrot.slane %v1940_v57, 5  ;;  %v1948_v2 = vrot.slane %v1946_v60, 5  ;;  %v1950_v16 = vshrl.u32 %v4939_v41, 16  ;;  %v4979_v57 = vld [vmem:[%s4785_s12 + $0x3c] sm:$0xf] }
  0x8f   : > { %v1004_v20 = vsel %vm4827_vm8, %v999_v48, %v1003_v5  ;;  %v1009_v25 = vrot.slane %v1008_v63, 4  ;;  %v1956_v26 = vshll.u32 %v4947_v50, 16  ;;  %v1016_v27 = vshrl.u32 %v4956_v61, 16 }
  0x90   : > { %4123 = vmatprep.mubr.msk.bf16.mxu0 %vm1135_vm9, %v3729_v13  ;;  %v1943_v21 = vor.u32 %v1942_v17, %v1939_v8  ;;  %v1952_v32 = vrot.slane %v1950_v16, 4  ;;  %v1019_v37 = vshll.u32 %v4956_v61, 16  ;;  %v1025_v39 = vshll.u32 %v4961_v10, 16  ;;  %v4991_v16 = vld [vmem:[%s4785_s12 + $0x40] sm:$0xf] }
  0x91   : > { %v1014_v35 = vsel %vm4827_vm8, %v1009_v25, %v1013_v55  ;;  %v1958_v40 = vrot.slane %v1956_v26, 5  ;;  %v1018_v42 = vrot.slane %v1016_v27, 4  ;;  %v1029_v3 = vshrl.u32 %v4961_v10, 16 }
  0x92   : > { %v3632_v5 = vcombine.low %v1004_v20, %v1014_v35  ;;  %v1944_v44 = vrot.slane %v1943_v21, 4  ;;  %v1953_v45 = vor.u32 %v1952_v32, %v1948_v2  ;;  %v1021_v46 = vrot.slane %v1019_v37, 5 }
  0x93   : > { %v1027_v49 = vrot.slane %v1025_v39, 5  ;;  %v1031_v51 = vrot.slane %v1029_v3, 4  ;;  %v1035_v52 = vshll.u32 %v4970_v33, 16  ;;  %v3743_v13 = vrot.slane %v4805_v12, 9 }
  0x94   : > { %4052 = vmatmul.mubr.msk.bf16.gmra.mrb[4].mxu1 %vm1135_vm9, %v3632_v5  ;;  %v1949_v55 = vsel %vm4827_vm8, %v1944_v44, %v1948_v2  ;;  %v1954_v60 = vrot.slane %v1953_v45, 4  ;;  %v1022_v62 = vor.u32 %v1021_v46, %v1018_v42  ;;  %v2230_v17 = vrot.slane %v4809_v14, 5  ;;  %v4996_v2 = vld [vmem:[%s4785_s12 + $0x44] sm:$0x1]  ;;  %v5015_v45 = vld [vmem:[%s4785_s12 + $0x48] sm:$0xf] }
  0x95   : > { %v1032_v48 = vor.u32 %v1031_v51, %v1027_v49  ;;  %v1037_v63 = vrot.slane %v1035_v52, 5  ;;  %v1040_v26 = vshrl.u32 %v4979_v57, 16  ;;  %v1043_v27 = vshll.u32 %v4979_v57, 16 }
  0x96   : > { %v1959_v20 = vsel %vm4827_vm8, %v1954_v60, %v1958_v40  ;;  %v1023_v25 = vrot.slane %v1022_v62, 4  ;;  %v2231_v12 = vsel %vm4984_vm12, %v3743_v13, %v2230_v17  ;;  %v2232_v14 = vrot.slane %v2230_v17, 4  ;;  %v5028_v13 = vld [vmem:[%s4785_s12 + $0x50] sm:$0x1] }
  0x97   : > { %v3730_v21 = vcombine.low %v1949_v55, %v1959_v20  ;;  %v1033_v32 = vrot.slane %v1032_v48, 4  ;;  %v1042_v39 = vrot.slane %v1040_v26, 4  ;;  %v1045_v35 = vrot.slane %v1043_v27, 5  ;;  %v5018_v55 = vld [vmem:[%s4785_s12 + $0x4c] sm:$0xf] }
  0x98   : > { %v1028_v37 = vsel %vm4827_vm8, %v1023_v25, %v1027_v49  ;;  %v1049_v40 = vshll.u32 %v4991_v16, 16  ;;  %v2234_v3 = vsel %vm4984_vm12, %v2232_v14, %v2233_v56  ;;  %v1053_v5 = vshrl.u32 %v4991_v16, 16  ;;  %v5044_v14 = vld [vmem:[%s4785_s12 + $0x54] sm:$0xf] }
  0x99   : > { %4124 = vmatmul.mubr.msk.bf16.gmra.mrb[4].mxu0 %vm1135_vm9, %v3730_v21  ;;  %v1038_v42 = vsel %vm4827_vm8, %v1033_v32, %v1037_v63  ;;  %v1059_v44 = vshll.u32 %v4996_v2, 16  ;;  %v3751_v49 = vcombine.low %v2231_v12, %v2234_v3  ;;  %v1046_v51 = vor.u32 %v1045_v35, %v1042_v39  ;;  %v5049_v39 = vld [vmem:[%s4785_s12 + $0x58] sm:$0xf]  ;;  %v5057_v3 = vld [vmem:[%s5795_s3 + $0xe] sm:$0x3] }
  0x9a   : > { %v3633_v46 = vcombine.low %v1028_v37, %v1038_v42  ;;  %v1051_v52 = vrot.slane %v1049_v40, 5  ;;  %v1055_v60 = vrot.slane %v1053_v5, 4  ;;  %v3744_v15 = vrot.slane %v4844_v54, 9 }
  0x9b   : > { %v1061_v62 = vrot.slane %v1059_v44, 5  ;;  %v2239_v56 = vrot.slane %v2237_v22, 4  ;;  %4137 = vmatprep.mubr.msk.bf16.mxu0 %vm1135_vm9, %v3751_v49  ;;  %v1047_v48 = vrot.slane %v1046_v51, 4  ;;  %v2541_v63 = vsel %vm1160_vm5, %v4917_v18, 0  ;;  %v5063_v49 = vld [vmem:[%s4785_s12 + $0x5c] sm:$0x1] }
  0x9c   : > { %4055 = vmatprep.mubr.msk.bf16.mxu1 %vm1135_vm9, %v3633_v46  ;;  %v1064_v17 = vshrl.u32 %v5015_v45, 16  ;;  %v1067_v20 = vshll.u32 %v5015_v45, 16  ;;  %v1056_v54 = vor.u32 %v1055_v60, %v1051_v52  ;;  %v2238_v25 = vsel %vm4984_vm12, %v3744_v15, %v2237_v22 }
  0x9d   : > { %v2241_v26 = vsel %vm4984_vm12, %v2239_v56, %v2240_v34  ;;  %v1073_v18 = vshll.u32 %v5018_v55, 16  ;;  %v1052_v27 = vsel %vm4827_vm8, %v1047_v48, %v1051_v52  ;;  %v1077_v22 = vshrl.u32 %v5018_v55, 16 }
  0x9e   : > { %v3752_v21 = vcombine.low %v2238_v25, %v2241_v26  ;;  %v1066_v32 = vrot.slane %v1064_v17, 4  ;;  %v1069_v12 = vrot.slane %v1067_v20, 5  ;;  %v1057_v58 = vrot.slane %v1056_v54, 4  ;;  %v5080_v54 = vld [vmem:[%s4785_s12 + $0x3c] sm:$0xf] }
  0x9f   : > { %v1075_v37 = vrot.slane %v1073_v18, 5  ;;  %v1083_v59 = vshll.u32 %v5028_v13, 16  ;;  %v3745_v35 = vrot.slane %v4881_v31, 9  ;;  %v2244_v40 = vrot.slane %v4893_v43, 5 }
  0xa0   : > { %v1070_v34 = vor.u32 %v1069_v12, %v1066_v32  ;;  %v2247_v42 = vrot.slane %v4897_v47, 5  ;;  %v1062_v5 = vsel %vm4827_vm8, %v1057_v58, %v1061_v62  ;;  %v1079_v44 = vrot.slane %v1077_v22, 4  ;;  %v5088_v22 = vld [vmem:[%s4785_s12 + $0x44] sm:$0x1] }
  0xa1   : > { %4138 = vmatmul.mubr.msk.bf16.vlgmr.msra.gmra.mrb[0].mxu0 %vm1135_vm9, %v3752_v21  ;;  %v1085_v46 = vrot.slane %v1083_v59, 5  ;;  %v1088_v31 = vshrl.u32 %v5044_v14, 16  ;;  %v3634_v43 = vcombine.low %v1052_v27, %v1062_v5  ;;  %v2245_v51 = vsel %vm4984_vm12, %v3745_v35, %v2244_v40  ;;  %v5083_v21 = vld [vmem:[%s4785_s12 + $0x40] sm:$0xf]  ;;  %5826 = vst [vmem:[#allocation5_spill] sm:$0xff] %v5088_v22 }
  0xa2   : > { %4154 = vmatpush3.bf16.msra.mxu0 %v2541_v63  ;;  %v1071_v47 = vrot.slane %v1070_v34, 4  ;;  %v2246_v52 = vrot.slane %v2244_v40, 4  ;;  %v1080_v60 = vor.u32 %v1079_v44, %v1075_v37  ;;  %v1091_v62 = vshll.u32 %v5044_v14, 16 }
  0xa3   : > { %v1090_v15 = vrot.slane %v1088_v31, 4  ;;  %v1097_v56 = vshll.u32 %v5049_v39, 16  ;;  %4345 = vmatprep.subr.msk.bf16.mxu0 %vm1160_vm5, %v5057_v3  ;;  %4056 = vmatmul.mubr.msk.bf16.gmra.mrb[8].mxu1 %vm1135_vm9, %v3634_v43  ;;  %v1101_v17 = vshrl.u32 %v5049_v39, 16  ;;  %v1107_v20 = vshll.u32 %v5063_v49, 16 }
  0xa4   : > { %v1076_v48 = vsel %vm4827_vm8, %v1071_v47, %v1075_v37  ;;  %v2248_v63 = vsel %vm4984_vm12, %v2246_v52, %v2247_v42  ;;  %v1081_v25 = vrot.slane %v1080_v60, 4  ;;  %v1093_v18 = vrot.slane %v1091_v62, 5 }
  0xa5   : > { %v3753_v26 = vcombine.low %v2245_v51, %v2248_v63  ;;  %v1099_v27 = vrot.slane %v1097_v56, 5  ;;  %v1103_v32 = vrot.slane %v1101_v17, 4  ;;  %v1109_v12 = vrot.slane %v1107_v20, 5  ;;  %v5117_v63 = vld [vmem:[%s4785_s12 + $0x50] sm:$0x1] }
  0xa6   : > { %v3746_v58 = vrot.slane %v4928_v36, 9  ;;  %v2251_v37 = vrot.slane %v4939_v41, 5  ;;  %v1086_v59 = vsel %vm4827_vm8, %v1081_v25, %v1085_v46  ;;  %v1094_v34 = vor.u32 %v1093_v18, %v1090_v15  ;;  %v5107_v15 = vld [vmem:[%s4785_s12 + $0x48] sm:$0xf]  ;;  %v5123_v25 = vld [vmem:[%s4785_s12 + $0x54] sm:$0xf] }
  0xa7   : > { %4141 = vmatprep.mubr.msk.bf16.mxu0 %vm1135_vm9, %v3753_v26  ;;  %v2254_v35 = vrot.slane %v4947_v50, 5  ;;  %v3747_v40 = vrot.slane %v5080_v54, 9  ;;  %v3635_v42 = vcombine.low %v1076_v48, %v1086_v59  ;;  %v1104_v5 = vor.u32 %v1103_v32, %v1099_v27  ;;  %v5114_v48 = vld [vmem:[%s4785_s12 + $0x4c] sm:$0xf]  ;;  %5827 = vst [vmem:[#allocation6_spill] sm:$0xff] %v5123_v25 }
  0xa8   : > { %v2252_v36 = vsel %vm4984_vm12, %v3746_v58, %v2251_v37  ;;  %v2253_v41 = vrot.slane %v2251_v37, 4  ;;  %v1095_v44 = vrot.slane %v1094_v34, 4  ;;  %v2258_v31 = vrot.slane %v5083_v21, 5  ;;  %v5126_v26 = vld [vmem:[%s4785_s12 + $0x58] sm:$0xf] }
  0xa9   : > { %v2261_v46 = vrot.slane %v5088_v22, 5  ;;  %4059 = vmatprep.mubr.msk.bf16.mxu1 %vm1135_vm9, %v3635_v42  ;;  %v1105_v50 = vrot.slane %v1104_v5, 4  ;;  %v3645_v56 = vcombine.low %v4788_v4, %v4791_v6  ;;  %5828 = vst [vmem:[#allocation7_spill] sm:$0xff] %v5126_v26  ;;  %v5129_v18 = vld [vmem:[%s4785_s12 + $0x5c] sm:$0x1]  ;;  %v3748_v32 = vrot.slane %v5107_v15, 9 }
  0xaa   : > { %v2255_v43 = vsel %vm4984_vm12, %v2253_v41, %v2254_v35  ;;  %v1100_v47 = vsel %vm4827_vm8, %v1095_v44, %v1099_v27  ;;  %v2259_v52 = vsel %vm4984_vm12, %v3747_v40, %v2258_v31  ;;  %v2260_v60 = vrot.slane %v2258_v31, 4  ;;  %5829 = vst [vmem:[#allocation8_spill] sm:$0xff] %v5129_v18  ;;  %v5136_v37 = vld [vmem:[%s4785_s12 + $0x60] sm:$0xf]  ;;  %v5139_v59 = vld [vmem:[%s4785_s12 + $0x64] sm:$0xf] }
  0xab   : > { %v3754_v51 = vcombine.low %v2252_v36, %v2255_v43  ;;  %v1110_v62 = vsel %vm4827_vm8, %v1105_v50, %v1109_v12  ;;  %v2265_v12 = vrot.slane %v5114_v48, 5  ;;  %v2268_v58 = vrot.slane %v5117_v63, 5  ;;  %5830 = vst [vmem:[#allocation9_spill] sm:$0xff] %v5136_v37  ;;  %5831 = vst [vmem:[#allocation10_spill] sm:$0xff] %v5139_v59  ;;  %v5147_v42 = vld [vmem:[%s4785_s12 + $0x68] sm:$0x1] }
  0xac   : > { %v3636_v17 = vcombine.low %v1100_v47, %v1110_v62  ;;  %v2262_v20 = vsel %vm4984_vm12, %v2260_v60, %v2261_v46  ;;  %v3749_v34 = vrot.slane %v5123_v25, 9  ;;  %v2272_v35 = vrot.slane %v5126_v26, 5  ;;  %5832 = vst [vmem:[#allocation11_spill] sm:$0xff] %v5147_v42  ;;  %v5389_v25 = vld [vmem:[%s4785_s12 + $0x6c] sm:$0xf] }
  0xad   : > { %4142 = vmatmul.mubr.msk.bf16.gmra.mrb[4].mxu0 %vm1135_vm9, %v3754_v51  ;;  %v3755_v27 = vcombine.low %v2259_v52, %v2262_v20  ;;  %v2275_v40 = vrot.slane %v5129_v18, 5  ;;  %v2266_v5 = vsel %vm4984_vm12, %v3748_v32, %v2265_v12  ;;  %v2267_v36 = vrot.slane %v2265_v12, 4  ;;  %v5170_v20 = vld [vmem:[%s5795_s3 + $0x6] sm:$0x3]  ;;  %v5181_v12 = vld [vmem:[%s4785_s12 + $0x18] sm:$0xf] }
  0xae   : > { %4060 = vmatmul.mubr.msk.bf16.gmra.mrb[12].mxu1 %vm1135_vm9, %v3636_v17  ;;  %v2273_v41 = vsel %vm4984_vm12, %v3749_v34, %v2272_v35  ;;  %v2274_v44 = vrot.slane %v2272_v35, 4  ;;  %v2279_v31 = vrot.slane %v5139_v59, 5  ;;  %v3646_v46 = vcombine.low %v4820_v28, %v4823_v29 }
  0xaf   : > { %4065 = vmatprep.mubr.msk.bf16.mxu1 %vm1135_vm9, %v3645_v56  ;;  %4145 = vmatprep.mubr.msk.bf16.mxu0 %vm1135_vm9, %v3755_v27  ;;  %v2269_v50 = vsel %vm4984_vm12, %v2267_v36, %v2268_v58  ;;  %v3750_v43 = vrot.slane %v5136_v37, 9  ;;  %v2282_v47 = vrot.slane %v5147_v42, 5  ;;  %v3647_v52 = vcombine.low %v4863_v11, %v4869_v19  ;;  %v5184_v58 = vld [vmem:[%s4785_s12 + $0x1c] sm:$0xf]  ;;  %v5197_v36 = vld [vmem:[%s4785_s12 + $0x28] sm:$0xf] }
  0xb0   : > { %v3756_v51 = vcombine.low %v2266_v5, %v2269_v50  ;;  %v2276_v60 = vsel %vm4984_vm12, %v2274_v44, %v2275_v40  ;;  %v2281_v62 = vrot.slane %v2279_v31, 4  ;;  %v1541_v56 = vsel %vm1160_vm5, %v4933_v1, 0  ;;  %v5194_v5 = vld [vmem:[%s4785_s12 + $0x24] sm:$0xf] }
  0xb1   : > { %v3757_v17 = vcombine.low %v2273_v41, %v2276_v60  ;;  %v2280_v27 = vsel %vm4984_vm12, %v3750_v43, %v2279_v31  ;;  %v1445_v32 = vrot.slane %v4823_v29, 5  ;;  %v1448_v34 = vrot.slane %v4832_v38, 5  ;;  %5833 = vst [vmem:[#allocation12_spill] sm:$0xff] %v5194_v5  ;;  %v5217_v60 = vld [vmem:[%s4785_s12 + $0x30] sm:$0xf] }
  0xb2   : > { %v2283_v1 = vsel %vm4984_vm12, %v2281_v62, %v2282_v47  ;;  %v3648_v40 = vcombine.low %v4902_v53, %v4911_v9  ;;  %v3793_v29 = vcombine.low %v5181_v12, %v5184_v58  ;;  %v3662_v41 = vrot.slane %v4820_v28, 9  ;;  %5834 = vst [vmem:[#allocation13_spill] sm:$0xff] %v5217_v60 }
  0xb3   : > { %v3758_v35 = vcombine.low %v2280_v27, %v2283_v1  ;;  %v1441_v44 = vrot.slane %v4794_v7, 5  ;;  %v3649_v31 = vcombine.low %v4956_v61, %v4961_v10  ;;  %v2657_v38 = vshrl.u32 %v5181_v12, 16  ;;  %v5228_v27 = vld [vmem:[%s4785_s12 + $0x34] sm:$0xf]  ;;  %v5348_v7 = vld [vmem:[%s4785_s12 + $0x64] sm:$0xf] }
  0xb4   : > { %v2660_v50 = vshll.u32 %v5181_v12, 16  ;;  %v2670_v43 = vshrl.u32 %v5184_v58, 16  ;;  %v3650_v47 = vcombine.low %v4979_v57, %v4991_v16  ;;  %v3794_v28 = vcombine.low %v5194_v5, %v5197_v36 }
  0xb5   : > { %4146 = vmatmul.mubr.msk.bf16.gmra.mrb[8].mxu0 %vm1135_vm9, %v3756_v51  ;;  %v5210_v51 = vsel %vm4984_vm12, %v3662_v41, %v1445_v32  ;;  %v5842_v59 = vshrl.u32 %v5197_v36, 16 }
  0xb6   : > { %4066 = vmatmul.mubr.msk.bf16.vlgmr.msra.gmra.mrb[0].mxu1 %vm1135_vm9, %v3646_v46  ;;  %4149 = vmatprep.mubr.msk.bf16.mxu0 %vm1135_vm9, %v3757_v17  ;;  %v1447_v46 = vrot.slane %v1445_v32, 4  ;;  %v1452_v32 = vrot.slane %v4869_v19, 5  ;;  %v5253_v17 = vld [vmem:[%s4785_s12 + $0x3c] sm:$0xf] }
  0xb7   : > { %4082 = vmatpush3.bf16.msra.mxu1 %v1541_v56  ;;  %4069 = vmatprep.mubr.msk.bf16.mxu1 %vm1135_vm9, %v3647_v52  ;;  %v3663_v56 = vrot.slane %v4863_v11, 9  ;;  %v1462_v11 = vrot.slane %v4921_v24, 5  ;;  %5835 = vst [vmem:[#allocation14_spill] sm:$0xff] %v5253_v17  ;;  %v3665_v24 = vrot.slane %v4956_v61, 9  ;;  %v3652_v61 = vcombine.low %v5044_v14, %v5049_v39 }
  0xb8   : > { %4340 = vmatprep.subr.msk.bf16.mxu1 %vm1160_vm5, %v5170_v20  ;;  %v5221_v62 = vsel %vm4984_vm12, %v1447_v46, %v1448_v34  ;;  %v2897_v34 = vsel %vm1160_vm5, %v5057_v3, 0  ;;  %v1454_v19 = vrot.slane %v1452_v32, 4  ;;  %v3795_v46 = vcombine.low %v5217_v60, %v5228_v27 }
  0xb9   : > { %v5243_v41 = vsel %vm4984_vm12, %v3663_v56, %v1452_v32  ;;  %v5265_v32 = vld [vmem:[%s4785_s12 + $0x40] sm:$0xf]  ;;  %v1466_v3 = vrot.slane %v4961_v10, 5  ;;  %v5298_v10 = vld [vmem:[%s4785_s12 + $0x48] sm:$0xf]  ;;  %v1473_v52 = vrot.slane %v4991_v16, 5 }
  0xba   : > { %5836 = vst [vmem:[#allocation15_spill] sm:$0xff] %v5265_v32  ;;  %v2672_v16 = vrot.slane %v2670_v43, 4  ;;  %v1483_v43 = vrot.slane %v5028_v13, 5  ;;  %v2696_v26 = vrot.slane %v5842_v59, 4  ;;  %v5843_v59 = vshrl.u32 %v5217_v60, 16 }
  0xbb   : > { %v1468_v1 = vrot.slane %v1466_v3, 4 }
  0xbd   : > { %4150 = vmatmul.mubr.msk.bf16.gmra.mrb[12].mxu0 %vm1135_vm9, %v3758_v35  ;;  %v1455_v35 = vrot.slane %v4876_v23, 5  ;;  %v3664_v23 = vrot.slane %v4902_v53, 9 }
  0xbe   : > { %4070 = vmatmul.mubr.msk.bf16.gmra.mrb[4].mxu1 %vm1135_vm9, %v3648_v40  ;;  %4155 = vmatprep.mubr.msk.bf16.mxu0 %vm1135_vm9, %v3793_v29  ;;  %v3651_v40 = vcombine.low %v5015_v45, %v5018_v55  ;;  %v1438_v29 = vrot.slane %v4791_v6, 5  ;;  %v3661_v6 = vrot.slane %v4788_v4, 9  ;;  %v1469_v4 = vrot.slane %v4970_v33, 5 }
  0xbf   : > { %4073 = vmatprep.mubr.msk.bf16.mxu1 %vm1135_vm9, %v3649_v31  ;;  %v1459_v31 = vrot.slane %v4911_v9, 5  ;;  %v5258_v56 = vsel %vm4984_vm12, %v1454_v19, %v1455_v35  ;;  %v5285_v33 = vsel %vm4984_vm12, %v3665_v24, %v1466_v3  ;;  %v2659_v24 = vrot.slane %v2657_v38, 4  ;;  %v5304_v35 = vld [vmem:[%s4785_s12 + $0x4c] sm:$0xf] }
  0xc0   : > { %v1440_v19 = vrot.slane %v1438_v29, 4  ;;  %v3666_v3 = vrot.slane %v4979_v57, 9 }
  0xc1   : > { %v5262_v53 = vsel %vm4984_vm12, %v3664_v23, %v1459_v31  ;;  %v1461_v9 = vrot.slane %v1459_v31, 4  ;;  %v2666_v31 = vshll.u32 %v5184_v58, 16 }
  0xc2   : > { %v1442_v57 = vsel %vm4984_vm12, %v1440_v19, %v1441_v44  ;;  %v5330_v44 = vld [vmem:[%s4785_s12 + $0x54] sm:$0xf]  ;;  %v2690_v19 = vshll.u32 %v5197_v36, 16 }
  0xc3   : > { %v5275_v23 = vsel %vm4984_vm12, %v1461_v9, %v1462_v11  ;;  %v5290_v11 = vld [vmem:[%s5795_s3 + $0x10] sm:$0x3]  ;;  %v1439_v9 = vsel %vm4984_vm12, %v3661_v6, %v1438_v29  ;;  %v1476_v29 = vrot.slane %v4996_v2, 5  ;;  %5837 = vst [vmem:[#allocation16_spill] sm:$0xff] %v5330_v44  ;;  %v5345_v2 = vld [vmem:[%s4785_s12 + $0x60] sm:$0xf] }
  0xc4   : > { %v3669_v38 = vcombine.low %v1439_v9, %v1442_v57  ;;  %5838 = vst [vmem:[#allocation17_spill] sm:$0xff] %v5345_v2  ;;  %v3667_v9 = vrot.slane %v5015_v45, 9  ;;  %v5383_v37 = vrot.slane %v2690_v19, 5  ;;  %v1749_v19 = vsel %vm1160_vm5, %v5170_v20, 0 }
  0xc5   : > { %4156 = vmatmul.mubr.msk.bf16.vlgmr.msra.gmra.mrb[0].mxu0 %vm1135_vm9, %v3794_v28  ;;  %v3796_v28 = vcombine.low %v5253_v17, %v5265_v32  ;;  %v2738_v20 = vshll.u32 %v5265_v32, 16 }
  0xc6   : > { %4074 = vmatmul.mubr.msk.bf16.gmra.mrb[8].mxu1 %vm1135_vm9, %v3650_v47  ;;  %4172 = vmatpush3.bf16.msra.mxu0 %v2897_v34  ;;  %v5308_v47 = vsel %vm4984_vm12, %v1468_v1, %v1469_v4  ;;  %v2662_v34 = vrot.slane %v2660_v50, 5  ;;  %v5321_v1 = vrot.slane %v2666_v31, 5  ;;  %v5334_v50 = vsel %vm4984_vm12, %v3666_v3, %v1473_v52  ;;  %v5342_v31 = vld [vmem:[%s4785_s12 + $0x58] sm:$0xf] }
  0xc7   : > { %4077 = vmatprep.mubr.msk.bf16.mxu1 %vm1135_vm9, %v3651_v40  ;;  %4159 = vmatprep.mubr.msk.bf16.mxu0 %vm1135_vm9, %v3795_v46  ;;  %v5319_v40 = vld [vmem:[%s4785_s12 + $0x20] sm:$0x1]  ;;  %v1475_v46 = vrot.slane %v1473_v52, 4  ;;  %v3797_v4 = vcombine.low %v5298_v10, %v5304_v35  ;;  %v3798_v45 = vcombine.low %v5330_v44, %v5342_v31 }
  0xc8   : > { %4346 = vmatprep.subr.msk.bf16.mxu0 %vm1160_vm5, %v5290_v11  ;;  %v2663_v3 = vor.u32 %v2662_v34, %v2659_v24  ;;  %v2676_v52 = vshll.u32 %v5319_v40, 16  ;;  %v2673_v42 = vor.u32 %v2672_v16, %v5321_v1  ;;  %v5363_v24 = vld [vmem:[%s4785_s12 + $0x2c] sm:$0x1]  ;;  %v5840_v34 = vshrl.u32 %v5194_v5, 16 }
  0xc9   : > { %v5353_v6 = vsel %vm4984_vm12, %v1475_v46, %v1476_v29  ;;  %5839 = vst [vmem:[#allocation18_spill] sm:$0xff] %v5363_v24  ;;  %v5841_v29 = vshll.u32 %v5194_v5, 16  ;;  %v1480_v16 = vrot.slane %v5018_v55, 5  ;;  %v2700_v13 = vshll.u32 %v5363_v24, 16 }
  0xca   : > { %v2683_v18 = vrot.slane %v5840_v34, 4  ;;  %v2714_v34 = vshll.u32 %v5228_v27, 16  ;;  %v2678_v55 = vrot.slane %v2676_v52, 5  ;;  %v2674_v57 = vrot.slane %v2673_v42, 4  ;;  %v5398_v42 = vld [vmem:[%s4785_s12 + $0x70] sm:$0xf] }
  0xcb   : > { %v2686_v46 = vrot.slane %v5841_v29, 5  ;;  %v2664_v29 = vrot.slane %v2663_v3, 4  ;;  %v3668_v3 = vrot.slane %v5044_v14, 9  ;;  %v1487_v52 = vrot.slane %v5049_v39, 5 }
  0xcc   : > { %v1490_v24 = vrot.slane %v5063_v49, 5  ;;  %v2804_v5 = vshll.u32 %v5345_v2, 16 }
  0xcd   : > { %4160 = vmatmul.mubr.msk.bf16.gmra.mrb[4].mxu0 %vm1135_vm9, %v3796_v28  ;;  %v3799_v28 = vcombine.low %v5345_v2, %v5348_v7  ;;  %v2687_v22 = vor.u32 %v2686_v46, %v2683_v18  ;;  %v5406_v46 = vrot.slane %v2714_v34, 5  ;;  %v5412_v14 = vsel %vm4984_vm12, %v3668_v3, %v1487_v52 }
  0xce   : > { %4078 = vmatmul.mubr.msk.bf16.gmra.mrb[12].mxu1 %vm1135_vm9, %v3652_v61  ;;  %4163 = vmatprep.mubr.msk.bf16.mxu0 %vm1135_vm9, %v3797_v4  ;;  %v5381_v61 = vsel %vm4984_vm12, %v3667_v9, %v1480_v16  ;;  %v1482_v4 = vrot.slane %v1480_v16, 4  ;;  %v2707_v9 = vrot.slane %v5843_v59, 4  ;;  %v5844_v16 = vshll.u32 %v5217_v60, 16 }
  0xcf   : > { %4083 = vmatprep.mubr.msk.bf16.mxu1 %vm1135_vm9, %v3669_v38  ;;  %v1489_v39 = vrot.slane %v1487_v52, 4  ;;  %v2777_v59 = vshrl.u32 %v5330_v44, 16  ;;  %v2780_v60 = vshll.u32 %v5330_v44, 16  ;;  %v2697_v34 = vor.u32 %v2696_v26, %v5383_v37 }
  0xd0   : > { %v5393_v38 = vsel %vm4984_vm12, %v1482_v4, %v1483_v43  ;;  %v2710_v18 = vrot.slane %v5844_v16, 5  ;;  %v5845_v43 = vshrl.u32 %v5228_v27, 16  ;;  %v5421_v16 = vld [vmem:[%s4785_s12 + $0x38] sm:$0x1]  ;;  %v3800_v3 = vcombine.low %v5389_v25, %v5398_v42 }
  0xd1   : > { %5846 = vst [vmem:[#allocation19_spill] sm:$0xff] %v5421_v16  ;;  %v5429_v49 = vsel %vm4984_vm12, %v1489_v39, %v1490_v24  ;;  %v5847_v52 = vcombine.low %v5210_v51, %v5221_v62  ;;  %v2669_v26 = vsel %vm4827_vm8, %v2664_v29, %v5321_v1  ;;  %v2702_v44 = vrot.slane %v2700_v13, 5 }
  0xd2   : > { %v2720_v4 = vrot.slane %v5845_v43, 4  ;;  %v2790_v43 = vshrl.u32 %v5342_v31, 16  ;;  %v5848_v51 = vcombine.low %v5243_v41, %v5258_v56  ;;  %v2688_v62 = vrot.slane %v2687_v22, 4  ;;  %v4412_v41 = vld [vmem:[%s5795_s3 + $0x8] sm:$0x3] }
  0xd3   : > { %v2724_v1 = vshll.u32 %v5421_v16, 16  ;;  %v2698_v29 = vrot.slane %v2697_v34, 4  ;;  %v5850_v13 = vshll.u32 %v5253_v17, 16  ;;  %v2762_v22 = vshll.u32 %v5304_v35, 16  ;;  %v5460_v56 = vld [vmem:[%s4785_s12 + $0x44] sm:$0x1] }
  0xd4   : > { %v2721_v39 = vor.u32 %v2720_v4, %v5406_v46  ;;  %v5852_v4 = vshrl.u32 %v5298_v10, 16  ;;  %v5854_v16 = vshrl.u32 %v5304_v35, 16 }
  0xd5   : > { %4164 = vmatmul.mubr.msk.bf16.gmra.mrb[8].mxu0 %vm1135_vm9, %v3798_v45  ;;  %v2679_v45 = vsel %vm4827_vm8, %v2674_v57, %v2678_v55  ;;  %v5849_v57 = vshrl.u32 %v5253_v17, 16  ;;  %v5472_v17 = vld [vmem:[%s4785_s12 + $0x50] sm:$0x1]  ;;  %v2726_v0 = vrot.slane %v2724_v1, 5  ;;  %v5856_v1 = vcombine.low %v5285_v33, %v5308_v47 }
  0xd6   : > { %4084 = vmatmul.mubr.msk.bf16.vlgmr.msra.gmra.mrb[0].mxu1 %vm1135_vm9, %v5847_v52  ;;  %4167 = vmatprep.mubr.msk.bf16.mxu0 %vm1135_vm9, %v3799_v28  ;;  %v2711_v28 = vor.u32 %v2710_v18, %v2707_v9  ;;  %v2734_v52 = vrot.slane %v5850_v13, 5  ;;  %v5851_v9 = vshrl.u32 %v5265_v32, 16  ;;  %v2755_v34 = vrot.slane %v5852_v4, 4 }
  0xd7   : > { %4100 = vmatpush3.bf16.msra.mxu1 %v1749_v19  ;;  %4087 = vmatprep.mubr.msk.bf16.mxu1 %vm1135_vm9, %v5848_v51  ;;  %v2731_v55 = vrot.slane %v5849_v57, 4  ;;  %v5462_v19 = vrot.slane %v2738_v20, 5  ;;  %v5853_v51 = vshll.u32 %v5298_v10, 16  ;;  %v2801_v13 = vshrl.u32 %v5345_v2, 16 }
  0xd8   : > { %4342 = vmatprep.subr.msk.bf16.mxu1 %vm1160_vm5, %v4412_v41  ;;  %v2744_v18 = vrot.slane %v5851_v9, 4  ;;  %v3809_v24 = vcombine.low %v2669_v26, %v2679_v45  ;;  %v5474_v41 = vrot.slane %v2762_v22, 5  ;;  %v2768_v20 = vrot.slane %v5854_v16, 4 }
  0xd9   : > { %v2758_v57 = vrot.slane %v5853_v51, 5  ;;  %v2712_v32 = vrot.slane %v2711_v28, 4  ;;  %v2722_v9 = vrot.slane %v2721_v39, 4  ;;  %v2693_v4 = vsel %vm4827_vm8, %v2688_v62, %v5383_v37 }
  0xda   : > { %v2703_v51 = vsel %vm4827_vm8, %v2698_v29, %v2702_v44  ;;  %v2735_v26 = vor.u32 %v2734_v52, %v2731_v55  ;;  %v2748_v45 = vshll.u32 %v5460_v56, 16  ;;  %v2814_v22 = vshrl.u32 %v5348_v7, 16 }
  0xdb   : > { %v2745_v16 = vor.u32 %v2744_v18, %v5462_v19  ;;  %v2759_v2 = vor.u32 %v2758_v57, %v2755_v34  ;;  %v2772_v28 = vshll.u32 %v5472_v17, 16  ;;  %v5855_v39 = vcombine.low %v5262_v53, %v5275_v23 }
  0xdc   : > { %v2825_v37 = vshrl.u32 %v5389_v25, 16  ;;  %v2828_v44 = vshll.u32 %v5389_v25, 16  ;;  %v2769_v62 = vor.u32 %v2768_v20, %v5474_v41  ;;  %v3810_v29 = vcombine.low %v2693_v4, %v2703_v51  ;;  %v5509_v4 = vld [vmem:[%s4785_s12 + $0x5c] sm:$0x1] }
  0xdd   : > { %4168 = vmatmul.mubr.msk.bf16.gmra.mrb[12].mxu0 %vm1135_vm9, %v3800_v3  ;;  %v2786_v3 = vshll.u32 %v5342_v31, 16  ;;  %v2717_v53 = vsel %vm4827_vm8, %v2712_v32, %v5406_v46  ;;  %v2727_v23 = vsel %vm4827_vm8, %v2722_v9, %v2726_v0  ;;  %v2736_v55 = vrot.slane %v2735_v26, 4 }
  0xde   : > { %4088 = vmatmul.mubr.msk.bf16.gmra.mrb[4].mxu1 %vm1135_vm9, %v5855_v39  ;;  %4173 = vmatprep.mubr.msk.bf16.mxu0 %vm1135_vm9, %v3809_v24  ;;  %v2810_v24 = vshll.u32 %v5348_v7, 16  ;;  %v2750_v52 = vrot.slane %v2748_v45, 5  ;;  %v2779_v18 = vrot.slane %v2777_v59, 4  ;;  %v2782_v34 = vrot.slane %v2780_v60, 5 }
  0xdf   : > { %4091 = vmatprep.mubr.msk.bf16.mxu1 %vm1135_vm9, %v5856_v1  ;;  %v2746_v57 = vrot.slane %v2745_v16, 4  ;;  %v2760_v20 = vrot.slane %v2759_v2, 4  ;;  %v2774_v33 = vrot.slane %v2772_v28, 5  ;;  %v2792_v47 = vrot.slane %v2790_v43, 4  ;;  %v5516_v1 = vld [vmem:[%s4785_s12 + $0x68] sm:$0x1] }
  0xe0   : > { %v2770_v39 = vrot.slane %v2769_v62, 4  ;;  %v5511_v51 = vrot.slane %v2786_v3, 5  ;;  %v2803_v32 = vrot.slane %v2801_v13, 4  ;;  %v2806_v46 = vrot.slane %v2804_v5, 5 }
  0xe1   : > { %v3125_v0 = vsel %vm1160_vm5, %v5290_v11, 0  ;;  %v3811_v9 = vcombine.low %v2717_v53, %v2727_v23  ;;  %v5518_v26 = vrot.slane %v2810_v24, 5  ;;  %v2816_v60 = vrot.slane %v2814_v22, 4 }
  0xe2   : > { %v2838_v2 = vshrl.u32 %v5398_v42, 16  ;;  %v2741_v59 = vsel %vm4827_vm8, %v2736_v55, %v5462_v19  ;;  %v2783_v43 = vor.u32 %v2782_v34, %v2779_v18  ;;  %v2751_v5 = vsel %vm4827_vm8, %v2746_v57, %v2750_v52  ;;  %v4413_v55 = vld [vmem:[%s4785_s12 + $0xc] sm:$0xf]  ;;  %v4414_v52 = vld [vmem:[%s4785_s12 + $0x10] sm:$0xf] }
  0xe3   : > { %v2765_v11 = vsel %vm4827_vm8, %v2760_v20, %v5474_v41  ;;  %v2796_v13 = vshll.u32 %v5509_v4, 16  ;;  %v2834_v45 = vshll.u32 %v5398_v42, 16  ;;  %v5857_v22 = vcombine.low %v5334_v50, %v5353_v6 }
  0xe4   : > { %v2775_v19 = vsel %vm4827_vm8, %v2770_v39, %v2774_v33  ;;  %v2793_v16 = vor.u32 %v2792_v47, %v5511_v51  ;;  %v2807_v28 = vor.u32 %v2806_v46, %v2803_v32  ;;  %v2820_v41 = vshll.u32 %v5516_v1, 16 }
  0xe5   : > { %4174 = vmatmul.mubr.msk.bf16.vlgmr.msra.gmra.mrb[0].mxu0 %vm1135_vm9, %v3810_v29  ;;  %v5858_v62 = vcombine.low %v5381_v61, %v5393_v38  ;;  %v2817_v50 = vor.u32 %v2816_v60, %v5518_v26  ;;  %v2827_v6 = vrot.slane %v2825_v37, 4  ;;  %v2830_v3 = vrot.slane %v2828_v44, 5  ;;  %v5555_v37 = vld [vmem:[%s4785_s12 + $0x74] sm:$0x1] }
  0xe6   : > { %4092 = vmatmul.mubr.msk.bf16.gmra.mrb[8].mxu1 %vm1135_vm9, %v5857_v22  ;;  %4190 = vmatpush3.bf16.msra.mxu0 %v3125_v0  ;;  %v3716_v29 = vcombine.low %v5107_v15, %v5114_v48  ;;  %v1985_v53 = vshrl.u32 %v5107_v15, 16  ;;  %v1988_v23 = vshll.u32 %v5107_v15, 16  ;;  %v3812_v24 = vcombine.low %v2741_v59, %v2751_v5 }
  0xe7   : > { %4095 = vmatprep.mubr.msk.bf16.mxu1 %vm1135_vm9, %v5858_v62  ;;  %4177 = vmatprep.mubr.msk.bf16.mxu0 %vm1135_vm9, %v3811_v9  ;;  %v3711_v61 = vcombine.low %v4413_v55, %v4414_v52  ;;  %v5552_v38 = vrot.slane %v2834_v45, 5  ;;  %v2840_v18 = vrot.slane %v2838_v2, 4  ;;  %v3813_v34 = vcombine.low %v2765_v11, %v2775_v19 }
  0xe8   : > { %v2784_v57 = vrot.slane %v2783_v43, 4  ;;  %v2794_v20 = vrot.slane %v2793_v16, 4  ;;  %v2798_v33 = vrot.slane %v2796_v13, 5  ;;  %v2808_v44 = vrot.slane %v2807_v28, 4 }
  0xe9   : > { %v2818_v47 = vrot.slane %v2817_v50, 4  ;;  %v2822_v39 = vrot.slane %v2820_v41, 5  ;;  %v2831_v32 = vor.u32 %v2830_v3, %v2827_v6  ;;  %v1994_v46 = vshll.u32 %v5114_v48, 16  ;;  %v4415_v50 = vld [vmem:[%s4785_s12 + $0x18] sm:$0xf] }
  0xea   : > { %v1998_v0 = vshrl.u32 %v5114_v48, 16  ;;  %v3022_v9 = vrot.slane %v5184_v58, 5  ;;  %v1987_v60 = vrot.slane %v1985_v53, 4  ;;  %v2841_v2 = vor.u32 %v2840_v18, %v5552_v38  ;;  %v4416_v6 = vld [vmem:[%s4785_s12 + $0x1c] sm:$0xf] }
  0xeb   : > { %v2844_v59 = vshll.u32 %v5555_v37, 16  ;;  %v1990_v43 = vrot.slane %v1988_v23, 5  ;;  %v2004_v5 = vshll.u32 %v5117_v63, 16  ;;  %v5859_v11 = vcombine.low %v5412_v14, %v5429_v49  ;;  %v4417_v23 = vld [vmem:[%s4785_s12 + $0x24] sm:$0xf] }
  0xec   : > { %v2789_v58 = vsel %vm4827_vm8, %v2784_v57, %v5511_v51  ;;  %v2799_v13 = vsel %vm4827_vm8, %v2794_v20, %v2798_v33  ;;  %v2813_v63 = vsel %vm4827_vm8, %v2808_v44, %v5518_v26  ;;  %v2823_v14 = vsel %vm4827_vm8, %v2818_v47, %v2822_v39 }
  0xed   : > { %4178 = vmatmul.mubr.msk.bf16.gmra.mrb[4].mxu0 %vm1135_vm9, %v3812_v24  ;;  %v2832_v49 = vrot.slane %v2831_v32, 4  ;;  %v3825_v45 = vrot.slane %v5181_v12, 9  ;;  %v1996_v22 = vrot.slane %v1994_v46, 5  ;;  %v2000_v19 = vrot.slane %v1998_v0, 4  ;;  %v4418_v24 = vld [vmem:[%s4785_s12 + $0x28] sm:$0xf] }
  0xee   : > { %4096 = vmatmul.mubr.msk.bf16.gmra.mrb[12].mxu1 %vm1135_vm9, %v5859_v11  ;;  %4181 = vmatprep.mubr.msk.bf16.mxu0 %vm1135_vm9, %v3813_v34  ;;  %v3024_v51 = vrot.slane %v3022_v9, 4  ;;  %v3025_v16 = vrot.slane %v5319_v40, 5  ;;  %v3814_v28 = vcombine.low %v2789_v58, %v2799_v13  ;;  %v2842_v41 = vrot.slane %v2841_v2, 4  ;;  %v5860_v32 = vld [vmem:[#allocation4_spill] sm:$0xff]  ;;  %v4419_v46 = vld [vmem:[%s4785_s12 + $0x30] sm:$0xf] }
  0xef   : > { %4101 = vmatprep.mubr.msk.bf16.mxu1 %vm1135_vm9, %v3711_v61  ;;  %v2846_v62 = vrot.slane %v2844_v59, 5  ;;  %v3712_v3 = vcombine.low %v4415_v50, %v4416_v6  ;;  %v3815_v26 = vcombine.low %v2813_v63, %v2823_v14  ;;  %v2006_v53 = vrot.slane %v2004_v5, 5  ;;  %v5862_v2 = vld [vmem:[#allocation18_spill] sm:$0xff] }
  0xf0   : > { %v3713_v55 = vcombine.low %v4417_v23, %v4418_v24  ;;  %v2837_v12 = vsel %vm4827_vm8, %v2832_v49, %v5552_v38  ;;  %v3023_v52 = vsel %vm4984_vm12, %v3825_v45, %v3022_v9  ;;  %v3026_v40 = vsel %vm4984_vm12, %v3024_v51, %v3025_v16  ;;  %v5861_v9 = vld [vmem:[#allocation12_spill] sm:$0xff]  ;;  %v5864_v45 = vld [vmem:[#allocation19_spill] sm:$0xff]  ;;  %v5866_v23 = vld [vmem:[#allocation5_spill] sm:$0xff] }
  0xf1   : > { %v3029_v61 = vrot.slane %v5197_v36, 5  ;;  %v1991_v18 = vor.u32 %v1990_v43, %v1987_v60  ;;  %v2001_v34 = vor.u32 %v2000_v19, %v1996_v22  ;;  %v2847_v57 = vsel %vm4827_vm8, %v2842_v41, %v2846_v62  ;;  %v5863_v43 = vld [vmem:[#allocation13_spill] sm:$0xff] }
  0xf2   : > { %v3036_v20 = vrot.slane %v5228_v27, 5  ;;  %v1961_v38 = vshrl.u32 %v5080_v54, 16  ;;  %v1964_v33 = vshll.u32 %v5080_v54, 16  ;;  %v1970_v36 = vshll.u32 %v5083_v21, 16  ;;  %v4420_v27 = vld [vmem:[%s4785_s12 + $0x34] sm:$0xf] }
  0xf3   : > { %v1974_v44 = vshrl.u32 %v5083_v21, 16  ;;  %v1992_v47 = vrot.slane %v1991_v18, 4  ;;  %v2002_v39 = vrot.slane %v2001_v34, 4  ;;  %v3714_v0 = vcombine.low %v4419_v46, %v4420_v27  ;;  %v5868_v34 = vld [vmem:[#allocation6_spill] sm:$0xff] }
  0xf4   : > { %v3826_v60 = vrot.slane %v5861_v9, 9  ;;  %v3032_v59 = vrot.slane %v5862_v2, 5  ;;  %v3827_v5 = vrot.slane %v5863_v43, 9  ;;  %v3833_v11 = vcombine.low %v3023_v52, %v3026_v40  ;;  %v5867_v40 = vld [vmem:[#allocation14_spill] sm:$0xff] }
  0xf5   : > { %4182 = vmatmul.mubr.msk.bf16.gmra.mrb[8].mxu0 %vm1135_vm9, %v3814_v28  ;;  %v3031_v58 = vrot.slane %v3029_v61, 4  ;;  %v1997_v13 = vsel %vm4827_vm8, %v1992_v47, %v1996_v22  ;;  %v2007_v63 = vsel %vm4827_vm8, %v2002_v39, %v2006_v53  ;;  %v3816_v14 = vcombine.low %v2837_v12, %v2847_v57  ;;  %v5870_v9 = vld [vmem:[#allocation10_spill] sm:$0xff] }
  0xf6   : > { %4102 = vmatmul.mubr.msk.bf16.vlgmr.msra.gmra.mrb[0].mxu1 %vm1135_vm9, %v3712_v3  ;;  %4185 = vmatprep.mubr.msk.bf16.mxu0 %vm1135_vm9, %v3815_v26  ;;  %v3038_v49 = vrot.slane %v3036_v20, 4  ;;  %v3039_v19 = vrot.slane %v5864_v45, 5  ;;  %v5616_v51 = vcombine.low %v1997_v13, %v2007_v63  ;;  %v1963_v16 = vrot.slane %v1961_v38, 4  ;;  %v5865_v26 = vld [vmem:[#allocation15_spill] sm:$0xff] }
  0xf7   : > { %4208 = vmatpush3.bf16.msra.mxu1 %v5860_v32  ;;  %4105 = vmatprep.mubr.msk.bf16.mxu1 %vm1135_vm9, %v3713_v55  ;;  %v1966_v28 = vrot.slane %v1964_v33, 5  ;;  %v1972_v41 = vrot.slane %v1970_v36, 5  ;;  %v1976_v62 = vrot.slane %v1974_v44, 4  ;;  %v3715_v50 = vcombine.low %v5080_v54, %v5083_v21  ;;  %v5869_v38 = vld [vmem:[#allocation7_spill] sm:$0xff] }
  0xf8   : > { %v3030_v6 = vsel %vm4984_vm12, %v3826_v60, %v3029_v61  ;;  %v3033_v22 = vsel %vm4984_vm12, %v3031_v58, %v3032_v59  ;;  %v3037_v3 = vsel %vm4984_vm12, %v3827_v5, %v3036_v20  ;;  %v3043_v53 = vrot.slane %v5865_v26, 5  ;;  %v5871_v60 = vld [vmem:[#allocation9_spill] sm:$0xff] }
  0xf9   : > { %v1980_v24 = vshll.u32 %v5866_v23, 16  ;;  %v3040_v54 = vsel %vm4984_vm12, %v3038_v49, %v3039_v19  ;;  %v1967_v21 = vor.u32 %v1966_v28, %v1963_v16  ;;  %v1977_v55 = vor.u32 %v1976_v62, %v1972_v41 }
  0xfa   : > { %v3050_v12 = vrot.slane %v5304_v35, 5  ;;  %v3834_v52 = vcombine.low %v3030_v6, %v3033_v22  ;;  %v3828_v61 = vrot.slane %v5867_v40, 9  ;;  %v3046_v18 = vrot.slane %v5460_v56, 5  ;;  %v5873_v6 = vld [vmem:[#allocation16_spill] sm:$0xff] }
  0xfb   : > { %v2009_v57 = vshrl.u32 %v5868_v34, 16  ;;  %v2012_v20 = vshll.u32 %v5868_v34, 16  ;;  %v2018_v33 = vshll.u32 %v5869_v38, 16  ;;  %v2022_v36 = vshrl.u32 %v5869_v38, 16 }
  0xfc   : > { %v3835_v44 = vcombine.low %v3037_v3, %v3040_v54  ;;  %v3045_v47 = vrot.slane %v3043_v53, 4  ;;  %v1982_v39 = vrot.slane %v1980_v24, 5  ;;  %v3829_v35 = vrot.slane %v5298_v10, 9 }
  0xfd   : > { %4186 = vmatmul.mubr.msk.bf16.gmra.mrb[12].mxu0 %vm1135_vm9, %v3816_v14  ;;  %v1968_v32 = vrot.slane %v1967_v21, 4  ;;  %v1978_v46 = vrot.slane %v1977_v55, 4  ;;  %v3052_v27 = vrot.slane %v3050_v12, 4  ;;  %v3717_v56 = vcombine.low %v5868_v34, %v5869_v38 }
  0xfe   : > { %4106 = vmatmul.mubr.msk.bf16.gmra.mrb[4].mxu1 %vm1135_vm9, %v3714_v0  ;;  %4191 = vmatprep.mubr.msk.bf16.mxu0 %vm1135_vm9, %v3833_v11  ;;  %v3053_v0 = vrot.slane %v5472_v17, 5  ;;  %v3718_v2 = vcombine.low %v5871_v60, %v5870_v9  ;;  %v2011_v59 = vrot.slane %v2009_v57, 4  ;;  %v2014_v43 = vrot.slane %v2012_v20, 5 }
  0xff   : > { %4109 = vmatprep.mubr.msk.bf16.mxu1 %vm1135_vm9, %v3715_v50  ;;  %v2020_v5 = vrot.slane %v2018_v33, 5  ;;  %v2024_v11 = vrot.slane %v2022_v36, 4  ;;  %v3044_v10 = vsel %vm4984_vm12, %v3828_v61, %v3043_v53  ;;  %v3047_v58 = vsel %vm4984_vm12, %v3045_v47, %v3046_v18  ;;  %v5874_v53 = vld [vmem:[#allocation17_spill] sm:$0xff]  ;;  %v5875_v36 = vld [vmem:[#allocation11_spill] sm:$0xff] }
 0x100   : > { %v3051_v17 = vsel %vm4984_vm12, %v3829_v35, %v3050_v12  ;;  %v3057_v13 = vrot.slane %v5342_v31, 5  ;;  %v1973_v63 = vsel %vm4827_vm8, %v1968_v32, %v1972_v41  ;;  %v1983_v14 = vsel %vm4827_vm8, %v1978_v46, %v1982_v39  ;;  %v5872_v41 = vld [vmem:[#allocation8_spill] sm:$0xff] }
 0x101   : > { %v3054_v49 = vsel %vm4984_vm12, %v3052_v27, %v3053_v0  ;;  %v3064_v45 = vrot.slane %v5348_v7, 5  ;;  %v2033_v31 = vshrl.u32 %v5871_v60, 16  ;;  %v2036_v15 = vshll.u32 %v5871_v60, 16 }
 0x102   : > { %v2042_v48 = vshll.u32 %v5870_v9, 16  ;;  %v3836_v19 = vcombine.low %v3044_v10, %v3047_v58  ;;  %v2015_v16 = vor.u32 %v2014_v43, %v2011_v59  ;;  %v2025_v28 = vor.u32 %v2024_v11, %v2020_v5 }
 0x103   : > { %v2028_v62 = vshll.u32 %v5872_v41, 16  ;;  %v3837_v50 = vcombine.low %v3051_v17, %v3054_v49  ;;  %v3830_v22 = vrot.slane %v5873_v6, 9  ;;  %v3059_v3 = vrot.slane %v3057_v13, 4 }
 0x104   : > { %v3060_v7 = vrot.slane %v5509_v4, 5  ;;  %v3731_v26 = vcombine.low %v1973_v63, %v1983_v14  ;;  %v3831_v23 = vrot.slane %v5874_v53, 9  ;;  %v3066_v24 = vrot.slane %v3064_v45, 4 }
 0x105   : > { %4192 = vmatmul.mubr.msk.bf16.vlgmr.msra.gmra.mrb[0].mxu0 %vm1135_vm9, %v3834_v52  ;;  %v3067_v54 = vrot.slane %v5516_v1, 5  ;;  %v2035_v21 = vrot.slane %v2033_v31, 4  ;;  %v2038_v55 = vrot.slane %v2036_v15, 5  ;;  %v2044_v12 = vrot.slane %v2042_v48, 5 }
 0x106   : > { %4110 = vmatmul.mubr.msk.bf16.gmra.mrb[8].mxu1 %vm1135_vm9, %v3716_v29  ;;  %4195 = vmatprep.mubr.msk.bf16.mxu0 %vm1135_vm9, %v3835_v44  ;;  %v2046_v29 = vshrl.u32 %v5870_v9, 16  ;;  %v2016_v40 = vrot.slane %v2015_v16, 4  ;;  %v2026_v61 = vrot.slane %v2025_v28, 4  ;;  %v2030_v18 = vrot.slane %v2028_v62, 5 }
 0x107   : > { %4113 = vmatprep.mubr.msk.bf16.mxu1 %vm1135_vm9, %v3717_v56  ;;  %v3058_v4 = vsel %vm4984_vm12, %v3830_v22, %v3057_v13  ;;  %v3061_v34 = vsel %vm4984_vm12, %v3059_v3, %v3060_v7  ;;  %v3065_v1 = vsel %vm4984_vm12, %v3831_v23, %v3064_v45  ;;  %v3071_v57 = vrot.slane %v5398_v42, 5 }
 0x108   : > { %v2048_v52 = vrot.slane %v2046_v29, 4  ;;  %v3068_v20 = vsel %vm4984_vm12, %v3066_v24, %v3067_v54  ;;  %v2039_v38 = vor.u32 %v2038_v55, %v2035_v21  ;;  %v2052_v44 = vshll.u32 %v5875_v36, 16 }
 0x109   : > { %v2021_v47 = vsel %vm4827_vm8, %v2016_v40, %v2020_v5  ;;  %v2031_v39 = vsel %vm4827_vm8, %v2026_v61, %v2030_v18  ;;  %v3838_v35 = vcombine.low %v3058_v4, %v3061_v34  ;;  %v3839_v32 = vcombine.low %v3065_v1, %v3068_v20 }
 0x10a   : > { %v2049_v33 = vor.u32 %v2048_v52, %v2044_v12  ;;  %v3832_v46 = vrot.slane %v5389_v25, 9  ;;  %v3073_v42 = vrot.slane %v3071_v57, 4  ;;  %v3074_v27 = vrot.slane %v5555_v37, 5 }
 0x10b   : > { %v3733_v0 = vcombine.low %v2021_v47, %v2031_v39  ;;  %v2040_v56 = vrot.slane %v2039_v38, 4  ;;  %v2054_v60 = vrot.slane %v2052_v44, 5 }
 0x10c   : > { %v2050_v9 = vrot.slane %v2049_v33, 4  ;;  %v3075_v25 = vsel %vm4984_vm12, %v3073_v42, %v3074_v27 }
 0x10d   : > { %4196 = vmatmul.mubr.msk.bf16.gmra.mrb[4].mxu0 %vm1135_vm9, %v3836_v19  ;;  %v2045_v37 = vsel %vm4827_vm8, %v2040_v56, %v2044_v12 }
 0x10e   : > { %4114 = vmatmul.mubr.msk.bf16.gmra.mrb[12].mxu1 %vm1135_vm9, %v3718_v2  ;;  %4199 = vmatprep.mubr.msk.bf16.mxu0 %vm1135_vm9, %v3837_v50  ;;  %v3072_v2 = vsel %vm4984_vm12, %v3832_v46, %v3071_v57  ;;  %v2055_v59 = vsel %vm4827_vm8, %v2050_v9, %v2054_v60 }
 0x10f   : > { %4127 = vmatprep.mubr.msk.bf16.mxu1 %vm1135_vm9, %v3731_v26  ;;  %v3840_v43 = vcombine.low %v3072_v2, %v3075_v25  ;;  %v3734_v5 = vcombine.low %v2045_v37, %v2055_v59 }
 0x115   : > { %4200 = vmatmul.mubr.msk.bf16.gmra.mrb[8].mxu0 %vm1135_vm9, %v3838_v35 }
 0x116   : > { %4128 = vmatmul.mubr.msk.bf16.vlgmr.msra.gmra.mrb[8].mxu1 %vm1135_vm9, %v5616_v51  ;;  %4203 = vmatprep.mubr.msk.bf16.mxu0 %vm1135_vm9, %v3839_v32 }
 0x117   : > { %4131 = vmatprep.mubr.msk.bf16.mxu1 %vm1135_vm9, %v3733_v0 }
 0x11d   : > { %4204 = vmatmul.mubr.msk.bf16.gmra.mrb[12].mxu0 %vm1135_vm9, %v3840_v43 }
 0x11e   : > { %4132 = vmatmul.mubr.msk.bf16.gmra.mrb[12].mxu1 %vm1135_vm9, %v3734_v5 }
 0x1c9   : > { %v4103_v51 = vpop.f32.mrb[0].mxu1 }
 0x1ca   : > { %v1785_v11 = vpop.f32.mrb[1].mxu1 }
 0x1cb   : > { %v4104_v10 = vpop.f32.mrb[2].mxu1 }
 0x1cc   : > { %v1788_v58 = vpop.f32.mrb[3].mxu1 }
 0x1d1   : > { %v4107_v8 = vpop.f32.mrb[4].mxu1 }
 0x1d2   : > { %v1801_v17 = vpop.f32.mrb[5].mxu1 }
 0x1d3   : > { %v4108_v13 = vpop.f32.mrb[6].mxu1 }
 0x1d4   : > { %v1804_v63 = vpop.f32.mrb[7].mxu1 }
 0x1d8   : > { %v4193_v14 = vpop.f32.mrb[0].mxu0 }
 0x1d9   : > { %v4209_v49 = vadd.f32 %v4193_v14, %v4103_v51  ;;  %v3161_v30 = vpop.f32.mrb[1].mxu0 }
 0x1da   : > { %v4210_v45 = vadd.f32 %v3161_v30, %v1785_v11  ;;  %v4194_v31 = vpop.f32.mrb[2].mxu0 }
 0x1db   : > { %v3871_v15 = vpack.c.bf16 %v4209_v49, %v4209_v49  ;;  %v4211_v48 = vadd.f32 %v4194_v31, %v4104_v10  ;;  %v3164_v29 = vpop.f32.mrb[3].mxu0  ;;  %v3360_v41 = vmul.f32 %v4209_v49, %v4209_v49  ;;  %v3324_v53 = vsel %vm1135_vm9, %v4209_v49, 0.0 }
 0x1dc   : > { %v3869_v19 = vpack.c.bf16 %v4210_v45, %v4210_v45  ;;  %v3358_v16 = vmul.f32 %v4210_v45, %v4210_v45  ;;  %v4212_v28 = vadd.f32 %v3164_v29, %v1788_v58  ;;  %v3321_v50 = vsel %vm1135_vm9, %v4210_v45, 0.0 }
 0x1dd   : > { %3307 = vst.msk [vmem:[%s4534_s11 + $0x8] sm:$0xf] %vm3304_vm13, %v3871_v15  ;;  %v3872_v62 = vpack.c.bf16 %v4211_v48, %v4211_v48  ;;  %v3361_v7 = vmul.f32 %v4211_v48, %v4211_v48  ;;  %v3377_v40 = vsel %vm1135_vm9, %v3360_v41, 0.0  ;;  %v3326_v4 = vsel %vm1135_vm9, %v4211_v48, 0.0 }
 0x1de   : > { %3305 = vst.msk [vmem:[%s4534_s11] sm:$0xf] %vm3304_vm13, %v3869_v19  ;;  %v3870_v6 = vpack.c.bf16 %v4212_v28, %v4212_v28  ;;  %v3322_v22 = vsel %vm1135_vm9, %v4212_v28, 0.0  ;;  %v3359_v3 = vmul.f32 %v4212_v28, %v4212_v28  ;;  %v3374_v23 = vsel %vm1135_vm9, %v3358_v16, 0.0 }
 0x1df   : > { %3308 = vst.msk [vmem:[%s4534_s11 + $0xc] sm:$0xf] %vm3304_vm13, %v3872_v62  ;;  %v3323_v26 = vadd.f32 %v3322_v22, %v3321_v50  ;;  %v3379_v34 = vsel %vm1135_vm9, %v3361_v7, 0.0 }
 0x1e0   : > { %3306 = vst.msk [vmem:[%s4534_s11 + $0x4] sm:$0xf] %vm3304_vm13, %v3870_v6  ;;  %v3375_v24 = vsel %vm1135_vm9, %v3359_v3, 0.0  ;;  %v4197_v54 = vpop.f32.mrb[4].mxu0 }
 0x1e1   : > { %v3325_v21 = vadd.f32 %v3324_v53, %v3323_v26  ;;  %v3376_v55 = vadd.f32 %v3375_v24, %v3374_v23  ;;  %v4213_v12 = vadd.f32 %v4197_v54, %v4107_v8  ;;  %v3177_v52 = vpop.f32.mrb[5].mxu0 }
 0x1e2   : > { %v4214_v61 = vadd.f32 %v3177_v52, %v1801_v17  ;;  %v4198_v18 = vpop.f32.mrb[6].mxu0 }
 0x1e3   : > { %v3378_v1 = vadd.f32 %v3377_v40, %v3376_v55  ;;  %v3875_v57 = vpack.c.bf16 %v4213_v12, %v4213_v12  ;;  %v3180_v20 = vpop.f32.mrb[7].mxu0  ;;  %v3327_v33 = vadd.f32 %v3326_v4, %v3325_v21  ;;  %v4215_v39 = vadd.f32 %v4198_v18, %v4108_v13 }
 0x1e4   : > { %v3873_v38 = vpack.c.bf16 %v4214_v61, %v4214_v61  ;;  %v3328_v36 = vsel %vm1135_vm9, %v4214_v61, 0.0  ;;  %v3362_v44 = vmul.f32 %v4214_v61, %v4214_v61  ;;  %v4216_v35 = vadd.f32 %v3180_v20, %v1804_v63 }
 0x1e5   : > { %3311 = vst.msk [vmem:[%s4534_s11 + $0x18] sm:$0xf] %vm3304_vm13, %v3875_v57  ;;  %v3380_v47 = vadd.f32 %v3379_v34, %v3378_v1  ;;  %v3329_v32 = vadd.f32 %v3328_v36, %v3327_v33  ;;  %v3876_v27 = vpack.c.bf16 %v4215_v39, %v4215_v39  ;;  %v3364_v0 = vmul.f32 %v4213_v12, %v4213_v12 }
 0x1e6   : > { %3309 = vst.msk [vmem:[%s4534_s11 + $0x10] sm:$0xf] %vm3304_vm13, %v3873_v38  ;;  %v3381_v46 = vsel %vm1135_vm9, %v3362_v44, 0.0  ;;  %v3874_v56 = vpack.c.bf16 %v4216_v35, %v4216_v35  ;;  %v3330_v9 = vsel %vm1135_vm9, %v4216_v35, 0.0  ;;  %v3363_v60 = vmul.f32 %v4216_v35, %v4216_v35 }
 0x1e7   : > { %v3382_v42 = vadd.f32 %v3381_v46, %v3380_v47  ;;  %3312 = vst.msk [vmem:[%s4534_s11 + $0x1c] sm:$0xf] %vm3304_vm13, %v3876_v27  ;;  %v3331_v25 = vadd.f32 %v3330_v9, %v3329_v32  ;;  %v3332_v43 = vsel %vm1135_vm9, %v4213_v12, 0.0  ;;  %v3365_v5 = vmul.f32 %v4215_v39, %v4215_v39 }
 0x1e8   : > { %v4201_v2 = vpop.f32.mrb[8].mxu0  ;;  %3310 = vst.msk [vmem:[%s4534_s11 + $0x14] sm:$0xf] %vm3304_vm13, %v3874_v56  ;;  %v3383_v51 = vsel %vm1135_vm9, %v3363_v60, 0.0  ;;  %v3385_v49 = vsel %vm1135_vm9, %v3364_v0, 0.0  ;;  %v3334_v30 = vsel %vm1135_vm9, %v4215_v39, 0.0 }
 0x1e9   : > { %v4129_v37 = vpop.f32.mrb[8].mxu1  ;;  %v3193_v59 = vpop.f32.mrb[9].mxu0  ;;  %v3333_v8 = vadd.f32 %v3332_v43, %v3331_v25  ;;  %v3384_v17 = vadd.f32 %v3383_v51, %v3382_v42  ;;  %v3387_v28 = vsel %vm1135_vm9, %v3365_v5, 0.0 }
 0x1ea   : > { %v4217_v11 = vadd.f32 %v4201_v2, %v4129_v37  ;;  %v2173_v10 = vpop.f32.mrb[9].mxu1  ;;  %v4202_v58 = vpop.f32.mrb[10].mxu0 }
 0x1eb   : > { %v4218_v13 = vadd.f32 %v3193_v59, %v2173_v10  ;;  %v4130_v63 = vpop.f32.mrb[10].mxu1  ;;  %v3196_v14 = vpop.f32.mrb[11].mxu0  ;;  %v3386_v48 = vadd.f32 %v3385_v49, %v3384_v17  ;;  %v3335_v19 = vadd.f32 %v3334_v30, %v3333_v8 }
 0x1ec   : > { %v3879_v45 = vpack.c.bf16 %v4217_v11, %v4217_v11  ;;  %v4219_v31 = vadd.f32 %v4202_v58, %v4130_v63  ;;  %v2176_v15 = vpop.f32.mrb[11].mxu1  ;;  %v3368_v50 = vmul.f32 %v4217_v11, %v4217_v11  ;;  %v3340_v18 = vsel %vm1135_vm9, %v4217_v11, 0.0 }
 0x1ed   : > { %v3877_v29 = vpack.c.bf16 %v4218_v13, %v4218_v13  ;;  %v3336_v16 = vsel %vm1135_vm9, %v4218_v13, 0.0  ;;  %v3366_v41 = vmul.f32 %v4218_v13, %v4218_v13  ;;  %v3388_v22 = vadd.f32 %v3387_v28, %v3386_v48 }
 0x1ee   : > { %3315 = vst.msk [vmem:[%s4534_s11 + $0x28] sm:$0xf] %vm3304_vm13, %v3879_v45  ;;  %v3880_v62 = vpack.c.bf16 %v4219_v31, %v4219_v31  ;;  %v3337_v6 = vadd.f32 %v3336_v16, %v3335_v19  ;;  %v4220_v3 = vadd.f32 %v3196_v14, %v2176_v15  ;;  %v3393_v4 = vsel %vm1135_vm9, %v3368_v50, 0.0 }
 0x1ef   : > { %3313 = vst.msk [vmem:[%s4534_s11 + $0x20] sm:$0xf] %vm3304_vm13, %v3877_v29  ;;  %v3389_v7 = vsel %vm1135_vm9, %v3366_v41, 0.0  ;;  %v3369_v20 = vmul.f32 %v4219_v31, %v4219_v31  ;;  %v3342_v47 = vsel %vm1135_vm9, %v4219_v31, 0.0 }
 0x1f0   : > { %3316 = vst.msk [vmem:[%s4534_s11 + $0x2c] sm:$0xf] %vm3304_vm13, %v3880_v62  ;;  %v4205_v26 = vpop.f32.mrb[12].mxu0  ;;  %v3390_v53 = vadd.f32 %v3389_v7, %v3388_v22  ;;  %v3878_v23 = vpack.c.bf16 %v4220_v3, %v4220_v3  ;;  %v3338_v24 = vsel %vm1135_vm9, %v4220_v3, 0.0  ;;  %v3367_v12 = vmul.f32 %v4220_v3, %v4220_v3 }
 0x1f1   : > { %v4133_v54 = vpop.f32.mrb[12].mxu1  ;;  %v3209_v21 = vpop.f32.mrb[13].mxu0  ;;  %v3339_v55 = vadd.f32 %v3338_v24, %v3337_v6  ;;  %v3395_v9 = vsel %vm1135_vm9, %v3369_v20, 0.0 }
 0x1f2   : > { %v4221_v52 = vadd.f32 %v4205_v26, %v4133_v54  ;;  %v2189_v40 = vpop.f32.mrb[13].mxu1  ;;  %v4206_v61 = vpop.f32.mrb[14].mxu0  ;;  %3314 = vst.msk [vmem:[%s4534_s11 + $0x24] sm:$0xf] %vm3304_vm13, %v3878_v23  ;;  %v3391_v33 = vsel %vm1135_vm9, %v3367_v12, 0.0 }
 0x1f3   : > { %v4222_v34 = vadd.f32 %v3209_v21, %v2189_v40  ;;  %v4134_v1 = vpop.f32.mrb[14].mxu1  ;;  %v3212_v57 = vpop.f32.mrb[15].mxu0  ;;  %v3341_v38 = vadd.f32 %v3340_v18, %v3339_v55  ;;  %v3392_v39 = vadd.f32 %v3391_v33, %v3390_v53 }
 0x1f4   : > { %v3883_v36 = vpack.c.bf16 %v4221_v52, %v4221_v52  ;;  %v2192_v44 = vpop.f32.mrb[15].mxu1  ;;  %v4223_v27 = vadd.f32 %v4206_v61, %v4134_v1  ;;  %v3372_v5 = vmul.f32 %v4221_v52, %v4221_v52  ;;  %v3348_v10 = vsel %vm1135_vm9, %v4221_v52, 0.0 }
 0x1f5   : > { %v3881_v35 = vpack.c.bf16 %v4222_v34, %v4222_v34  ;;  %v3344_v32 = vsel %vm1135_vm9, %v4222_v34, 0.0  ;;  %v3343_v46 = vadd.f32 %v3342_v47, %v3341_v38  ;;  %v3370_v42 = vmul.f32 %v4222_v34, %v4222_v34 }
 0x1f6   : > { %3319 = vst.msk [vmem:[%s4534_s11 + $0x38] sm:$0xf] %vm3304_vm13, %v3883_v36  ;;  %v4224_v0 = vadd.f32 %v3212_v57, %v2192_v44  ;;  %v3394_v56 = vadd.f32 %v3393_v4, %v3392_v39  ;;  %v3884_v25 = vpack.c.bf16 %v4223_v27, %v4223_v27  ;;  %v3373_v8 = vmul.f32 %v4223_v27, %v4223_v27 }
 0x1f7   : > { %3317 = vst.msk [vmem:[%s4534_s11 + $0x30] sm:$0xf] %vm3304_vm13, %v3881_v35  ;;  %v3345_v60 = vadd.f32 %v3344_v32, %v3343_v46  ;;  %v3397_v2 = vsel %vm1135_vm9, %v3370_v42, 0.0  ;;  %v3350_v63 = vsel %vm1135_vm9, %v4223_v27, 0.0  ;;  %v3401_v49 = vsel %vm1135_vm9, %v3372_v5, 0.0 }
 0x1f8   : > { %v3396_v37 = vadd.f32 %v3395_v9, %v3394_v56  ;;  %v3882_v59 = vpack.c.bf16 %v4224_v0, %v4224_v0  ;;  %v3346_v43 = vsel %vm1135_vm9, %v4224_v0, 0.0  ;;  %3320 = vst.msk [vmem:[%s4534_s11 + $0x3c] sm:$0xf] %vm3304_vm13, %v3884_v25  ;;  %v3371_v11 = vmul.f32 %v4224_v0, %v4224_v0 }
 0x1f9   : > { %v3347_v51 = vadd.f32 %v3346_v43, %v3345_v60  ;;  %v3403_v31 = vsel %vm1135_vm9, %v3373_v8, 0.0 }
 0x1fa   : > { %v3398_v58 = vadd.f32 %v3397_v2, %v3396_v37  ;;  %3318 = vst.msk [vmem:[%s4534_s11 + $0x34] sm:$0xf] %vm3304_vm13, %v3882_v59  ;;  %v3399_v13 = vsel %vm1135_vm9, %v3371_v11, 0.0 }
 0x1fb   : > { %v3349_v17 = vadd.f32 %v3348_v10, %v3347_v51 }
 0x1fc   : > { %v3400_v14 = vadd.f32 %v3399_v13, %v3398_v58 }
 0x1fd   : > { %v3351_v30 = vadd.f32 %v3350_v63, %v3349_v17 }
 0x1fe   : > { %v3402_v45 = vadd.f32 %v3401_v49, %v3400_v14 }
 0x1ff   : > { %v3352_v15 = vrot.slane %v3351_v30, 4 }
 0x200   : > { %v3404_v48 = vadd.f32 %v3403_v31, %v3402_v45 }
 0x201   : > { %v3353_v29 = vadd.f32 %v3352_v15, %v3351_v30 }
 0x202   : > { %v3405_v19 = vrot.slane %v3404_v48, 4 }
 0x203   : > { %v3354_v16 = vrot.slane %v3353_v29, 2 }
 0x204   : > { %v3406_v28 = vadd.f32 %v3405_v19, %v3404_v48 }
 0x205   : > { %v3355_v41 = vadd.f32 %v3354_v16, %v3353_v29 }
 0x206   : > { %v3407_v62 = vrot.slane %v3406_v28, 2 }
 0x207   : > { %v3356_v50 = vrot.slane %v3355_v41, 1 }
 0x208   : > { %v3408_v6 = vadd.f32 %v3407_v62, %v3406_v28 }
 0x209   : > { %v3357_v3 = vadd.f32 %v3356_v50, %v3355_v41 }
 0x20a   : > { %v3409_v22 = vrot.slane %v3408_v6, 1 }
 0x20c   : > { %v3410_v7 = vadd.f32 %v3409_v22, %v3408_v6 }
 0x20e   : > { %v3412_v26 = vsel %vm3411_vm14, %v3357_v3, %v3410_v7 }
 0x20f   : > { %3414 = vst.msk [vmem:[%s4540_s24] sm:$0x3] %vm3413_vm15, %v3412_v26 }
 0x210 PF: > { %s16_s22 = sadd.s32 1, %s4459_s22   ;;  %s5876_s11 = sld [smem:[#allocation3_spill]] }
 0x211   : > { %p13_p9 = scmp.ge.s32.totalorder %s16_s22, 6   ;;  %s5877_s18 = smov %s4451_s20 }
 0x212   : > { %s5878_s19 = smov %s4455_s21  ;;  %s5879_s20 = smov %s5882_s23 }
 0x213   :  { %15 = sbr.rel (!%p13_p9) target bundleno = 3 (0x3), region = 87 }
 0x216   : > { %s5880_s21 = smov %s5876_s11 }

</bundles_post_ra>
